<compile_context>
chip_gen: v6e
topology: v6e:2x2x1
jax: 0.10.0
libtpu: 0.0.40
codegen_flags: <defaults>
</compile_context>

<pallas_src>
import functools
import math

import jax
import jax.numpy as jnp
from jax.experimental import pallas as pl
from jax.experimental.pallas import tpu as pltpu

K = 5                                       # conv kernel size (all layers)
PAD = 2                                     # "same" padding
CHANNELS = [1, 64, 128, 256, 256, 128, 64, 1]   # cf_cnn channel progression
CMAX = max(CHANNELS)
FRONT = 8                                   # sublane-aligned interior start (>= PAD)

STEP_SIZE = 0.1
ORDER = 2
N_DIM = 1
N_IV = 1


def _elu(x):
    # torch.nn.ELU(alpha=1): x if x > 0 else exp(x) - 1.  The clamp keeps the
    # untaken branch finite for large positives.
    # TODO(synk): switch to jnp.expm1 (better precision near 0) once confirmed
    #             in the Mosaic elementwise lowering set.
    return jnp.where(x > 0, x, jnp.exp(jnp.minimum(x, 0.0)) - 1.0)


def _rows_for(L):
    """Buffer rows = 8-row front halo + interior + back halo (>= PAD), rounded to 8."""
    return FRONT + ((L + PAD + 7) // 8) * 8


def _const_index_map(ndim):
    return lambda b: (0,) * ndim


def _pick_rows_per_step(B, L, target_m=256):
    """Largest divisor Bb of B with Bb*L <= target_m, preferring >= 2 grid steps
    (so both v7x TensorCores get batch chunks under 'parallel' semantics)."""
    divisors = [d for d in range(1, B + 1) if B % d == 0]
    fits = [d for d in divisors if d * L <= target_m] or [1]
    multi = [d for d in fits if B // d >= 2]
    return max(multi) if multi else max(fits)


# ---------------------------------------------------------------------------
# Fused 7-layer Conv1d(+ELU) stack, Bb batch rows per grid step
# ---------------------------------------------------------------------------
def _fused_cnn_kernel(*refs, Bb, L, channels):
    """refs = (x_ref, w0, b0, ..., w6, b6, o_ref, buf0, buf1)

      x_ref : (Bb, 1, L) f32        lane-dense input rows
      w_i   : (K, Cout)      f32    if Cin  == 1   (VPU rank-1 path)
              (K, Cin)       f32    if Cout == 1   (VPU reduction path)
              (K, Cin, Cout) bf16   otherwise      (MXU shifted-matmul path)
      b_i   : (1, Cout) f32
      o_ref : (Bb, 1, L) f32        lane-dense output rows
      buf0/buf1 : (Bb, ROWS, CMAX) bf16 VMEM ping-pong activation buffers,
                  interior at sublane-aligned rows [FRONT, FRONT+L).
    """
    n_layers = len(channels) - 1
    x_ref = refs[0]
    w_refs = [refs[1 + 2 * i] for i in range(n_layers)]
    b_refs = [refs[2 + 2 * i] for i in range(n_layers)]
    o_ref = refs[1 + 2 * n_layers]
    buf0 = refs[2 + 2 * n_layers]
    buf1 = refs[3 + 2 * n_layers]

    rows = buf0.shape[1]
    base = FRONT - PAD                       # first conv-window row

    # Zero ONLY the halo rows (interiors are always overwritten before reads;
    # columns past the current layer's cin are never read).
    for buf in (buf0, buf1):
        buf[:, :FRONT, :] = jnp.zeros((Bb, FRONT, CMAX), buf.dtype)
        buf[:, FRONT + L:, :] = jnp.zeros((Bb, rows - FRONT - L, CMAX), buf.dtype)

    # Lane-major (Bb, 1, L) input -> one small relayout into channel 0 of the
    # sublane-major interior of buf0 ("same" padding comes from the zero halo).
    buf0[:, FRONT:FRONT + L, 0:1] = jnp.reshape(x_ref[...], (Bb, L, 1)).astype(buf0.dtype)

    src, dst = buf0, buf1
    for i in range(n_layers):                # statically unrolled (7 layers)
        cin, cout = channels[i], channels[i + 1]
        w_ref, b_ref = w_refs[i], b_refs[i]
        last = i == n_layers - 1

        if cin == 1:
            # Rank-1 first layer: VPU broadcast multiply-adds (an MXU matmul
            # here would be lane-sparse).  Math in f32, store bf16.
            xs = src[:, :, 0:1].astype(jnp.float32)              # (Bb, rows, 1)
            acc = jnp.zeros((Bb, L, cout), jnp.float32)
            for k in range(K):
                acc = acc + xs[:, base + k:base + k + L, :] * w_ref[k:k + 1, :]
            acc = acc + b_ref[...]
            dst[:, FRONT:FRONT + L, :cout] = _elu(acc).astype(dst.dtype)
        elif cout == 1:
            # Channel-reduction last layer (no ELU): VPU multiplies + one XLU
            # lane reduce, then a tiny relayout so the store is lane-dense.
            xs = src[:, :, :cin].astype(jnp.float32)              # (Bb, rows, cin)
            acc_c = jnp.zeros((Bb, L, cin), jnp.float32)
            for k in range(K):
                acc_c = acc_c + xs[:, base + k:base + k + L, :] * w_ref[k:k + 1, :]
            acc = jnp.sum(acc_c, axis=-1, keepdims=True) + b_ref[...]   # (Bb, L, 1)
            o_ref[...] = jnp.reshape(acc, (Bb, 1, L)).astype(o_ref.dtype)
        else:
            # Wide layers on the MXU: K shifted (Bb*L, cin) x (cin, cout) bf16
            # matmuls with an f32 accumulator — no materialized im2col concat.
            acc = jnp.zeros((Bb * L, cout), jnp.float32)
            for k in range(K):
                lhs = src[:, base + k:base + k + L, :cin]         # (Bb, L, cin) bf16
                acc = acc + jnp.dot(lhs.reshape(Bb * L, cin), w_ref[k],
                                    preferred_element_type=jnp.float32)
            acc = acc + b_ref[...]
            act = _elu(acc).reshape(Bb, L, cout)
            dst[:, FRONT:FRONT + L, :cout] = act.astype(dst.dtype)

        if not last:
            src, dst = dst, src


def fused_cf_cnn(x, packed_conv):
    """x: (B, 1, L) f32, packed_conv: list of (w, b) in kernel layout -> (B, 1, L) f32."""
    B, one, L = x.shape
    assert one == 1
    n_layers = len(CHANNELS) - 1
    assert len(packed_conv) == n_layers

    Bb = _pick_rows_per_step(B, L)           # batch rows folded into the matmul M dim
    rows = _rows_for(L)

    inputs = [x.astype(jnp.float32)]
    in_specs = [pl.BlockSpec((Bb, 1, L), lambda b: (b, 0, 0))]
    for w, bias in packed_conv:
        inputs += [w, bias]
        # Constant index maps: weights/biases are DMA'd once and stay resident.
        in_specs += [pl.BlockSpec(w.shape, _const_index_map(w.ndim)),
                     pl.BlockSpec(bias.shape, _const_index_map(bias.ndim))]

    kern = functools.partial(_fused_cnn_kernel, Bb=Bb, L=L, channels=CHANNELS)
    return pl.pallas_call(
        kern,
        out_shape=jax.ShapeDtypeStruct((B, 1, L), jnp.float32),
        grid_spec=pltpu.PrefetchScalarGridSpec(
            num_scalar_prefetch=0,
            grid=(B // Bb,),
            in_specs=in_specs,
            out_specs=pl.BlockSpec((Bb, 1, L), lambda b: (b, 0, 0)),
            scratch_shapes=[
                pltpu.VMEM((Bb, rows, CMAX), jnp.bfloat16),   # ping
                pltpu.VMEM((Bb, rows, CMAX), jnp.bfloat16),   # pong
            ]),
        compiler_params=pltpu.CompilerParams(
            dimension_semantics=("parallel",),      # batch chunks across TCs
            vmem_limit_bytes=48 * 1024 * 1024,      # explicit limit, v7x-safe headroom
        ),
    )(*inputs)


# ---------------------------------------------------------------------------
# Parameters: PyTorch-native layout, packed once (outside jit) for the kernel
# ---------------------------------------------------------------------------
def init_params(key, n_step):
    params = {"conv": []}
    for i in range(len(CHANNELS) - 1):
        cin, cout = CHANNELS[i], CHANNELS[i + 1]
        key, kw, kb = jax.random.split(key, 3)
        scale = (cin * K) ** -0.5
        # PyTorch Conv1d layout: (Cout, Cin, K)
        w = jax.random.uniform(kw, (cout, cin, K), jnp.float32, -scale, scale)
        b = jax.random.uniform(kb, (cout,), jnp.float32, -scale, scale)
        params["conv"].append((w, b))
    key, kc, kp = jax.random.split(key, 3)
    params["coeffs"] = jax.random.normal(kc, (ORDER + 1,), jnp.float32)
    params["param_in"] = jax.random.normal(kp, (1, 64), jnp.float32)  # unused in forward
    params["iv_rhs"] = jnp.zeros((N_DIM, N_IV), jnp.float32)
    # steps parameter is logit(step_size); forward applies sigmoid.
    params["steps_logit"] = jnp.full(
        (1, n_step - 1, N_DIM),
        math.log(STEP_SIZE / (1.0 - STEP_SIZE)), jnp.float32)
    return params


def pack_conv_params(conv_params):
    """Convert PyTorch (Cout, Cin, K) conv weights to the fused-kernel layouts."""
    packed = []
    for w, b in conv_params:
        cout, cin, k = w.shape
        assert k == K
        w_kco = jnp.transpose(w, (2, 1, 0))                    # (K, Cin, Cout)
        if cin == 1:
            pw = w_kco.reshape(k, cout).astype(jnp.float32)    # VPU rank-1 path
        elif cout == 1:
            pw = w_kco.reshape(k, cin).astype(jnp.float32)     # VPU reduction path
        else:
            pw = w_kco.astype(jnp.bfloat16)                    # MXU path (K, Cin, Cout)
        packed.append((pw, b.reshape(1, cout).astype(jnp.float32)))
    return packed


# ---------------------------------------------------------------------------
# Forward pass (matches ComplexModel.forward outputs)
# ---------------------------------------------------------------------------
@jax.jit
def forward(params, y):
    bs = y.shape[0]
    x = y.reshape(bs, 1, -1)                              # torch: y.view(bs, 1, -1)
    n_step = x.shape[2]
    rhs = fused_cf_cnn(x, params["conv"])                 # (bs, 1, n_step) == (bs, n_dim, n_step)

    coeffs = jnp.broadcast_to(params["coeffs"][None, None, None, :],
                              (bs, N_DIM, n_step, ORDER + 1))
    iv_rhs = jnp.broadcast_to(params["iv_rhs"][None], (bs, N_DIM, N_IV))
    steps = jnp.broadcast_to(jax.nn.sigmoid(params["steps_logit"]),
                             (bs,) + params["steps_logit"].shape[1:])
    return rhs, coeffs, iv_rhs, steps


if __name__ == "__main__":
    # global_len in the reference module is set externally; use a small value.
    global_len = 16
    end = global_len * STEP_SIZE
    # Matches the module's arithmetic (note: float truncation can be off by one
    # for some global_len values; kept as-is to preserve reference semantics).
    n_step = int(end / STEP_SIZE)                         # = 16
    bs = 4                                                # small demo batch; Bb=2 rows/step

    key = jax.random.PRNGKey(0)
    key, ky = jax.random.split(key)
    y = jax.random.normal(ky, (bs, n_step), jnp.float32)  # input signal

    raw_params = init_params(key, n_step)
    params = {
        "conv": pack_conv_params(raw_params["conv"]),     # packed once, outside jit
        "coeffs": raw_params["coeffs"],
        "iv_rhs": raw_params["iv_rhs"],
        "steps_logit": raw_params["steps_logit"],
    }

    rhs, coeffs, iv_rhs, steps = forward(params, y)
    jax.block_until_ready((rhs, coeffs, iv_rhs, steps))

    assert rhs.shape == (bs, N_DIM, n_step)
    assert coeffs.shape == (bs, N_DIM, n_step, ORDER + 1)
    assert iv_rhs.shape == (bs, N_DIM, N_IV)
    assert steps.shape == (bs, n_step - 1, N_DIM)
    assert bool(jnp.all(jnp.isfinite(rhs)))
    print("KERNEL_OK")
</pallas_src>

<mosaic_0001>
module attributes {stable_mosaic.version = 11 : i64} {
  func.func @_fused_cnn_kernel(%arg0: i32, %arg1: memref<2x1x16xf32, #tpu.memory_space<vmem>>, %arg2: memref<5x64xf32, #tpu.memory_space<vmem>>, %arg3: memref<1x64xf32, #tpu.memory_space<vmem>>, %arg4: memref<5x64x128xbf16, #tpu.memory_space<vmem>>, %arg5: memref<1x128xf32, #tpu.memory_space<vmem>>, %arg6: memref<5x128x256xbf16, #tpu.memory_space<vmem>>, %arg7: memref<1x256xf32, #tpu.memory_space<vmem>>, %arg8: memref<5x256x256xbf16, #tpu.memory_space<vmem>>, %arg9: memref<1x256xf32, #tpu.memory_space<vmem>>, %arg10: memref<5x256x128xbf16, #tpu.memory_space<vmem>>, %arg11: memref<1x128xf32, #tpu.memory_space<vmem>>, %arg12: memref<5x128x64xbf16, #tpu.memory_space<vmem>>, %arg13: memref<1x64xf32, #tpu.memory_space<vmem>>, %arg14: memref<5x64xf32, #tpu.memory_space<vmem>>, %arg15: memref<1x1xf32, #tpu.memory_space<vmem>>, %arg16: memref<2x1x16xf32, #tpu.memory_space<vmem>>, %arg17: memref<2x32x256xbf16, #tpu.memory_space<vmem>>, %arg18: memref<2x32x256xbf16, #tpu.memory_space<vmem>>) attributes {dimension_semantics = [#tpu.dimension_semantics<parallel>], iteration_bounds = array<i64: 2>, scalar_prefetch = 0 : i64, scratch_operands = 2 : i64, tpu.core_type = #tpu.core_type<tc>, window_params = [{transform_indices = @transform_0, window_bounds = array<i64: 2, 1, 16>}, {pipeline_mode = #tpu.pipeline_mode<synchronous>, transform_indices = @transform_1, window_bounds = array<i64: 5, 64>}, {pipeline_mode = #tpu.pipeline_mode<synchronous>, transform_indices = @transform_2, window_bounds = array<i64: 1, 64>}, {pipeline_mode = #tpu.pipeline_mode<synchronous>, transform_indices = @transform_3, window_bounds = array<i64: 5, 64, 128>}, {pipeline_mode = #tpu.pipeline_mode<synchronous>, transform_indices = @transform_4, window_bounds = array<i64: 1, 128>}, {pipeline_mode = #tpu.pipeline_mode<synchronous>, transform_indices = @transform_5, window_bounds = array<i64: 5, 128, 256>}, {pipeline_mode = #tpu.pipeline_mode<synchronous>, transform_indices = @transform_6, window_bounds = array<i64: 1, 256>}, {pipeline_mode = #tpu.pipeline_mode<synchronous>, transform_indices = @transform_7, window_bounds = array<i64: 5, 256, 256>}, {pipeline_mode = #tpu.pipeline_mode<synchronous>, transform_indices = @transform_8, window_bounds = array<i64: 1, 256>}, {pipeline_mode = #tpu.pipeline_mode<synchronous>, transform_indices = @transform_9, window_bounds = array<i64: 5, 256, 128>}, {pipeline_mode = #tpu.pipeline_mode<synchronous>, transform_indices = @transform_10, window_bounds = array<i64: 1, 128>}, {pipeline_mode = #tpu.pipeline_mode<synchronous>, transform_indices = @transform_11, window_bounds = array<i64: 5, 128, 64>}, {pipeline_mode = #tpu.pipeline_mode<synchronous>, transform_indices = @transform_12, window_bounds = array<i64: 1, 64>}, {pipeline_mode = #tpu.pipeline_mode<synchronous>, transform_indices = @transform_13, window_bounds = array<i64: 5, 64>}, {pipeline_mode = #tpu.pipeline_mode<synchronous>, transform_indices = @transform_14, window_bounds = array<i64: 1, 1>}, {transform_indices = @transform_15, window_bounds = array<i64: 2, 1, 16>}]} {
    %cst = arith.constant 0.000000e+00 : bf16
    %0 = vector.broadcast %cst : bf16 to vector<2x8x256xbf16>
    %c0 = arith.constant 0 : index
    %c0_0 = arith.constant 0 : index
    %c0_1 = arith.constant 0 : index
    %1 = vector.load %arg17[%c0, %c0_0, %c0_1] : memref<2x32x256xbf16, #tpu.memory_space<vmem>>, vector<2x8x256xbf16>
    tpu.vector_store %arg17[%c0, %c0_0, %c0_1], %0 {strides = array<i32>} : memref<2x32x256xbf16, #tpu.memory_space<vmem>>, vector<2x8x256xbf16>,
    %cst_2 = arith.constant 0.000000e+00 : bf16
    %2 = vector.broadcast %cst_2 : bf16 to vector<2x8x256xbf16>
    %c0_3 = arith.constant 0 : index
    %c24 = arith.constant 24 : index
    %c0_4 = arith.constant 0 : index
    %3 = vector.load %arg17[%c0_3, %c24, %c0_4] : memref<2x32x256xbf16, #tpu.memory_space<vmem>>, vector<2x8x256xbf16>
    tpu.vector_store %arg17[%c0_3, %c24, %c0_4], %2 {strides = array<i32>} : memref<2x32x256xbf16, #tpu.memory_space<vmem>>, vector<2x8x256xbf16>,
    %cst_5 = arith.constant 0.000000e+00 : bf16
    %4 = vector.broadcast %cst_5 : bf16 to vector<2x8x256xbf16>
    %c0_6 = arith.constant 0 : index
    %c0_7 = arith.constant 0 : index
    %c0_8 = arith.constant 0 : index
    %5 = vector.load %arg18[%c0_6, %c0_7, %c0_8] : memref<2x32x256xbf16, #tpu.memory_space<vmem>>, vector<2x8x256xbf16>
    tpu.vector_store %arg18[%c0_6, %c0_7, %c0_8], %4 {strides = array<i32>} : memref<2x32x256xbf16, #tpu.memory_space<vmem>>, vector<2x8x256xbf16>,
    %cst_9 = arith.constant 0.000000e+00 : bf16
    %6 = vector.broadcast %cst_9 : bf16 to vector<2x8x256xbf16>
    %c0_10 = arith.constant 0 : index
    %c24_11 = arith.constant 24 : index
    %c0_12 = arith.constant 0 : index
    %7 = vector.load %arg18[%c0_10, %c24_11, %c0_12] : memref<2x32x256xbf16, #tpu.memory_space<vmem>>, vector<2x8x256xbf16>
    tpu.vector_store %arg18[%c0_10, %c24_11, %c0_12], %6 {strides = array<i32>} : memref<2x32x256xbf16, #tpu.memory_space<vmem>>, vector<2x8x256xbf16>,
    %c0_13 = arith.constant 0 : index
    %c0_14 = arith.constant 0 : index
    %c0_15 = arith.constant 0 : index
    %8 = vector.load %arg1[%c0_13, %c0_14, %c0_15] : memref<2x1x16xf32, #tpu.memory_space<vmem>>, vector<2x1x16xf32>
    %9 = vector.shape_cast %8 : vector<2x1x16xf32> to vector<2x16x1xf32>
    %10 = arith.truncf %9 : vector<2x16x1xf32> to vector<2x16x1xbf16>
    %c0_16 = arith.constant 0 : index
    %c8 = arith.constant 8 : index
    %c0_17 = arith.constant 0 : index
    %11 = vector.load %arg17[%c0_16, %c8, %c0_17] : memref<2x32x256xbf16, #tpu.memory_space<vmem>>, vector<2x16x1xbf16>
    tpu.vector_store %arg17[%c0_16, %c8, %c0_17], %10 {strides = array<i32>} : memref<2x32x256xbf16, #tpu.memory_space<vmem>>, vector<2x16x1xbf16>,
    %c0_18 = arith.constant 0 : index
    %c0_19 = arith.constant 0 : index
    %c0_20 = arith.constant 0 : index
    %12 = vector.load %arg17[%c0_18, %c0_19, %c0_20] : memref<2x32x256xbf16, #tpu.memory_space<vmem>>, vector<2x32x1xbf16>
    %13 = arith.extf %12 : vector<2x32x1xbf16> to vector<2x32x1xf32>
    %cst_21 = arith.constant 0.000000e+00 : f32
    %14 = vector.broadcast %cst_21 : f32 to vector<2x16x64xf32>
    %15 = vector.extract_strided_slice %13 {offsets = [0, 6, 0], sizes = [2, 16, 1], strides = [1, 1, 1]} : vector<2x32x1xf32> to vector<2x16x1xf32>
    %c0_22 = arith.constant 0 : index
    %c0_23 = arith.constant 0 : index
    %16 = vector.load %arg2[%c0_22, %c0_23] : memref<5x64xf32, #tpu.memory_space<vmem>>, vector<1x64xf32>
    %17 = vector.shape_cast %16 : vector<1x64xf32> to vector<1x1x64xf32>
    %18 = vector.broadcast %15 : vector<2x16x1xf32> to vector<2x16x64xf32>
    %19 = vector.broadcast %17 : vector<1x1x64xf32> to vector<2x16x64xf32>
    %20 = arith.mulf %18, %19 : vector<2x16x64xf32>
    %21 = arith.addf %14, %20 : vector<2x16x64xf32>
    %22 = vector.extract_strided_slice %13 {offsets = [0, 7, 0], sizes = [2, 16, 1], strides = [1, 1, 1]} : vector<2x32x1xf32> to vector<2x16x1xf32>
    %c1 = arith.constant 1 : index
    %c0_24 = arith.constant 0 : index
    %23 = vector.load %arg2[%c1, %c0_24] : memref<5x64xf32, #tpu.memory_space<vmem>>, vector<1x64xf32>
    %24 = vector.shape_cast %23 : vector<1x64xf32> to vector<1x1x64xf32>
    %25 = vector.broadcast %22 : vector<2x16x1xf32> to vector<2x16x64xf32>
    %26 = vector.broadcast %24 : vector<1x1x64xf32> to vector<2x16x64xf32>
    %27 = arith.mulf %25, %26 : vector<2x16x64xf32>
    %28 = arith.addf %21, %27 : vector<2x16x64xf32>
    %29 = vector.extract_strided_slice %13 {offsets = [0, 8, 0], sizes = [2, 16, 1], strides = [1, 1, 1]} : vector<2x32x1xf32> to vector<2x16x1xf32>
    %c2 = arith.constant 2 : index
    %c0_25 = arith.constant 0 : index
    %30 = vector.load %arg2[%c2, %c0_25] : memref<5x64xf32, #tpu.memory_space<vmem>>, vector<1x64xf32>
    %31 = vector.shape_cast %30 : vector<1x64xf32> to vector<1x1x64xf32>
    %32 = vector.broadcast %29 : vector<2x16x1xf32> to vector<2x16x64xf32>
    %33 = vector.broadcast %31 : vector<1x1x64xf32> to vector<2x16x64xf32>
    %34 = arith.mulf %32, %33 : vector<2x16x64xf32>
    %35 = arith.addf %28, %34 : vector<2x16x64xf32>
    %36 = vector.extract_strided_slice %13 {offsets = [0, 9, 0], sizes = [2, 16, 1], strides = [1, 1, 1]} : vector<2x32x1xf32> to vector<2x16x1xf32>
    %c3 = arith.constant 3 : index
    %c0_26 = arith.constant 0 : index
    %37 = vector.load %arg2[%c3, %c0_26] : memref<5x64xf32, #tpu.memory_space<vmem>>, vector<1x64xf32>
    %38 = vector.shape_cast %37 : vector<1x64xf32> to vector<1x1x64xf32>
    %39 = vector.broadcast %36 : vector<2x16x1xf32> to vector<2x16x64xf32>
    %40 = vector.broadcast %38 : vector<1x1x64xf32> to vector<2x16x64xf32>
    %41 = arith.mulf %39, %40 : vector<2x16x64xf32>
    %42 = arith.addf %35, %41 : vector<2x16x64xf32>
    %43 = vector.extract_strided_slice %13 {offsets = [0, 10, 0], sizes = [2, 16, 1], strides = [1, 1, 1]} : vector<2x32x1xf32> to vector<2x16x1xf32>
    %c4 = arith.constant 4 : index
    %c0_27 = arith.constant 0 : index
    %44 = vector.load %arg2[%c4, %c0_27] : memref<5x64xf32, #tpu.memory_space<vmem>>, vector<1x64xf32>
    %45 = vector.shape_cast %44 : vector<1x64xf32> to vector<1x1x64xf32>
    %46 = vector.broadcast %43 : vector<2x16x1xf32> to vector<2x16x64xf32>
    %47 = vector.broadcast %45 : vector<1x1x64xf32> to vector<2x16x64xf32>
    %48 = arith.mulf %46, %47 : vector<2x16x64xf32>
    %49 = arith.addf %42, %48 : vector<2x16x64xf32>
    %c0_28 = arith.constant 0 : index
    %c0_29 = arith.constant 0 : index
    %50 = vector.load %arg3[%c0_28, %c0_29] : memref<1x64xf32, #tpu.memory_space<vmem>>, vector<1x64xf32>
    %51 = vector.shape_cast %50 : vector<1x64xf32> to vector<1x1x64xf32>
    %52 = vector.broadcast %51 : vector<1x1x64xf32> to vector<2x16x64xf32>
    %53 = arith.addf %49, %52 : vector<2x16x64xf32>
    %cst_30 = arith.constant 0.000000e+00 : f32
    %54 = vector.broadcast %cst_30 : f32 to vector<2x16x64xf32>
    %55 = arith.cmpf ogt, %53, %54 : vector<2x16x64xf32>
    %cst_31 = arith.constant 0.000000e+00 : f32
    %56 = vector.broadcast %cst_31 : f32 to vector<2x16x64xf32>
    %57 = arith.minimumf %53, %56 : vector<2x16x64xf32>
    %58 = math.exp %57 : vector<2x16x64xf32>
    %cst_32 = arith.constant 1.000000e+00 : f32
    %59 = vector.broadcast %cst_32 : f32 to vector<2x16x64xf32>
    %60 = arith.subf %58, %59 : vector<2x16x64xf32>
    %61 = arith.select %55, %53, %60 : vector<2x16x64xi1>, vector<2x16x64xf32>
    %62 = arith.truncf %61 : vector<2x16x64xf32> to vector<2x16x64xbf16>
    %c0_33 = arith.constant 0 : index
    %c8_34 = arith.constant 8 : index
    %c0_35 = arith.constant 0 : index
    %63 = vector.load %arg18[%c0_33, %c8_34, %c0_35] : memref<2x32x256xbf16, #tpu.memory_space<vmem>>, vector<2x16x64xbf16>
    tpu.vector_store %arg18[%c0_33, %c8_34, %c0_35], %62 {strides = array<i32>} : memref<2x32x256xbf16, #tpu.memory_space<vmem>>, vector<2x16x64xbf16>,
    %cst_36 = arith.constant 0.000000e+00 : f32
    %64 = vector.broadcast %cst_36 : f32 to vector<32x128xf32>
    %c0_37 = arith.constant 0 : index
    %c6 = arith.constant 6 : index
    %c0_38 = arith.constant 0 : index
    %65 = vector.load %arg18[%c0_37, %c6, %c0_38] : memref<2x32x256xbf16, #tpu.memory_space<vmem>>, vector<2x16x64xbf16>
    %66 = vector.shape_cast %65 : vector<2x16x64xbf16> to vector<32x64xbf16>
    %c0_39 = arith.constant 0 : index
    %c0_40 = arith.constant 0 : index
    %c0_41 = arith.constant 0 : index
    %67 = vector.load %arg4[%c0_39, %c0_40, %c0_41] : memref<5x64x128xbf16, #tpu.memory_space<vmem>>, vector<1x64x128xbf16>
    %68 = vector.shape_cast %67 : vector<1x64x128xbf16> to vector<64x128xbf16>
    %cst_42 = arith.constant dense<0.000000e+00> : vector<32x128xf32>
    %69 = tpu.matmul %66, %68, %cst_42 {dimension_numbers = #tpu.dot_dimension_numbers<[1], [0], [0], [1], [0, 0, 1, 1], [], []>} : vector<32x64xbf16>, vector<64x128xbf16>, vector<32x128xf32> -> vector<32x128xf32>
    %70 = arith.addf %64, %69 : vector<32x128xf32>
    %c0_43 = arith.constant 0 : index
    %c7 = arith.constant 7 : index
    %c0_44 = arith.constant 0 : index
    %71 = vector.load %arg18[%c0_43, %c7, %c0_44] : memref<2x32x256xbf16, #tpu.memory_space<vmem>>, vector<2x16x64xbf16>
    %72 = vector.shape_cast %71 : vector<2x16x64xbf16> to vector<32x64xbf16>
    %c1_45 = arith.constant 1 : index
    %c0_46 = arith.constant 0 : index
    %c0_47 = arith.constant 0 : index
    %73 = vector.load %arg4[%c1_45, %c0_46, %c0_47] : memref<5x64x128xbf16, #tpu.memory_space<vmem>>, vector<1x64x128xbf16>
    %74 = vector.shape_cast %73 : vector<1x64x128xbf16> to vector<64x128xbf16>
    %cst_48 = arith.constant dense<0.000000e+00> : vector<32x128xf32>
    %75 = tpu.matmul %72, %74, %cst_48 {dimension_numbers = #tpu.dot_dimension_numbers<[1], [0], [0], [1], [0, 0, 1, 1], [], []>} : vector<32x64xbf16>, vector<64x128xbf16>, vector<32x128xf32> -> vector<32x128xf32>
    %76 = arith.addf %70, %75 : vector<32x128xf32>
    %c0_49 = arith.constant 0 : index
    %c8_50 = arith.constant 8 : index
    %c0_51 = arith.constant 0 : index
    %77 = vector.load %arg18[%c0_49, %c8_50, %c0_51] : memref<2x32x256xbf16, #tpu.memory_space<vmem>>, vector<2x16x64xbf16>
    %78 = vector.shape_cast %77 : vector<2x16x64xbf16> to vector<32x64xbf16>
    %c2_52 = arith.constant 2 : index
    %c0_53 = arith.constant 0 : index
    %c0_54 = arith.constant 0 : index
    %79 = vector.load %arg4[%c2_52, %c0_53, %c0_54] : memref<5x64x128xbf16, #tpu.memory_space<vmem>>, vector<1x64x128xbf16>
    %80 = vector.shape_cast %79 : vector<1x64x128xbf16> to vector<64x128xbf16>
    %cst_55 = arith.constant dense<0.000000e+00> : vector<32x128xf32>
    %81 = tpu.matmul %78, %80, %cst_55 {dimension_numbers = #tpu.dot_dimension_numbers<[1], [0], [0], [1], [0, 0, 1, 1], [], []>} : vector<32x64xbf16>, vector<64x128xbf16>, vector<32x128xf32> -> vector<32x128xf32>
    %82 = arith.addf %76, %81 : vector<32x128xf32>
    %c0_56 = arith.constant 0 : index
    %c9 = arith.constant 9 : index
    %c0_57 = arith.constant 0 : index
    %83 = vector.load %arg18[%c0_56, %c9, %c0_57] : memref<2x32x256xbf16, #tpu.memory_space<vmem>>, vector<2x16x64xbf16>
    %84 = vector.shape_cast %83 : vector<2x16x64xbf16> to vector<32x64xbf16>
    %c3_58 = arith.constant 3 : index
    %c0_59 = arith.constant 0 : index
    %c0_60 = arith.constant 0 : index
    %85 = vector.load %arg4[%c3_58, %c0_59, %c0_60] : memref<5x64x128xbf16, #tpu.memory_space<vmem>>, vector<1x64x128xbf16>
    %86 = vector.shape_cast %85 : vector<1x64x128xbf16> to vector<64x128xbf16>
    %cst_61 = arith.constant dense<0.000000e+00> : vector<32x128xf32>
    %87 = tpu.matmul %84, %86, %cst_61 {dimension_numbers = #tpu.dot_dimension_numbers<[1], [0], [0], [1], [0, 0, 1, 1], [], []>} : vector<32x64xbf16>, vector<64x128xbf16>, vector<32x128xf32> -> vector<32x128xf32>
    %88 = arith.addf %82, %87 : vector<32x128xf32>
    %c0_62 = arith.constant 0 : index
    %c10 = arith.constant 10 : index
    %c0_63 = arith.constant 0 : index
    %89 = vector.load %arg18[%c0_62, %c10, %c0_63] : memref<2x32x256xbf16, #tpu.memory_space<vmem>>, vector<2x16x64xbf16>
    %90 = vector.shape_cast %89 : vector<2x16x64xbf16> to vector<32x64xbf16>
    %c4_64 = arith.constant 4 : index
    %c0_65 = arith.constant 0 : index
    %c0_66 = arith.constant 0 : index
    %91 = vector.load %arg4[%c4_64, %c0_65, %c0_66] : memref<5x64x128xbf16, #tpu.memory_space<vmem>>, vector<1x64x128xbf16>
    %92 = vector.shape_cast %91 : vector<1x64x128xbf16> to vector<64x128xbf16>
    %cst_67 = arith.constant dense<0.000000e+00> : vector<32x128xf32>
    %93 = tpu.matmul %90, %92, %cst_67 {dimension_numbers = #tpu.dot_dimension_numbers<[1], [0], [0], [1], [0, 0, 1, 1], [], []>} : vector<32x64xbf16>, vector<64x128xbf16>, vector<32x128xf32> -> vector<32x128xf32>
    %94 = arith.addf %88, %93 : vector<32x128xf32>
    %c0_68 = arith.constant 0 : index
    %c0_69 = arith.constant 0 : index
    %95 = vector.load %arg5[%c0_68, %c0_69] : memref<1x128xf32, #tpu.memory_space<vmem>>, vector<1x128xf32>
    %96 = vector.broadcast %95 : vector<1x128xf32> to vector<32x128xf32>
    %97 = arith.addf %94, %96 : vector<32x128xf32>
    %cst_70 = arith.constant 0.000000e+00 : f32
    %98 = vector.broadcast %cst_70 : f32 to vector<32x128xf32>
    %99 = arith.cmpf ogt, %97, %98 : vector<32x128xf32>
    %cst_71 = arith.constant 0.000000e+00 : f32
    %100 = vector.broadcast %cst_71 : f32 to vector<32x128xf32>
    %101 = arith.minimumf %97, %100 : vector<32x128xf32>
    %102 = math.exp %101 : vector<32x128xf32>
    %cst_72 = arith.constant 1.000000e+00 : f32
    %103 = vector.broadcast %cst_72 : f32 to vector<32x128xf32>
    %104 = arith.subf %102, %103 : vector<32x128xf32>
    %105 = arith.select %99, %97, %104 : vector<32x128xi1>, vector<32x128xf32>
    %106 = vector.shape_cast %105 : vector<32x128xf32> to vector<2x16x128xf32>
    %107 = arith.truncf %106 : vector<2x16x128xf32> to vector<2x16x128xbf16>
    %c0_73 = arith.constant 0 : index
    %c8_74 = arith.constant 8 : index
    %c0_75 = arith.constant 0 : index
    %108 = vector.load %arg17[%c0_73, %c8_74, %c0_75] : memref<2x32x256xbf16, #tpu.memory_space<vmem>>, vector<2x16x128xbf16>
    tpu.vector_store %arg17[%c0_73, %c8_74, %c0_75], %107 {strides = array<i32>} : memref<2x32x256xbf16, #tpu.memory_space<vmem>>, vector<2x16x128xbf16>,
    %cst_76 = arith.constant 0.000000e+00 : f32
    %109 = vector.broadcast %cst_76 : f32 to vector<32x256xf32>
    %c0_77 = arith.constant 0 : index
    %c6_78 = arith.constant 6 : index
    %c0_79 = arith.constant 0 : index
    %110 = vector.load %arg17[%c0_77, %c6_78, %c0_79] : memref<2x32x256xbf16, #tpu.memory_space<vmem>>, vector<2x16x128xbf16>
    %111 = vector.shape_cast %110 : vector<2x16x128xbf16> to vector<32x128xbf16>
    %c0_80 = arith.constant 0 : index
    %c0_81 = arith.constant 0 : index
    %c0_82 = arith.constant 0 : index
    %112 = vector.load %arg6[%c0_80, %c0_81, %c0_82] : memref<5x128x256xbf16, #tpu.memory_space<vmem>>, vector<1x128x256xbf16>
    %113 = vector.shape_cast %112 : vector<1x128x256xbf16> to vector<128x256xbf16>
    %cst_83 = arith.constant dense<0.000000e+00> : vector<32x256xf32>
    %114 = tpu.matmul %111, %113, %cst_83 {dimension_numbers = #tpu.dot_dimension_numbers<[1], [0], [0], [1], [0, 0, 1, 1], [], []>} : vector<32x128xbf16>, vector<128x256xbf16>, vector<32x256xf32> -> vector<32x256xf32>
    %115 = arith.addf %109, %114 : vector<32x256xf32>
    %c0_84 = arith.constant 0 : index
    %c7_85 = arith.constant 7 : index
    %c0_86 = arith.constant 0 : index
    %116 = vector.load %arg17[%c0_84, %c7_85, %c0_86] : memref<2x32x256xbf16, #tpu.memory_space<vmem>>, vector<2x16x128xbf16>
    %117 = vector.shape_cast %116 : vector<2x16x128xbf16> to vector<32x128xbf16>
    %c1_87 = arith.constant 1 : index
    %c0_88 = arith.constant 0 : index
    %c0_89 = arith.constant 0 : index
    %118 = vector.load %arg6[%c1_87, %c0_88, %c0_89] : memref<5x128x256xbf16, #tpu.memory_space<vmem>>, vector<1x128x256xbf16>
    %119 = vector.shape_cast %118 : vector<1x128x256xbf16> to vector<128x256xbf16>
    %cst_90 = arith.constant dense<0.000000e+00> : vector<32x256xf32>
    %120 = tpu.matmul %117, %119, %cst_90 {dimension_numbers = #tpu.dot_dimension_numbers<[1], [0], [0], [1], [0, 0, 1, 1], [], []>} : vector<32x128xbf16>, vector<128x256xbf16>, vector<32x256xf32> -> vector<32x256xf32>
    %121 = arith.addf %115, %120 : vector<32x256xf32>
    %c0_91 = arith.constant 0 : index
    %c8_92 = arith.constant 8 : index
    %c0_93 = arith.constant 0 : index
    %122 = vector.load %arg17[%c0_91, %c8_92, %c0_93] : memref<2x32x256xbf16, #tpu.memory_space<vmem>>, vector<2x16x128xbf16>
    %123 = vector.shape_cast %122 : vector<2x16x128xbf16> to vector<32x128xbf16>
    %c2_94 = arith.constant 2 : index
    %c0_95 = arith.constant 0 : index
    %c0_96 = arith.constant 0 : index
    %124 = vector.load %arg6[%c2_94, %c0_95, %c0_96] : memref<5x128x256xbf16, #tpu.memory_space<vmem>>, vector<1x128x256xbf16>
    %125 = vector.shape_cast %124 : vector<1x128x256xbf16> to vector<128x256xbf16>
    %cst_97 = arith.constant dense<0.000000e+00> : vector<32x256xf32>
    %126 = tpu.matmul %123, %125, %cst_97 {dimension_numbers = #tpu.dot_dimension_numbers<[1], [0], [0], [1], [0, 0, 1, 1], [], []>} : vector<32x128xbf16>, vector<128x256xbf16>, vector<32x256xf32> -> vector<32x256xf32>
    %127 = arith.addf %121, %126 : vector<32x256xf32>
    %c0_98 = arith.constant 0 : index
    %c9_99 = arith.constant 9 : index
    %c0_100 = arith.constant 0 : index
    %128 = vector.load %arg17[%c0_98, %c9_99, %c0_100] : memref<2x32x256xbf16, #tpu.memory_space<vmem>>, vector<2x16x128xbf16>
    %129 = vector.shape_cast %128 : vector<2x16x128xbf16> to vector<32x128xbf16>
    %c3_101 = arith.constant 3 : index
    %c0_102 = arith.constant 0 : index
    %c0_103 = arith.constant 0 : index
    %130 = vector.load %arg6[%c3_101, %c0_102, %c0_103] : memref<5x128x256xbf16, #tpu.memory_space<vmem>>, vector<1x128x256xbf16>
    %131 = vector.shape_cast %130 : vector<1x128x256xbf16> to vector<128x256xbf16>
    %cst_104 = arith.constant dense<0.000000e+00> : vector<32x256xf32>
    %132 = tpu.matmul %129, %131, %cst_104 {dimension_numbers = #tpu.dot_dimension_numbers<[1], [0], [0], [1], [0, 0, 1, 1], [], []>} : vector<32x128xbf16>, vector<128x256xbf16>, vector<32x256xf32> -> vector<32x256xf32>
    %133 = arith.addf %127, %132 : vector<32x256xf32>
    %c0_105 = arith.constant 0 : index
    %c10_106 = arith.constant 10 : index
    %c0_107 = arith.constant 0 : index
    %134 = vector.load %arg17[%c0_105, %c10_106, %c0_107] : memref<2x32x256xbf16, #tpu.memory_space<vmem>>, vector<2x16x128xbf16>
    %135 = vector.shape_cast %134 : vector<2x16x128xbf16> to vector<32x128xbf16>
    %c4_108 = arith.constant 4 : index
    %c0_109 = arith.constant 0 : index
    %c0_110 = arith.constant 0 : index
    %136 = vector.load %arg6[%c4_108, %c0_109, %c0_110] : memref<5x128x256xbf16, #tpu.memory_space<vmem>>, vector<1x128x256xbf16>
    %137 = vector.shape_cast %136 : vector<1x128x256xbf16> to vector<128x256xbf16>
    %cst_111 = arith.constant dense<0.000000e+00> : vector<32x256xf32>
    %138 = tpu.matmul %135, %137, %cst_111 {dimension_numbers = #tpu.dot_dimension_numbers<[1], [0], [0], [1], [0, 0, 1, 1], [], []>} : vector<32x128xbf16>, vector<128x256xbf16>, vector<32x256xf32> -> vector<32x256xf32>
    %139 = arith.addf %133, %138 : vector<32x256xf32>
    %c0_112 = arith.constant 0 : index
    %c0_113 = arith.constant 0 : index
    %140 = vector.load %arg7[%c0_112, %c0_113] : memref<1x256xf32, #tpu.memory_space<vmem>>, vector<1x256xf32>
    %141 = vector.broadcast %140 : vector<1x256xf32> to vector<32x256xf32>
    %142 = arith.addf %139, %141 : vector<32x256xf32>
    %cst_114 = arith.constant 0.000000e+00 : f32
    %143 = vector.broadcast %cst_114 : f32 to vector<32x256xf32>
    %144 = arith.cmpf ogt, %142, %143 : vector<32x256xf32>
    %cst_115 = arith.constant 0.000000e+00 : f32
    %145 = vector.broadcast %cst_115 : f32 to vector<32x256xf32>
    %146 = arith.minimumf %142, %145 : vector<32x256xf32>
    %147 = math.exp %146 : vector<32x256xf32>
    %cst_116 = arith.constant 1.000000e+00 : f32
    %148 = vector.broadcast %cst_116 : f32 to vector<32x256xf32>
    %149 = arith.subf %147, %148 : vector<32x256xf32>
    %150 = arith.select %144, %142, %149 : vector<32x256xi1>, vector<32x256xf32>
    %151 = vector.shape_cast %150 : vector<32x256xf32> to vector<2x16x256xf32>
    %152 = arith.truncf %151 : vector<2x16x256xf32> to vector<2x16x256xbf16>
    %c0_117 = arith.constant 0 : index
    %c8_118 = arith.constant 8 : index
    %c0_119 = arith.constant 0 : index
    %153 = vector.load %arg18[%c0_117, %c8_118, %c0_119] : memref<2x32x256xbf16, #tpu.memory_space<vmem>>, vector<2x16x256xbf16>
    tpu.vector_store %arg18[%c0_117, %c8_118, %c0_119], %152 {strides = array<i32>} : memref<2x32x256xbf16, #tpu.memory_space<vmem>>, vector<2x16x256xbf16>,
    %cst_120 = arith.constant 0.000000e+00 : f32
    %154 = vector.broadcast %cst_120 : f32 to vector<32x256xf32>
    %c0_121 = arith.constant 0 : index
    %c6_122 = arith.constant 6 : index
    %c0_123 = arith.constant 0 : index
    %155 = vector.load %arg18[%c0_121, %c6_122, %c0_123] : memref<2x32x256xbf16, #tpu.memory_space<vmem>>, vector<2x16x256xbf16>
    %156 = vector.shape_cast %155 : vector<2x16x256xbf16> to vector<32x256xbf16>
    %c0_124 = arith.constant 0 : index
    %c0_125 = arith.constant 0 : index
    %c0_126 = arith.constant 0 : index
    %157 = vector.load %arg8[%c0_124, %c0_125, %c0_126] : memref<5x256x256xbf16, #tpu.memory_space<vmem>>, vector<1x256x256xbf16>
    %158 = vector.shape_cast %157 : vector<1x256x256xbf16> to vector<256x256xbf16>
    %cst_127 = arith.constant dense<0.000000e+00> : vector<32x256xf32>
    %159 = tpu.matmul %156, %158, %cst_127 {dimension_numbers = #tpu.dot_dimension_numbers<[1], [0], [0], [1], [0, 0, 1, 1], [], []>} : vector<32x256xbf16>, vector<256x256xbf16>, vector<32x256xf32> -> vector<32x256xf32>
    %160 = arith.addf %154, %159 : vector<32x256xf32>
    %c0_128 = arith.constant 0 : index
    %c7_129 = arith.constant 7 : index
    %c0_130 = arith.constant 0 : index
    %161 = vector.load %arg18[%c0_128, %c7_129, %c0_130] : memref<2x32x256xbf16, #tpu.memory_space<vmem>>, vector<2x16x256xbf16>
    %162 = vector.shape_cast %161 : vector<2x16x256xbf16> to vector<32x256xbf16>
    %c1_131 = arith.constant 1 : index
    %c0_132 = arith.constant 0 : index
    %c0_133 = arith.constant 0 : index
    %163 = vector.load %arg8[%c1_131, %c0_132, %c0_133] : memref<5x256x256xbf16, #tpu.memory_space<vmem>>, vector<1x256x256xbf16>
    %164 = vector.shape_cast %163 : vector<1x256x256xbf16> to vector<256x256xbf16>
    %cst_134 = arith.constant dense<0.000000e+00> : vector<32x256xf32>
    %165 = tpu.matmul %162, %164, %cst_134 {dimension_numbers = #tpu.dot_dimension_numbers<[1], [0], [0], [1], [0, 0, 1, 1], [], []>} : vector<32x256xbf16>, vector<256x256xbf16>, vector<32x256xf32> -> vector<32x256xf32>
    %166 = arith.addf %160, %165 : vector<32x256xf32>
    %c0_135 = arith.constant 0 : index
    %c8_136 = arith.constant 8 : index
    %c0_137 = arith.constant 0 : index
    %167 = vector.load %arg18[%c0_135, %c8_136, %c0_137] : memref<2x32x256xbf16, #tpu.memory_space<vmem>>, vector<2x16x256xbf16>
    %168 = vector.shape_cast %167 : vector<2x16x256xbf16> to vector<32x256xbf16>
    %c2_138 = arith.constant 2 : index
    %c0_139 = arith.constant 0 : index
    %c0_140 = arith.constant 0 : index
    %169 = vector.load %arg8[%c2_138, %c0_139, %c0_140] : memref<5x256x256xbf16, #tpu.memory_space<vmem>>, vector<1x256x256xbf16>
    %170 = vector.shape_cast %169 : vector<1x256x256xbf16> to vector<256x256xbf16>
    %cst_141 = arith.constant dense<0.000000e+00> : vector<32x256xf32>
    %171 = tpu.matmul %168, %170, %cst_141 {dimension_numbers = #tpu.dot_dimension_numbers<[1], [0], [0], [1], [0, 0, 1, 1], [], []>} : vector<32x256xbf16>, vector<256x256xbf16>, vector<32x256xf32> -> vector<32x256xf32>
    %172 = arith.addf %166, %171 : vector<32x256xf32>
    %c0_142 = arith.constant 0 : index
    %c9_143 = arith.constant 9 : index
    %c0_144 = arith.constant 0 : index
    %173 = vector.load %arg18[%c0_142, %c9_143, %c0_144] : memref<2x32x256xbf16, #tpu.memory_space<vmem>>, vector<2x16x256xbf16>
    %174 = vector.shape_cast %173 : vector<2x16x256xbf16> to vector<32x256xbf16>
    %c3_145 = arith.constant 3 : index
    %c0_146 = arith.constant 0 : index
    %c0_147 = arith.constant 0 : index
    %175 = vector.load %arg8[%c3_145, %c0_146, %c0_147] : memref<5x256x256xbf16, #tpu.memory_space<vmem>>, vector<1x256x256xbf16>
    %176 = vector.shape_cast %175 : vector<1x256x256xbf16> to vector<256x256xbf16>
    %cst_148 = arith.constant dense<0.000000e+00> : vector<32x256xf32>
    %177 = tpu.matmul %174, %176, %cst_148 {dimension_numbers = #tpu.dot_dimension_numbers<[1], [0], [0], [1], [0, 0, 1, 1], [], []>} : vector<32x256xbf16>, vector<256x256xbf16>, vector<32x256xf32> -> vector<32x256xf32>
    %178 = arith.addf %172, %177 : vector<32x256xf32>
    %c0_149 = arith.constant 0 : index
    %c10_150 = arith.constant 10 : index
    %c0_151 = arith.constant 0 : index
    %179 = vector.load %arg18[%c0_149, %c10_150, %c0_151] : memref<2x32x256xbf16, #tpu.memory_space<vmem>>, vector<2x16x256xbf16>
    %180 = vector.shape_cast %179 : vector<2x16x256xbf16> to vector<32x256xbf16>
    %c4_152 = arith.constant 4 : index
    %c0_153 = arith.constant 0 : index
    %c0_154 = arith.constant 0 : index
    %181 = vector.load %arg8[%c4_152, %c0_153, %c0_154] : memref<5x256x256xbf16, #tpu.memory_space<vmem>>, vector<1x256x256xbf16>
    %182 = vector.shape_cast %181 : vector<1x256x256xbf16> to vector<256x256xbf16>
    %cst_155 = arith.constant dense<0.000000e+00> : vector<32x256xf32>
    %183 = tpu.matmul %180, %182, %cst_155 {dimension_numbers = #tpu.dot_dimension_numbers<[1], [0], [0], [1], [0, 0, 1, 1], [], []>} : vector<32x256xbf16>, vector<256x256xbf16>, vector<32x256xf32> -> vector<32x256xf32>
    %184 = arith.addf %178, %183 : vector<32x256xf32>
    %c0_156 = arith.constant 0 : index
    %c0_157 = arith.constant 0 : index
    %185 = vector.load %arg9[%c0_156, %c0_157] : memref<1x256xf32, #tpu.memory_space<vmem>>, vector<1x256xf32>
    %186 = vector.broadcast %185 : vector<1x256xf32> to vector<32x256xf32>
    %187 = arith.addf %184, %186 : vector<32x256xf32>
    %cst_158 = arith.constant 0.000000e+00 : f32
    %188 = vector.broadcast %cst_158 : f32 to vector<32x256xf32>
    %189 = arith.cmpf ogt, %187, %188 : vector<32x256xf32>
    %cst_159 = arith.constant 0.000000e+00 : f32
    %190 = vector.broadcast %cst_159 : f32 to vector<32x256xf32>
    %191 = arith.minimumf %187, %190 : vector<32x256xf32>
    %192 = math.exp %191 : vector<32x256xf32>
    %cst_160 = arith.constant 1.000000e+00 : f32
    %193 = vector.broadcast %cst_160 : f32 to vector<32x256xf32>
    %194 = arith.subf %192, %193 : vector<32x256xf32>
    %195 = arith.select %189, %187, %194 : vector<32x256xi1>, vector<32x256xf32>
    %196 = vector.shape_cast %195 : vector<32x256xf32> to vector<2x16x256xf32>
    %197 = arith.truncf %196 : vector<2x16x256xf32> to vector<2x16x256xbf16>
    %c0_161 = arith.constant 0 : index
    %c8_162 = arith.constant 8 : index
    %c0_163 = arith.constant 0 : index
    %198 = vector.load %arg17[%c0_161, %c8_162, %c0_163] : memref<2x32x256xbf16, #tpu.memory_space<vmem>>, vector<2x16x256xbf16>
    tpu.vector_store %arg17[%c0_161, %c8_162, %c0_163], %197 {strides = array<i32>} : memref<2x32x256xbf16, #tpu.memory_space<vmem>>, vector<2x16x256xbf16>,
    %cst_164 = arith.constant 0.000000e+00 : f32
    %199 = vector.broadcast %cst_164 : f32 to vector<32x128xf32>
    %c0_165 = arith.constant 0 : index
    %c6_166 = arith.constant 6 : index
    %c0_167 = arith.constant 0 : index
    %200 = vector.load %arg17[%c0_165, %c6_166, %c0_167] : memref<2x32x256xbf16, #tpu.memory_space<vmem>>, vector<2x16x256xbf16>
    %201 = vector.shape_cast %200 : vector<2x16x256xbf16> to vector<32x256xbf16>
    %c0_168 = arith.constant 0 : index
    %c0_169 = arith.constant 0 : index
    %c0_170 = arith.constant 0 : index
    %202 = vector.load %arg10[%c0_168, %c0_169, %c0_170] : memref<5x256x128xbf16, #tpu.memory_space<vmem>>, vector<1x256x128xbf16>
    %203 = vector.shape_cast %202 : vector<1x256x128xbf16> to vector<256x128xbf16>
    %cst_171 = arith.constant dense<0.000000e+00> : vector<32x128xf32>
    %204 = tpu.matmul %201, %203, %cst_171 {dimension_numbers = #tpu.dot_dimension_numbers<[1], [0], [0], [1], [0, 0, 1, 1], [], []>} : vector<32x256xbf16>, vector<256x128xbf16>, vector<32x128xf32> -> vector<32x128xf32>
    %205 = arith.addf %199, %204 : vector<32x128xf32>
    %c0_172 = arith.constant 0 : index
    %c7_173 = arith.constant 7 : index
    %c0_174 = arith.constant 0 : index
    %206 = vector.load %arg17[%c0_172, %c7_173, %c0_174] : memref<2x32x256xbf16, #tpu.memory_space<vmem>>, vector<2x16x256xbf16>
    %207 = vector.shape_cast %206 : vector<2x16x256xbf16> to vector<32x256xbf16>
    %c1_175 = arith.constant 1 : index
    %c0_176 = arith.constant 0 : index
    %c0_177 = arith.constant 0 : index
    %208 = vector.load %arg10[%c1_175, %c0_176, %c0_177] : memref<5x256x128xbf16, #tpu.memory_space<vmem>>, vector<1x256x128xbf16>
    %209 = vector.shape_cast %208 : vector<1x256x128xbf16> to vector<256x128xbf16>
    %cst_178 = arith.constant dense<0.000000e+00> : vector<32x128xf32>
    %210 = tpu.matmul %207, %209, %cst_178 {dimension_numbers = #tpu.dot_dimension_numbers<[1], [0], [0], [1], [0, 0, 1, 1], [], []>} : vector<32x256xbf16>, vector<256x128xbf16>, vector<32x128xf32> -> vector<32x128xf32>
    %211 = arith.addf %205, %210 : vector<32x128xf32>
    %c0_179 = arith.constant 0 : index
    %c8_180 = arith.constant 8 : index
    %c0_181 = arith.constant 0 : index
    %212 = vector.load %arg17[%c0_179, %c8_180, %c0_181] : memref<2x32x256xbf16, #tpu.memory_space<vmem>>, vector<2x16x256xbf16>
    %213 = vector.shape_cast %212 : vector<2x16x256xbf16> to vector<32x256xbf16>
    %c2_182 = arith.constant 2 : index
    %c0_183 = arith.constant 0 : index
    %c0_184 = arith.constant 0 : index
    %214 = vector.load %arg10[%c2_182, %c0_183, %c0_184] : memref<5x256x128xbf16, #tpu.memory_space<vmem>>, vector<1x256x128xbf16>
    %215 = vector.shape_cast %214 : vector<1x256x128xbf16> to vector<256x128xbf16>
    %cst_185 = arith.constant dense<0.000000e+00> : vector<32x128xf32>
    %216 = tpu.matmul %213, %215, %cst_185 {dimension_numbers = #tpu.dot_dimension_numbers<[1], [0], [0], [1], [0, 0, 1, 1], [], []>} : vector<32x256xbf16>, vector<256x128xbf16>, vector<32x128xf32> -> vector<32x128xf32>
    %217 = arith.addf %211, %216 : vector<32x128xf32>
    %c0_186 = arith.constant 0 : index
    %c9_187 = arith.constant 9 : index
    %c0_188 = arith.constant 0 : index
    %218 = vector.load %arg17[%c0_186, %c9_187, %c0_188] : memref<2x32x256xbf16, #tpu.memory_space<vmem>>, vector<2x16x256xbf16>
    %219 = vector.shape_cast %218 : vector<2x16x256xbf16> to vector<32x256xbf16>
    %c3_189 = arith.constant 3 : index
    %c0_190 = arith.constant 0 : index
    %c0_191 = arith.constant 0 : index
    %220 = vector.load %arg10[%c3_189, %c0_190, %c0_191] : memref<5x256x128xbf16, #tpu.memory_space<vmem>>, vector<1x256x128xbf16>
    %221 = vector.shape_cast %220 : vector<1x256x128xbf16> to vector<256x128xbf16>
    %cst_192 = arith.constant dense<0.000000e+00> : vector<32x128xf32>
    %222 = tpu.matmul %219, %221, %cst_192 {dimension_numbers = #tpu.dot_dimension_numbers<[1], [0], [0], [1], [0, 0, 1, 1], [], []>} : vector<32x256xbf16>, vector<256x128xbf16>, vector<32x128xf32> -> vector<32x128xf32>
    %223 = arith.addf %217, %222 : vector<32x128xf32>
    %c0_193 = arith.constant 0 : index
    %c10_194 = arith.constant 10 : index
    %c0_195 = arith.constant 0 : index
    %224 = vector.load %arg17[%c0_193, %c10_194, %c0_195] : memref<2x32x256xbf16, #tpu.memory_space<vmem>>, vector<2x16x256xbf16>
    %225 = vector.shape_cast %224 : vector<2x16x256xbf16> to vector<32x256xbf16>
    %c4_196 = arith.constant 4 : index
    %c0_197 = arith.constant 0 : index
    %c0_198 = arith.constant 0 : index
    %226 = vector.load %arg10[%c4_196, %c0_197, %c0_198] : memref<5x256x128xbf16, #tpu.memory_space<vmem>>, vector<1x256x128xbf16>
    %227 = vector.shape_cast %226 : vector<1x256x128xbf16> to vector<256x128xbf16>
    %cst_199 = arith.constant dense<0.000000e+00> : vector<32x128xf32>
    %228 = tpu.matmul %225, %227, %cst_199 {dimension_numbers = #tpu.dot_dimension_numbers<[1], [0], [0], [1], [0, 0, 1, 1], [], []>} : vector<32x256xbf16>, vector<256x128xbf16>, vector<32x128xf32> -> vector<32x128xf32>
    %229 = arith.addf %223, %228 : vector<32x128xf32>
    %c0_200 = arith.constant 0 : index
    %c0_201 = arith.constant 0 : index
    %230 = vector.load %arg11[%c0_200, %c0_201] : memref<1x128xf32, #tpu.memory_space<vmem>>, vector<1x128xf32>
    %231 = vector.broadcast %230 : vector<1x128xf32> to vector<32x128xf32>
    %232 = arith.addf %229, %231 : vector<32x128xf32>
    %cst_202 = arith.constant 0.000000e+00 : f32
    %233 = vector.broadcast %cst_202 : f32 to vector<32x128xf32>
    %234 = arith.cmpf ogt, %232, %233 : vector<32x128xf32>
    %cst_203 = arith.constant 0.000000e+00 : f32
    %235 = vector.broadcast %cst_203 : f32 to vector<32x128xf32>
    %236 = arith.minimumf %232, %235 : vector<32x128xf32>
    %237 = math.exp %236 : vector<32x128xf32>
    %cst_204 = arith.constant 1.000000e+00 : f32
    %238 = vector.broadcast %cst_204 : f32 to vector<32x128xf32>
    %239 = arith.subf %237, %238 : vector<32x128xf32>
    %240 = arith.select %234, %232, %239 : vector<32x128xi1>, vector<32x128xf32>
    %241 = vector.shape_cast %240 : vector<32x128xf32> to vector<2x16x128xf32>
    %242 = arith.truncf %241 : vector<2x16x128xf32> to vector<2x16x128xbf16>
    %c0_205 = arith.constant 0 : index
    %c8_206 = arith.constant 8 : index
    %c0_207 = arith.constant 0 : index
    %243 = vector.load %arg18[%c0_205, %c8_206, %c0_207] : memref<2x32x256xbf16, #tpu.memory_space<vmem>>, vector<2x16x128xbf16>
    tpu.vector_store %arg18[%c0_205, %c8_206, %c0_207], %242 {strides = array<i32>} : memref<2x32x256xbf16, #tpu.memory_space<vmem>>, vector<2x16x128xbf16>,
    %cst_208 = arith.constant 0.000000e+00 : f32
    %244 = vector.broadcast %cst_208 : f32 to vector<32x64xf32>
    %c0_209 = arith.constant 0 : index
    %c6_210 = arith.constant 6 : index
    %c0_211 = arith.constant 0 : index
    %245 = vector.load %arg18[%c0_209, %c6_210, %c0_211] : memref<2x32x256xbf16, #tpu.memory_space<vmem>>, vector<2x16x128xbf16>
    %246 = vector.shape_cast %245 : vector<2x16x128xbf16> to vector<32x128xbf16>
    %c0_212 = arith.constant 0 : index
    %c0_213 = arith.constant 0 : index
    %c0_214 = arith.constant 0 : index
    %247 = vector.load %arg12[%c0_212, %c0_213, %c0_214] : memref<5x128x64xbf16, #tpu.memory_space<vmem>>, vector<1x128x64xbf16>
    %248 = vector.shape_cast %247 : vector<1x128x64xbf16> to vector<128x64xbf16>
    %cst_215 = arith.constant dense<0.000000e+00> : vector<32x64xf32>
    %249 = tpu.matmul %246, %248, %cst_215 {dimension_numbers = #tpu.dot_dimension_numbers<[1], [0], [0], [1], [0, 0, 1, 1], [], []>} : vector<32x128xbf16>, vector<128x64xbf16>, vector<32x64xf32> -> vector<32x64xf32>
    %250 = arith.addf %244, %249 : vector<32x64xf32>
    %c0_216 = arith.constant 0 : index
    %c7_217 = arith.constant 7 : index
    %c0_218 = arith.constant 0 : index
    %251 = vector.load %arg18[%c0_216, %c7_217, %c0_218] : memref<2x32x256xbf16, #tpu.memory_space<vmem>>, vector<2x16x128xbf16>
    %252 = vector.shape_cast %251 : vector<2x16x128xbf16> to vector<32x128xbf16>
    %c1_219 = arith.constant 1 : index
    %c0_220 = arith.constant 0 : index
    %c0_221 = arith.constant 0 : index
    %253 = vector.load %arg12[%c1_219, %c0_220, %c0_221] : memref<5x128x64xbf16, #tpu.memory_space<vmem>>, vector<1x128x64xbf16>
    %254 = vector.shape_cast %253 : vector<1x128x64xbf16> to vector<128x64xbf16>
    %cst_222 = arith.constant dense<0.000000e+00> : vector<32x64xf32>
    %255 = tpu.matmul %252, %254, %cst_222 {dimension_numbers = #tpu.dot_dimension_numbers<[1], [0], [0], [1], [0, 0, 1, 1], [], []>} : vector<32x128xbf16>, vector<128x64xbf16>, vector<32x64xf32> -> vector<32x64xf32>
    %256 = arith.addf %250, %255 : vector<32x64xf32>
    %c0_223 = arith.constant 0 : index
    %c8_224 = arith.constant 8 : index
    %c0_225 = arith.constant 0 : index
    %257 = vector.load %arg18[%c0_223, %c8_224, %c0_225] : memref<2x32x256xbf16, #tpu.memory_space<vmem>>, vector<2x16x128xbf16>
    %258 = vector.shape_cast %257 : vector<2x16x128xbf16> to vector<32x128xbf16>
    %c2_226 = arith.constant 2 : index
    %c0_227 = arith.constant 0 : index
    %c0_228 = arith.constant 0 : index
    %259 = vector.load %arg12[%c2_226, %c0_227, %c0_228] : memref<5x128x64xbf16, #tpu.memory_space<vmem>>, vector<1x128x64xbf16>
    %260 = vector.shape_cast %259 : vector<1x128x64xbf16> to vector<128x64xbf16>
    %cst_229 = arith.constant dense<0.000000e+00> : vector<32x64xf32>
    %261 = tpu.matmul %258, %260, %cst_229 {dimension_numbers = #tpu.dot_dimension_numbers<[1], [0], [0], [1], [0, 0, 1, 1], [], []>} : vector<32x128xbf16>, vector<128x64xbf16>, vector<32x64xf32> -> vector<32x64xf32>
    %262 = arith.addf %256, %261 : vector<32x64xf32>
    %c0_230 = arith.constant 0 : index
    %c9_231 = arith.constant 9 : index
    %c0_232 = arith.constant 0 : index
    %263 = vector.load %arg18[%c0_230, %c9_231, %c0_232] : memref<2x32x256xbf16, #tpu.memory_space<vmem>>, vector<2x16x128xbf16>
    %264 = vector.shape_cast %263 : vector<2x16x128xbf16> to vector<32x128xbf16>
    %c3_233 = arith.constant 3 : index
    %c0_234 = arith.constant 0 : index
    %c0_235 = arith.constant 0 : index
    %265 = vector.load %arg12[%c3_233, %c0_234, %c0_235] : memref<5x128x64xbf16, #tpu.memory_space<vmem>>, vector<1x128x64xbf16>
    %266 = vector.shape_cast %265 : vector<1x128x64xbf16> to vector<128x64xbf16>
    %cst_236 = arith.constant dense<0.000000e+00> : vector<32x64xf32>
    %267 = tpu.matmul %264, %266, %cst_236 {dimension_numbers = #tpu.dot_dimension_numbers<[1], [0], [0], [1], [0, 0, 1, 1], [], []>} : vector<32x128xbf16>, vector<128x64xbf16>, vector<32x64xf32> -> vector<32x64xf32>
    %268 = arith.addf %262, %267 : vector<32x64xf32>
    %c0_237 = arith.constant 0 : index
    %c10_238 = arith.constant 10 : index
    %c0_239 = arith.constant 0 : index
    %269 = vector.load %arg18[%c0_237, %c10_238, %c0_239] : memref<2x32x256xbf16, #tpu.memory_space<vmem>>, vector<2x16x128xbf16>
    %270 = vector.shape_cast %269 : vector<2x16x128xbf16> to vector<32x128xbf16>
    %c4_240 = arith.constant 4 : index
    %c0_241 = arith.constant 0 : index
    %c0_242 = arith.constant 0 : index
    %271 = vector.load %arg12[%c4_240, %c0_241, %c0_242] : memref<5x128x64xbf16, #tpu.memory_space<vmem>>, vector<1x128x64xbf16>
    %272 = vector.shape_cast %271 : vector<1x128x64xbf16> to vector<128x64xbf16>
    %cst_243 = arith.constant dense<0.000000e+00> : vector<32x64xf32>
    %273 = tpu.matmul %270, %272, %cst_243 {dimension_numbers = #tpu.dot_dimension_numbers<[1], [0], [0], [1], [0, 0, 1, 1], [], []>} : vector<32x128xbf16>, vector<128x64xbf16>, vector<32x64xf32> -> vector<32x64xf32>
    %274 = arith.addf %268, %273 : vector<32x64xf32>
    %c0_244 = arith.constant 0 : index
    %c0_245 = arith.constant 0 : index
    %275 = vector.load %arg13[%c0_244, %c0_245] : memref<1x64xf32, #tpu.memory_space<vmem>>, vector<1x64xf32>
    %276 = vector.broadcast %275 : vector<1x64xf32> to vector<32x64xf32>
    %277 = arith.addf %274, %276 : vector<32x64xf32>
    %cst_246 = arith.constant 0.000000e+00 : f32
    %278 = vector.broadcast %cst_246 : f32 to vector<32x64xf32>
    %279 = arith.cmpf ogt, %277, %278 : vector<32x64xf32>
    %cst_247 = arith.constant 0.000000e+00 : f32
    %280 = vector.broadcast %cst_247 : f32 to vector<32x64xf32>
    %281 = arith.minimumf %277, %280 : vector<32x64xf32>
    %282 = math.exp %281 : vector<32x64xf32>
    %cst_248 = arith.constant 1.000000e+00 : f32
    %283 = vector.broadcast %cst_248 : f32 to vector<32x64xf32>
    %284 = arith.subf %282, %283 : vector<32x64xf32>
    %285 = arith.select %279, %277, %284 : vector<32x64xi1>, vector<32x64xf32>
    %286 = vector.shape_cast %285 : vector<32x64xf32> to vector<2x16x64xf32>
    %287 = arith.truncf %286 : vector<2x16x64xf32> to vector<2x16x64xbf16>
    %c0_249 = arith.constant 0 : index
    %c8_250 = arith.constant 8 : index
    %c0_251 = arith.constant 0 : index
    %288 = vector.load %arg17[%c0_249, %c8_250, %c0_251] : memref<2x32x256xbf16, #tpu.memory_space<vmem>>, vector<2x16x64xbf16>
    tpu.vector_store %arg17[%c0_249, %c8_250, %c0_251], %287 {strides = array<i32>} : memref<2x32x256xbf16, #tpu.memory_space<vmem>>, vector<2x16x64xbf16>,
    %c0_252 = arith.constant 0 : index
    %c0_253 = arith.constant 0 : index
    %c0_254 = arith.constant 0 : index
    %289 = vector.load %arg17[%c0_252, %c0_253, %c0_254] : memref<2x32x256xbf16, #tpu.memory_space<vmem>>, vector<2x32x64xbf16>
    %290 = arith.extf %289 : vector<2x32x64xbf16> to vector<2x32x64xf32>
    %cst_255 = arith.constant 0.000000e+00 : f32
    %291 = vector.broadcast %cst_255 : f32 to vector<2x16x64xf32>
    %292 = vector.extract_strided_slice %290 {offsets = [0, 6, 0], sizes = [2, 16, 64], strides = [1, 1, 1]} : vector<2x32x64xf32> to vector<2x16x64xf32>
    %c0_256 = arith.constant 0 : index
    %c0_257 = arith.constant 0 : index
    %293 = vector.load %arg14[%c0_256, %c0_257] : memref<5x64xf32, #tpu.memory_space<vmem>>, vector<1x64xf32>
    %294 = vector.shape_cast %293 : vector<1x64xf32> to vector<1x1x64xf32>
    %295 = vector.broadcast %294 : vector<1x1x64xf32> to vector<2x16x64xf32>
    %296 = arith.mulf %292, %295 : vector<2x16x64xf32>
    %297 = arith.addf %291, %296 : vector<2x16x64xf32>
    %298 = vector.extract_strided_slice %290 {offsets = [0, 7, 0], sizes = [2, 16, 64], strides = [1, 1, 1]} : vector<2x32x64xf32> to vector<2x16x64xf32>
    %c1_258 = arith.constant 1 : index
    %c0_259 = arith.constant 0 : index
    %299 = vector.load %arg14[%c1_258, %c0_259] : memref<5x64xf32, #tpu.memory_space<vmem>>, vector<1x64xf32>
    %300 = vector.shape_cast %299 : vector<1x64xf32> to vector<1x1x64xf32>
    %301 = vector.broadcast %300 : vector<1x1x64xf32> to vector<2x16x64xf32>
    %302 = arith.mulf %298, %301 : vector<2x16x64xf32>
    %303 = arith.addf %297, %302 : vector<2x16x64xf32>
    %304 = vector.extract_strided_slice %290 {offsets = [0, 8, 0], sizes = [2, 16, 64], strides = [1, 1, 1]} : vector<2x32x64xf32> to vector<2x16x64xf32>
    %c2_260 = arith.constant 2 : index
    %c0_261 = arith.constant 0 : index
    %305 = vector.load %arg14[%c2_260, %c0_261] : memref<5x64xf32, #tpu.memory_space<vmem>>, vector<1x64xf32>
    %306 = vector.shape_cast %305 : vector<1x64xf32> to vector<1x1x64xf32>
    %307 = vector.broadcast %306 : vector<1x1x64xf32> to vector<2x16x64xf32>
    %308 = arith.mulf %304, %307 : vector<2x16x64xf32>
    %309 = arith.addf %303, %308 : vector<2x16x64xf32>
    %310 = vector.extract_strided_slice %290 {offsets = [0, 9, 0], sizes = [2, 16, 64], strides = [1, 1, 1]} : vector<2x32x64xf32> to vector<2x16x64xf32>
    %c3_262 = arith.constant 3 : index
    %c0_263 = arith.constant 0 : index
    %311 = vector.load %arg14[%c3_262, %c0_263] : memref<5x64xf32, #tpu.memory_space<vmem>>, vector<1x64xf32>
    %312 = vector.shape_cast %311 : vector<1x64xf32> to vector<1x1x64xf32>
    %313 = vector.broadcast %312 : vector<1x1x64xf32> to vector<2x16x64xf32>
    %314 = arith.mulf %310, %313 : vector<2x16x64xf32>
    %315 = arith.addf %309, %314 : vector<2x16x64xf32>
    %316 = vector.extract_strided_slice %290 {offsets = [0, 10, 0], sizes = [2, 16, 64], strides = [1, 1, 1]} : vector<2x32x64xf32> to vector<2x16x64xf32>
    %c4_264 = arith.constant 4 : index
    %c0_265 = arith.constant 0 : index
    %317 = vector.load %arg14[%c4_264, %c0_265] : memref<5x64xf32, #tpu.memory_space<vmem>>, vector<1x64xf32>
    %318 = vector.shape_cast %317 : vector<1x64xf32> to vector<1x1x64xf32>
    %319 = vector.broadcast %318 : vector<1x1x64xf32> to vector<2x16x64xf32>
    %320 = arith.mulf %316, %319 : vector<2x16x64xf32>
    %321 = arith.addf %315, %320 : vector<2x16x64xf32>
    %cst_266 = arith.constant dense<0.000000e+00> : vector<2x16xf32>
    %322 = vector.multi_reduction <add>, %321, %cst_266 [2] : vector<2x16x64xf32> to vector<2x16xf32>
    %323 = vector.shape_cast %322 : vector<2x16xf32> to vector<2x16x1xf32>
    %c0_267 = arith.constant 0 : index
    %c0_268 = arith.constant 0 : index
    %324 = vector.load %arg15[%c0_267, %c0_268] : memref<1x1xf32, #tpu.memory_space<vmem>>, vector<1x1xf32>
    %325 = vector.shape_cast %324 : vector<1x1xf32> to vector<1x1x1xf32>
    %326 = vector.broadcast %325 : vector<1x1x1xf32> to vector<2x16x1xf32>
    %327 = arith.addf %323, %326 : vector<2x16x1xf32>
    %328 = vector.shape_cast %327 : vector<2x16x1xf32> to vector<2x1x16xf32>
    %c0_269 = arith.constant 0 : index
    %c0_270 = arith.constant 0 : index
    %c0_271 = arith.constant 0 : index
    %329 = vector.load %arg16[%c0_269, %c0_270, %c0_271] : memref<2x1x16xf32, #tpu.memory_space<vmem>>, vector<2x1x16xf32>
    tpu.vector_store %arg16[%c0_269, %c0_270, %c0_271], %328 {strides = array<i32>} : memref<2x1x16xf32, #tpu.memory_space<vmem>>, vector<2x1x16xf32>,
    return
  }
  func.func @transform_0(%arg0: i32) -> (i32, i32, i32) {
    %c0_i32 = arith.constant 0 : i32
    %c0_i32_0 = arith.constant 0 : i32
    %c0_i32_1 = arith.constant 0 : i32
    return %arg0, %c0_i32, %c0_i32_0 : i32, i32, i32
  }
  func.func @transform_1(%arg0: i32) -> (i32, i32) {
    %c0_i32 = arith.constant 0 : i32
    %c0_i32_0 = arith.constant 0 : i32
    %c0_i32_1 = arith.constant 0 : i32
    return %c0_i32, %c0_i32_0 : i32, i32
  }
  func.func @transform_2(%arg0: i32) -> (i32, i32) {
    %c0_i32 = arith.constant 0 : i32
    %c0_i32_0 = arith.constant 0 : i32
    %c0_i32_1 = arith.constant 0 : i32
    return %c0_i32, %c0_i32_0 : i32, i32
  }
  func.func @transform_3(%arg0: i32) -> (i32, i32, i32) {
    %c0_i32 = arith.constant 0 : i32
    %c0_i32_0 = arith.constant 0 : i32
    %c0_i32_1 = arith.constant 0 : i32
    %c0_i32_2 = arith.constant 0 : i32
    return %c0_i32, %c0_i32_0, %c0_i32_1 : i32, i32, i32
  }
  func.func @transform_4(%arg0: i32) -> (i32, i32) {
    %c0_i32 = arith.constant 0 : i32
    %c0_i32_0 = arith.constant 0 : i32
    %c0_i32_1 = arith.constant 0 : i32
    return %c0_i32, %c0_i32_0 : i32, i32
  }
  func.func @transform_5(%arg0: i32) -> (i32, i32, i32) {
    %c0_i32 = arith.constant 0 : i32
    %c0_i32_0 = arith.constant 0 : i32
    %c0_i32_1 = arith.constant 0 : i32
    %c0_i32_2 = arith.constant 0 : i32
    return %c0_i32, %c0_i32_0, %c0_i32_1 : i32, i32, i32
  }
  func.func @transform_6(%arg0: i32) -> (i32, i32) {
    %c0_i32 = arith.constant 0 : i32
    %c0_i32_0 = arith.constant 0 : i32
    %c0_i32_1 = arith.constant 0 : i32
    return %c0_i32, %c0_i32_0 : i32, i32
  }
  func.func @transform_7(%arg0: i32) -> (i32, i32, i32) {
    %c0_i32 = arith.constant 0 : i32
    %c0_i32_0 = arith.constant 0 : i32
    %c0_i32_1 = arith.constant 0 : i32
    %c0_i32_2 = arith.constant 0 : i32
    return %c0_i32, %c0_i32_0, %c0_i32_1 : i32, i32, i32
  }
  func.func @transform_8(%arg0: i32) -> (i32, i32) {
    %c0_i32 = arith.constant 0 : i32
    %c0_i32_0 = arith.constant 0 : i32
    %c0_i32_1 = arith.constant 0 : i32
    return %c0_i32, %c0_i32_0 : i32, i32
  }
  func.func @transform_9(%arg0: i32) -> (i32, i32, i32) {
    %c0_i32 = arith.constant 0 : i32
    %c0_i32_0 = arith.constant 0 : i32
    %c0_i32_1 = arith.constant 0 : i32
    %c0_i32_2 = arith.constant 0 : i32
    return %c0_i32, %c0_i32_0, %c0_i32_1 : i32, i32, i32
  }
  func.func @transform_10(%arg0: i32) -> (i32, i32) {
    %c0_i32 = arith.constant 0 : i32
    %c0_i32_0 = arith.constant 0 : i32
    %c0_i32_1 = arith.constant 0 : i32
    return %c0_i32, %c0_i32_0 : i32, i32
  }
  func.func @transform_11(%arg0: i32) -> (i32, i32, i32) {
    %c0_i32 = arith.constant 0 : i32
    %c0_i32_0 = arith.constant 0 : i32
    %c0_i32_1 = arith.constant 0 : i32
    %c0_i32_2 = arith.constant 0 : i32
    return %c0_i32, %c0_i32_0, %c0_i32_1 : i32, i32, i32
  }
  func.func @transform_12(%arg0: i32) -> (i32, i32) {
    %c0_i32 = arith.constant 0 : i32
    %c0_i32_0 = arith.constant 0 : i32
    %c0_i32_1 = arith.constant 0 : i32
    return %c0_i32, %c0_i32_0 : i32, i32
  }
  func.func @transform_13(%arg0: i32) -> (i32, i32) {
    %c0_i32 = arith.constant 0 : i32
    %c0_i32_0 = arith.constant 0 : i32
    %c0_i32_1 = arith.constant 0 : i32
    return %c0_i32, %c0_i32_0 : i32, i32
  }
  func.func @transform_14(%arg0: i32) -> (i32, i32) {
    %c0_i32 = arith.constant 0 : i32
    %c0_i32_0 = arith.constant 0 : i32
    %c0_i32_1 = arith.constant 0 : i32
    return %c0_i32, %c0_i32_0 : i32, i32
  }
  func.func @transform_15(%arg0: i32) -> (i32, i32, i32) {
    %c0_i32 = arith.constant 0 : i32
    %c0_i32_0 = arith.constant 0 : i32
    %c0_i32_1 = arith.constant 0 : i32
    return %arg0, %c0_i32, %c0_i32_0 : i32, i32, i32
  }
}

</mosaic_0001>

<bundles_post_ra>
// kernel: forward.1
= control target key start
LH: loop header
LB: loop body
LE: loop exit
PB: predicated region body
PF: predicated region fallthrough
CT: control target
= control target key end

     0   :  { %s9868_s0 = inlined_call_operand.vmem [shape: f32[4,1,16], index: 0, kind: input, shape index: {}]   ;;  %s9869_s1 = inlined_call_operand.vmem [shape: f32[5,64], index: 1, kind: input, shape index: {}]   ;;  %s9870_s2 = inlined_call_operand.vmem [shape: f32[1,64], index: 2, kind: input, shape index: {}]   ;;  %s9871_s3 = inlined_call_operand.vmem [shape: bf16[5,64,128], index: 3, kind: input, shape index: {}]   ;;  %s9872_s4 = inlined_call_operand.vmem [shape: f32[1,128], index: 4, kind: input, shape index: {}]   ;;  %s9873_s5 = inlined_call_operand.hbm [shape: bf16[5,128,256], index: 5, kind: input, shape index: {}]   ;;  %s9874_s6 = inlined_call_operand.vmem [shape: f32[1,256], index: 6, kind: input, shape index: {}]   ;;  %s9875_s7 = inlined_call_operand.hbm [shape: bf16[5,256,256], index: 7, kind: input, shape index: {}]   ;;  %s9876_s8 = inlined_call_operand.vmem [shape: f32[1,256], index: 8, kind: input, shape index: {}]   ;;  %s9877_s9 = inlined_call_operand.hbm [shape: bf16[5,256,128], index: 9, kind: input, shape index: {}]   ;;  %s9878_s10 = inlined_call_operand.vmem [shape: f32[1,128], index: 10, kind: input, shape index: {}]   ;;  %s9879_s11 = inlined_call_operand.vmem [shape: bf16[5,128,64], index: 11, kind: input, shape index: {}]   ;;  %s9880_s12 = inlined_call_operand.vmem [shape: f32[1,64], index: 12, kind: input, shape index: {}]   ;;  %s9881_s13 = inlined_call_operand.vmem [shape: f32[5,64], index: 13, kind: input, shape index: {}]   ;;  %s9882_s14 = inlined_call_operand.<no memory space> [shape: f32[1,1], index: 14, kind: input, shape index: {}]   ;;  %s9883_s15 = inlined_call_operand.hbm [shape: f32[4,1,16], index: 15, kind: output, shape index: {}]  }
   0x1   :  { %v20_v0 = vstv %s9882_s14 }
   0x2   :  { %21 = vst [vmem:[#allocation4] sm:$0x1] %v20_v0 }
   0x3   :  { %22 = vsyncpa [#allocation6], 0 }
   0x4   :  { %23 = vsyncpa [#allocation9], 0 }
   0x5   :  { %24 = vsyncpa [#allocation7], 0 }
   0x6   :  { %26 = vsyncpa [#allocation7 + $0x1], 0  ;;  %s8678_s20 = smov 0   ;;  %s8680_s21 = smov 0  }
   0x7   :  { %s8682_s22 = smov 0   ;;  %s8684_s23 = smov 0  }
   0x8 LB: > { %9891 = sst [smem:[#allocation15_spill]] %s8568_s20  ;;  %s8699_s14 = sadd.s32 4294967295, %s8580_s23   ;;  %s8580_s23 = sphi %s8684_s23, %s9916_s23   ;;  %s8576_s22 = sphi %s8682_s22, %s9918_s22   ;;  %s8572_s21 = sphi %s8680_s21, %s9920_s21   ;;  %s8568_s20 = sphi %s8678_s20, %s9919_s20  }
   0x9   : > { %9892 = sst [smem:[#allocation16_spill]] %s8576_s22  ;;  %s6661_s24 = sadd.s32 4294967294, %s8580_s23  }
   0xa   : > { %s8703_s25 = sadd.s32 1, %s8580_s23   ;;  %s359_s26 = sadd.s32 1, %s8576_s22 }
   0xb   : > { %9893 = sst [smem:[#allocation17_spill]] %s8703_s25  ;;  %s356_s27 = ssub.s32 %s8580_s23, %s8703_s25 }
   0xc   : > { %p369_p0 = scmp.ne.s32.totalorder %s8576_s22, %s8572_s21  ;;  %p357_p1 = scmp.eq.s32.totalorder %s356_s27, 0 }
   0xd   : > { %p370_p2 = scmp.eq.s32.totalorder %s8699_s14, 1  ;;  %p375_p3 = scmp.ne.s32.totalorder %s8572_s21, %s8568_s20 }
   0xe   : > { %p376_p4 = scmp.eq.s32.totalorder %s6661_s24, 1  ;;  %p6662_p7 = scmp.ge.s32.totalorder %s8580_s23, 1 }
   0xf   : > { %s8714_s28 = scalar_select %p357_p1, %s8576_s22, %s359_s26  }
  0x10   : > { %p8716_p5 = por %p370_p2, %p369_p0  ;;  %p8720_p6 = por %p376_p4, %p375_p3 }
  0x11   : > { %9894 = sst [smem:[#allocation18_spill]] %s8714_s28  ;;  %p383_p8 = scmp.lt.s32.totalorder %s8580_s23, 3 }
  0x12   : > { %s9895_s29 = scalar_select %p8716_p5, 1, 0 }
  0x13   : > { %s9896_s30 = scalar_select %p8720_p6, 1, 0 }
  0x14   : > { %p9888_p9 = scmp.eq.s32.totalorder %s8699_s14, 0  ;;  %p8727_p10 = pnand %p6662_p7, %p383_p8 }
  0x15   : > { %9897 = sst [smem:[#allocation19_spill]] %s9896_s30  ;;  %s8582_s17 = smov [#allocation8]  }
  0x16   : > { %p7764_p11 = pneg %p8727_p10  ;;  %s423_s18 = sshll.u32 %s8582_s17, 4  ;;  %s424_s18 = int_to_ptr.vmem [resolvable:$true] %s423_s18 }
  0x17   : > { %s8583_s24 = smov [#allocation5]   ;;  %s8584_s27 = smov [#allocation10]  }
  0x18   : > { %p8735_p12 = pnand %p9888_p9, %p7764_p11  ;;  %s407_s26 = sshll.u32 %s8583_s24, 4  ;;  %s408_s26 = int_to_ptr.vmem [resolvable:$true] %s407_s26 }
  0x19   : > { %s439_s28 = sshll.u32 %s8584_s27, 4  ;;  %s8445_s22 = scalar_lea.vmem %s424_s18, 20480  ;;  %s440_s28 = int_to_ptr.vmem [resolvable:$true] %s439_s28 }
  0x1a   : > { %p8436_p13 = pneg %p8735_p12  ;;  %p8446_p0 = scmp.ne.s32.totalorder %s424_s18, %s8445_s22 }
  0x1b   : > { %p8453_p3 = scmp.lt.s32.totalorder %s424_s18, %s424_s18  ;;  %p8454_p4 = scmp.lt.s32.totalorder %s8445_s22, %s8445_s22 }
  0x1c   : > { %p8448_p1 = pnand %p8446_p0, %p8436_p13 }
  0x1d   : > { %p8455_p7 = por %p8454_p4, %p8453_p3 }
  0x1e   : > { %p8449_p2 = pneg %p8448_p1 }
  0x20   : > { %p8456_p8 = pnand %p8455_p7, %p8449_p2 }
  0x22   : > { %8459 = shalt.err (!%p8456_p8)
}
  0x23   : > { %s8585_s17 = smov 128   ;;  %s8586_s24 = smov 8  }
  0x24   : > { %7770 = dma.hbm_to_vmem [thread:$0]  (!%p8735_p12), %s9875_s7, 20480, %s424_s18, [#allocation9], %s8585_s17, %s8585_s17, %s8586_s24  }
  0x25   : > { %s8471_s30 = scalar_lea.vmem %s408_s26, 10240  ;;  %p8479_p9 = scmp.lt.s32.totalorder %s408_s26, %s408_s26 }
  0x26   : > { %p8472_p11 = scmp.ne.s32.totalorder %s408_s26, %s8471_s30  ;;  %p8480_p6 = scmp.lt.s32.totalorder %s8471_s30, %s8471_s30 }
  0x28   : > { %p8474_p0 = pnand %p8472_p11, %p8436_p13  ;;  %p8481_p3 = por %p8480_p6, %p8479_p9 }
  0x2a   : > { %p8475_p1 = pneg %p8474_p0 }
  0x2c   : > { %p8482_p2 = pnand %p8481_p3, %p8475_p1 }
  0x2e   : > { %8485 = shalt.err (!%p8482_p2)
}
  0x2f   : > { %7767 = dma.hbm_to_vmem [thread:$0]  (!%p8735_p12), %s9873_s5, 10240, %s408_s26, [#allocation6], %s8585_s17, %s8585_s17, %s8586_s24  }
  0x30   : > { %s8497_s25 = scalar_lea.vmem %s440_s28, 10240  ;;  %p8505_p11 = scmp.lt.s32.totalorder %s440_s28, %s440_s28 }
  0x31   : > { %p8498_p4 = scmp.ne.s32.totalorder %s440_s28, %s8497_s25  ;;  %p8506_p0 = scmp.lt.s32.totalorder %s8497_s25, %s8497_s25 }
  0x33   : > { %p8500_p7 = pnand %p8498_p4, %p8436_p13  ;;  %p8507_p5 = por %p8506_p0, %p8505_p11 }
  0x35   : > { %p8501_p8 = pneg %p8500_p7 }
  0x37   : > { %p8508_p6 = pnand %p8507_p5, %p8501_p8 }
  0x39   : > { %8511 = shalt.err (!%p8508_p6)
}
  0x3a   : > { %s8587_s30 = smov 64   ;;  %s8588_s18 = smov 4  }
  0x3b   : > { %7773 = dma.hbm_to_vmem [thread:$0]  (!%p8735_p12), %s9877_s9, 10240, %s440_s28, [#allocation9], %s8587_s30, %s8587_s30, %s8588_s18  }
  0x3c   : > { %478 = sbr.rel (%p8727_p10) target bundleno = 2281 (0x8e9), region = 80  ;;  %p9900_p9 = scmp.eq.s32.totalorder (!%p8727_p10), %s8699_s14, 0 }
  0x41   : > { %8555 = dma.done.wait (%p9900_p9), [#allocation6], 10240   ;;  %p9901_p13 = pmov %p9900_p9 }
  0x42   : > { %p9902_p5 = pmov %p9900_p9 }
  0x43   : > { %8557 = vsyncadd (%p9901_p13), [#allocation6], 4294957056 }
  0x44   : > { %8559 = dma.done.wait (%p9902_p5), [#allocation9], 30720   ;;  %p9903_p1 = pmov %p9902_p5 }
  0x45   : > { %s6672_s19 = sshll.u32 %s8699_s14, 1  ;;  %v8589_v1 = vmov 0   ;;  %v579_v4 = vlaneseq  ;;  %v8590_v6 = vmov 839922192   ;;  %v8591_v8 = vmov 1985246804  }
  0x46   : > { %8561 = vsyncadd (%p9903_p1), [#allocation9], 4294936576  ;;  %p534_p3 = scmp.lt.s32.totalorder %s6672_s19, 3  ;;  %7835 = vset.pattern.permute.xlu1 %v8589_v1  ;;  %540 = vst [vmem:[#allocation2] sm:$0xff] %v8589_v1  ;;  %7829 = vset.pattern.permute.xlu0 %v8589_v1  ;;  %v577_v7 = vunpack.c.l.s4 %v8590_v6  ;;  %v584_v9 = vunpack.c.l.s4 %v8591_v8  ;;  %vm608_vm0 = vcmask 3072   ;;  %v7851_v40 = vld [vmem:[%s9871_s3 + $0x18] sm:$0xff]  }
  0x47   : > { %541 = vst [vmem:[#allocation2 + $0x20] sm:$0xff] %v8589_v1  ;;  %542 = vst [vmem:[#allocation2 + $0x18] sm:$0xff] %v8589_v1  ;;  %v8780_v5 = vshrl.u32 %v579_v4, 7  ;;  %7602 = vmatprep.subr.bf16.mxu1 %v7851_v40  ;;  %v7852_v41 = vld [vmem:[%s9871_s3 + $0x38] sm:$0xff]   ;;  %v7853_v42 = vld [vmem:[%s9871_s3 + $0x10] sm:$0xff]   ;;  %vm693_vm1 = vcmask 1046528  }
  0x48   : > { %s9922_s19 = smov (!%p534_p3, %s6672_s19), 3  ;;  %543 = vst [vmem:[#allocation2 + $0x38] sm:$0xff] %v8589_v1  ;;  %544 = vst [vmem:[#allocation3] sm:$0xff] %v8589_v1  ;;  %v578_v10 = vunpack.c.0.s8 %v577_v7  ;;  %v585_v11 = vunpack.c.0.s8 %v584_v9  ;;  %7603 = vmatpush3.bf16.msra.mxu1 %v7851_v40  ;;  %v7854_v43 = vld [vmem:[%s9871_s3 + $0x30] sm:$0xff]   ;;  %7590 = vmatprep.subr.bf16.mxu0 %v7852_v41  ;;  %v7855_v44 = vld [vmem:[%s9871_s3 + $0x8] sm:$0xff]   ;;  %vm775_vm2 = vcmask 1044480  }
  0x49   : > { %545 = vst [vmem:[#allocation3 + $0x20] sm:$0xff] %v8589_v1  ;;  %546 = vst [vmem:[#allocation3 + $0x18] sm:$0xff] %v8589_v1  ;;  %s536_s26 = scalar_lea.vmem %s9868_s0, %s9922_s19  ;;  %7591 = vmatpush3.bf16.msra.mxu0 %v7852_v41  ;;  %7604 = vmatprep.subr.bf16.mxu1 %v7853_v42  ;;  %v7856_v45 = vld [vmem:[%s9871_s3 + $0x28] sm:$0xff]   ;;  %v7857_v46 = vld [vmem:[%s9871_s3] sm:$0xff]   ;;  %vm729_vm3 = vcmask 1045504   ;;  %vm815_vm4 = vcmask 1043456  }
  0x4a   : > { %547 = vst [vmem:[#allocation3 + $0x38] sm:$0xff] %v8589_v1  ;;  %v6674_v2 = vld [vmem:[%s536_s26 + $0x1] ss:$0 sm:$0xff]  ;;  %v6673_v3 = vld [vmem:[%s536_s26] ss:$0 sm:$0xff]  ;;  %v581_v14 = vsub.s32 %v578_v10, %v8780_v5  ;;  %v588_v15 = vsub.s32 %v585_v11, %v8780_v5  ;;  %7592 = vmatprep.subr.bf16.mxu0 %v7854_v43  ;;  %v8815_v48 = vld [vmem:[%s9871_s3 + $0x78] sm:$0xff]  }
  0x4b   : > { %566 = vbcast.lane.b32.xlu1 %v6674_v2, 256  ;;  %555 = vbcast.lane.b32.xlu0 %v6673_v3, 256  ;;  %v7858_v47 = vld [vmem:[%s9871_s3 + $0x20] sm:$0xff]   ;;  %v8821_v49 = vld [vmem:[%s9871_s3 + $0x58] sm:$0xff]   ;;  %vm907_vm9 = vcmask 1040384   ;;  %vm908_vm10 = vcmask 1044484  }
  0x4c   : > { %7605 = vmatpush3.bf16.msra.mxu1 %v7853_v42  ;;  %v8827_v52 = vld [vmem:[%s9869_s1] ss:$0 sm:$0xff]  ;;  %v8836_v57 = vld [vmem:[%s9869_s1 + $0x1] ss:$0 sm:$0xff]  ;;  %v6677_v58 = vld [vmem:[%s9869_s1 + $0x2] ss:$0 sm:$0xff] }
  0x4d   : > { %7606 = vmatprep.subr.bf16.mxu1 %v7855_v44  ;;  %7593 = vmatpush3.bf16.msra.mxu0 %v7854_v43  ;;  %v8844_v59 = vld [vmem:[%s9869_s1 + $0x3] ss:$0 sm:$0xff]  ;;  %v8849_v60 = vld [vmem:[%s9869_s1 + $0x4] ss:$0 sm:$0xff]  ;;  %vm8947_vm11 = vmor %vm907_vm9, %vm908_vm10  ;;  %vm928_vm12 = vcmask 519168   ;;  %vm1459_vm10 = vcmask 1042432  }
  0x4e   : > { %v616_v24 = vld [vmem:[#allocation2] ss:$24 sps:$4 sm:$0xff]   ;;  %7594 = vmatprep.subr.bf16.mxu0 %v7856_v45  ;;  %vm969_vm15 = vsmask.f32 256  ;;  %s530_s19 = sand.u32 1, %s8572_s21   ;;  %s7369_s17 = sshll.u32 %s8699_s14, 5 }
  0x4f   : > { %570 = vbcast.lane.b32.xlu1 %v6674_v2, 264  ;;  %559 = vbcast.lane.b32.xlu0 %v6673_v3, 264  ;;  %v620_v25 = vld [vmem:[#allocation2 + $0x20] ss:$24 sps:$4 sm:$0xff]   ;;  %v624_v28 = vunpack.c.h.bf16 %v616_v24  ;;  %v621_v30 = vunpack.c.l.bf16 %v616_v24  ;;  %s6671_s28 = sshll.u32 %s530_s19, 1  ;;  %s9819_s25 = scalar_lea.hbm %s9883_s15, %s7369_s17 }
  0x50   : > { %v628_v29 = vunpack.c.h.bf16 %v620_v25  ;;  %v625_v31 = vunpack.c.l.bf16 %v620_v25  ;;  %7607 = vmatpush3.bf16.msra.mxu1 %v7855_v44  ;;  %s532_s16 = scalar_lea.vmem [#allocation11], %s6671_s28  ;;  %s9828_s14 = scalar_lea.sflag [#allocation7], %s530_s19 }
  0x51   : > { %7608 = vmatprep.subr.bf16.mxu1 %v7857_v46  ;;  %7595 = vmatpush3.bf16.msra.mxu0 %v7856_v45  ;;  %s6571_s26 = sshll.u32 %s532_s16, 4  ;;  %p9912_p12 = scmp.ne.s32.totalorder %s9895_s29, 0  ;;  %s9821_s26 = int_to_ptr.vmem [resolvable:$true] %s6571_s26 }
  0x52   : > { %v7846_v38 = vpack.i.bf16 %v628_v29, %v624_v28  ;;  %v7841_v39 = vpack.i.bf16 %v625_v31, %v621_v30  ;;  %7596 = vmatprep.subr.bf16.mxu0 %v7858_v47  ;;  %s8512_s30 = scalar_lea.vmem %s9821_s26, 32  ;;  %s8592_s18 = smov [#allocation11]  }
  0x53   : > { %p8513_p10 = scmp.ne.s32.totalorder %s9821_s26, %s8512_s30  ;;  %s8516_s27 = sshll.u32 %s8592_s18, 4  ;;  %s8517_s27 = int_to_ptr.vmem [resolvable:$false] %s8516_s27 }
  0x54   : > { %7609 = vmatpush3.bf16.msra.mxu1 %v7857_v46  ;;  %s8518_s20 = scalar_lea.vmem %s8517_s27, 64  ;;  %p8519_p7 = scmp.lt.s32.totalorder %s9821_s26, %s8517_s27 }
  0x55   : > { %7597 = vmatpush3.bf16.msra.mxu0 %v7858_v47  ;;  %7626 = vmatprep.subr.bf16.mxu1 %v8815_v48  ;;  %p8514_p2 = pnand %p8513_p10, %p9912_p12  ;;  %p8520_p8 = scmp.lt.s32.totalorder %s8518_s20, %s8512_s30 }
  0x56   : > { %7614 = vmatprep.subr.bf16.mxu0 %v8821_v49 }
  0x57   : > { %p8515_p4 = pneg %p8514_p2  ;;  %p8521_p11 = por %p8520_p8, %p8519_p7 }
  0x59   : > { %p8522_p0 = pnand %p8521_p11, %p8515_p4 }
  0xbd   : > { %v567_v12 = vpop.permute.xlu1 %566  ;;  %v556_v13 = vpop.permute.xlu0 %555 }
  0xc1   : > { %v571_v16 = vpop.permute.xlu1 %570  ;;  %v560_v17 = vpop.permute.xlu0 %559 }
  0xc2   : > { %v573_v18 = vpack.c.bf16 %v571_v16, %v567_v12  ;;  %v572_v19 = vpack.c.bf16 %v560_v17, %v556_v13 }
  0xc4   : > { %v596_v20 = vrot.slane %v573_v18, %v581_v14  ;;  %v603_v21 = vrot.slane %v573_v18, %v588_v15  ;;  %v582_v22 = vrot.slane %v572_v19, %v581_v14  ;;  %v589_v23 = vrot.slane %v572_v19, %v588_v15 }
  0xc6   : > { %611 = vst.msk [vmem:[#allocation2 + $0x28] sm:$0xf] %vm608_vm0, %v596_v20  ;;  %612 = vst.msk [vmem:[#allocation2 + $0x30] sm:$0xf] %vm608_vm0, %v603_v21 }
  0xc7   : > { %609 = vst.msk [vmem:[#allocation2 + $0x8] sm:$0xf] %vm608_vm0, %v582_v22  ;;  %610 = vst.msk [vmem:[#allocation2 + $0x10] sm:$0xf] %vm608_vm0, %v589_v23  ;;  %vm1055_vm0 = vcmask 523264  }
  0xcd   : > { %v618_v26 = vld [vmem:[#allocation2 + $0x28] ss:$8 sps:$4 sm:$0xff]  }
  0xce   : > { %v614_v27 = vld [vmem:[#allocation2 + $0x8] ss:$8 sps:$4 sm:$0xff]   ;;  %v626_v32 = vunpack.c.l.bf16 %v618_v26  ;;  %v627_v33 = vunpack.c.h.bf16 %v618_v26 }
  0xcf   : > { %v622_v34 = vunpack.c.l.bf16 %v614_v27  ;;  %v623_v35 = vunpack.c.h.bf16 %v614_v27 }
  0xd0   : > { %v7836_v36 = vpack.i.bf16 %v627_v33, %v626_v32 }
  0xd1   : > { %v7830_v37 = vpack.i.bf16 %v623_v35, %v622_v34 }
  0xd2   : > { %7837 = vperm.xlu1 %7835, %v7836_v36  }
  0xd3   : > { %7831 = vperm.xlu0 %7829, %v7830_v37  }
  0xd6   : > { %7842 = vperm.xlu1 %7835, %v7841_v39  }
  0xd7   : > { %7847 = vperm.xlu0 %7829, %v7846_v38  }
 0x14d   : > { %v7838_v50 = vpop.permute.xlu1 %7837 }
 0x14e   : > { %v7832_v51 = vpop.permute.xlu0 %7831  ;;  %v7840_v53 = vunpack.i.h.bf16 %v7838_v50  ;;  %v8829_v54 = vunpack.i.l.bf16 %v7838_v50 }
 0x14f   : > { %v7834_v55 = vunpack.i.h.bf16 %v7832_v51  ;;  %v8831_v56 = vunpack.i.l.bf16 %v7832_v51 }
 0x150   : > { %v668_v63 = vmul.f32 %v8829_v54, %v8827_v52  ;;  %v669_v0 = vmul.f32 %v7840_v53, %v8827_v52  ;;  %v686_v2 = vmul.f32 %v7840_v53, %v8836_v57  ;;  %v724_v6 = vmul.f32 %v7840_v53, %v6677_v58 }
 0x151   : > { %v665_v61 = vmul.f32 %v8831_v56, %v8827_v52  ;;  %v666_v62 = vmul.f32 %v7834_v55, %v8827_v52  ;;  %v683_v1 = vmul.f32 %v7834_v55, %v8836_v57  ;;  %v722_v3 = vmul.f32 %v7834_v55, %v6677_v58 }
 0x152   : > { %v8860_v7 = vmul.f32 %v7834_v55, %v8844_v59  ;;  %v8863_v8 = vmul.f32 %v7840_v53, %v8844_v59  ;;  %v8866_v9 = vmul.f32 %v7834_v55, %v8849_v60  ;;  %v8869_v10 = vmul.f32 %v7840_v53, %v8849_v60  ;;  %v7848_v11 = vpop.permute.xlu0 %7847  ;;  %v6680_v55 = vld [vmem:[%s9870_s2] ss:$0 sm:$0xff] }
 0x153   : > { %v697_v12 = vrot.slane %v683_v1, 1  ;;  %v702_v13 = vrot.slane %v686_v2, 1  ;;  %v731_v14 = vrot.slane %v722_v3, 2  ;;  %v734_v15 = vrot.slane %v724_v6, 2 }
 0x154   : > { %v777_v16 = vrot.slane %v8860_v7, 3  ;;  %v782_v17 = vrot.slane %v8863_v8, 3  ;;  %v817_v18 = vrot.slane %v8866_v9, 4  ;;  %v822_v19 = vrot.slane %v8869_v10, 4 }
 0x155   : > { %v712_v20 = vadd.f32 %v697_v12, %v666_v62  ;;  %v715_v21 = vadd.f32 %v702_v13, %v669_v0  ;;  %v7850_v22 = vunpack.i.h.bf16 %v7848_v11  ;;  %v7849_v23 = vunpack.i.l.bf16 %v7848_v11  ;;  %v7843_v0 = vpop.permute.xlu1 %7842 }
 0x156   : > { %v8877_v24 = vmul.f32 %v8831_v56, %v8836_v57  ;;  %v8881_v25 = vmul.f32 %v8829_v54, %v8836_v57  ;;  %v8884_v26 = vmul.f32 %v8831_v56, %v6677_v58  ;;  %v8887_v27 = vmul.f32 %v8829_v54, %v6677_v58 }
 0x157   : > { %v744_v28 = vadd.f32 %v731_v14, %v712_v20  ;;  %v747_v29 = vadd.f32 %v734_v15, %v715_v21  ;;  %v768_v30 = vmul.f32 %v7850_v22, %v8844_v59  ;;  %v808_v31 = vmul.f32 %v7850_v22, %v8849_v60 }
 0x158   : > { %v765_v32 = vmul.f32 %v7849_v23, %v8844_v59  ;;  %v805_v33 = vmul.f32 %v7849_v23, %v8849_v60  ;;  %v695_v34 = vrot.slane %v8877_v24, 1  ;;  %v700_v35 = vrot.slane %v8881_v25, 1 }
 0x159   : > { %v784_v36 = vrot.slane %v768_v30, 3  ;;  %v824_v37 = vrot.slane %v808_v31, 4  ;;  %v730_v38 = vrot.slane %v8884_v26, 2  ;;  %v733_v39 = vrot.slane %v8887_v27, 2 }
 0x15a   : > { %v779_v40 = vrot.slane %v765_v32, 3  ;;  %v819_v41 = vrot.slane %v805_v33, 4  ;;  %v698_v42 = vsel %vm693_vm1, %v695_v34, %v697_v12  ;;  %v703_v43 = vsel %vm693_vm1, %v700_v35, %v702_v13 }
 0x15b   : > { %v785_v44 = vsel %vm775_vm2, %v782_v17, %v784_v36  ;;  %v711_v45 = vadd.f32 %v698_v42, %v665_v61  ;;  %v714_v46 = vadd.f32 %v703_v43, %v668_v63  ;;  %v825_v50 = vsel %vm815_vm4, %v822_v19, %v824_v37 }
 0x15c   : > { %v797_v47 = vadd.f32 %v785_v44, %v747_v29  ;;  %v780_v51 = vsel %vm775_vm2, %v777_v16, %v779_v40  ;;  %v820_v53 = vsel %vm815_vm4, %v817_v18, %v819_v41  ;;  %v732_v62 = vsel %vm729_vm3, %v730_v38, %v731_v14 }
 0x15d   : > { %v794_v58 = vadd.f32 %v780_v51, %v744_v28  ;;  %v735_v61 = vsel %vm729_vm3, %v733_v39, %v734_v15  ;;  %v763_v63 = vmul.f32 %v8831_v56, %v8844_v59  ;;  %v743_v2 = vadd.f32 %v732_v62, %v711_v45 }
 0x15e   : > { %v837_v1 = vadd.f32 %v825_v50, %v797_v47  ;;  %v766_v3 = vmul.f32 %v8829_v54, %v8844_v59  ;;  %v803_v6 = vmul.f32 %v8831_v56, %v8849_v60  ;;  %v746_v8 = vadd.f32 %v735_v61, %v714_v46 }
 0x15f   : > { %v834_v7 = vadd.f32 %v820_v53, %v794_v58  ;;  %v776_v9 = vrot.slane %v763_v63, 3  ;;  %v806_v11 = vmul.f32 %v8829_v54, %v8849_v60  ;;  %v7845_v15 = vunpack.i.h.bf16 %v7843_v0 }
 0x160   : > { %v8924_v12 = vadd.f32 %v6680_v55, %v837_v1  ;;  %v781_v13 = vrot.slane %v766_v3, 3  ;;  %v816_v14 = vrot.slane %v803_v6, 4  ;;  %v7844_v23 = vunpack.i.l.bf16 %v7843_v0 }
 0x161   : > { %v847_v20 = vadd.f32 %v6680_v55, %v834_v7  ;;  %v778_v21 = vsel %vm775_vm2, %v776_v9, %v777_v16  ;;  %v821_v22 = vrot.slane %v806_v11, 4  ;;  %v684_v32 = vmul.f32 %v7845_v15, %v8836_v57 }
 0x162   : > { %v862_v59 = vmin.f32 %v8924_v12, 0.0  ;;  %v783_v56 = vsel %vm775_vm2, %v781_v13, %v782_v17  ;;  %v793_v25 = vadd.f32 %v778_v21, %v743_v2  ;;  %v818_v30 = vsel %vm815_vm4, %v816_v14, %v817_v18 }
 0x163   : > { %v859_v28 = vmin.f32 %v847_v20, 0.0  ;;  %v796_v29 = vadd.f32 %v783_v56, %v746_v8  ;;  %v823_v60 = vsel %vm815_vm4, %v821_v22, %v822_v19  ;;  %v681_v36 = vmul.f32 %v7844_v23, %v8836_v57 }
 0x164   : > { %v873_v54 = vmul.f32 1.442695, %v862_v59  ;;  %v833_v31 = vadd.f32 %v818_v30, %v793_v25  ;;  %v699_v17 = vrot.slane %v684_v32, 1  ;;  %v667_v41 = vmul.f32 %v7845_v15, %v8827_v52 }
 0x165   : > { %v867_v16 = vmul.f32 1.442695, %v859_v28  ;;  %v836_v33 = vadd.f32 %v823_v60, %v796_v29  ;;  %v694_v18 = vrot.slane %v681_v36, 1  ;;  %v664_v19 = vmul.f32 %v7844_v23, %v8827_v52 }
 0x166   : > { %8357 = vpow2.f32 %v873_v54  ;;  %v846_v37 = vadd.f32 %v6680_v55, %v833_v31  ;;  %v701_v10 = vsel %vm693_vm1, %v699_v17, %v700_v35  ;;  %vm853_vm5 = vcmp.gt.f32.partialorder %v847_v20, 0.0 }
 0x167   : > { %8359 = vpow2.f32 %v867_v16  ;;  %v849_v40 = vadd.f32 %v6680_v55, %v836_v33  ;;  %v713_v44 = vadd.f32 %v701_v10, %v667_v41  ;;  %v696_v45 = vsel %vm693_vm1, %v694_v18, %v695_v34  ;;  %v933_v41 = vld [vmem:[#allocation3] sm:$0x8] }
 0x168   : > { %v858_v42 = vmin.f32 %v846_v37, 0.0  ;;  %v710_v46 = vadd.f32 %v696_v45, %v664_v19  ;;  %vm856_vm6 = vcmp.gt.f32.partialorder %v8924_v12, 0.0  ;;  %vm852_vm7 = vcmp.gt.f32.partialorder %v846_v37, 0.0  ;;  %v936_v10 = vld [vmem:[#allocation3 + $0x20] sm:$0x8] }
 0x169   : > { %v861_v43 = vmin.f32 %v849_v40, 0.0  ;;  %v745_v50 = vadd.f32 %v733_v39, %v713_v44  ;;  %vm855_vm8 = vcmp.gt.f32.partialorder %v849_v40, 0.0  ;;  %v973_v44 = vshrl.u32 %v933_v41, 16 }
 0x16a   : > { %v865_v57 = vmul.f32 1.442695, %v858_v42  ;;  %v742_v51 = vadd.f32 %v730_v38, %v710_v46  ;;  %v995_v45 = vshrl.u32 %v936_v10, 16  ;;  %v8971_v46 = vld [vmem:[#allocation3 + $0x18] sm:$0x1] }
 0x16b   : > { %v871_v47 = vmul.f32 1.442695, %v861_v43  ;;  %v795_v35 = vadd.f32 %v781_v13, %v745_v50 }
 0x16c   : > { %8361 = vpow2.f32 %v865_v57  ;;  %v792_v53 = vadd.f32 %v776_v9, %v742_v51  ;;  %v1325_v51 = vshll.u32 %v8971_v46, 16 }
 0x16d   : > { %8363 = vpow2.f32 %v871_v47  ;;  %v835_v52 = vadd.f32 %v821_v22, %v795_v35 }
 0x16e   : > { %v832_v58 = vadd.f32 %v816_v14, %v792_v53  ;;  %v6695_v53 = vrot.slane %v933_v41, 11 }
 0x16f   : > { %v848_v62 = vadd.f32 %v6680_v55, %v835_v52 }
 0x170   : > { %v845_v61 = vadd.f32 %v6680_v55, %v832_v58 }
 0x171   : > { %v860_v63 = vmin.f32 %v848_v62, 0.0  ;;  %vm854_vm13 = vcmp.gt.f32.partialorder %v848_v62, 0.0 }
 0x172   : > { %v857_v0 = vmin.f32 %v845_v61, 0.0  ;;  %vm851_vm14 = vcmp.gt.f32.partialorder %v845_v61, 0.0 }
 0x173   : > { %v8358_v24 = vpop.eup %8357  ;;  %v869_v1 = vmul.f32 1.442695, %v860_v63 }
 0x174   : > { %v8360_v34 = vpop.eup %8359  ;;  %v863_v3 = vmul.f32 1.442695, %v857_v0  ;;  %v6686_v27 = vadd.f32 -1.0, %v8358_v24  ;;  %v6697_v0 = vrot.slane %v973_v44, 11 }
 0x175   : > { %v6683_v2 = vadd.f32 -1.0, %v8360_v34  ;;  %8365 = vpow2.f32 %v869_v1 }
 0x176   : > { %8367 = vpow2.f32 %v863_v3  ;;  %v886_v7 = vsel %vm856_vm6, %v8924_v12, %v6686_v27  ;;  %vm1302_vm6 = vsmask.f32 3328 }
 0x177   : > { %v883_v38 = vsel %vm853_vm5, %v847_v20, %v6683_v2  ;;  %v7348_v14 = vpack.c.bf16 %v886_v7, %v886_v7  ;;  %vm970_vm5 = vsmask.f32 4368  ;;  %v6698_v2 = vrot.slane %v995_v45, 11 }
 0x178   : > { %v7345_v9 = vpack.c.bf16 %v883_v38, %v883_v38 }
 0x179   : > { %v8362_v39 = vpop.eup %8361  ;;  %v922_v12 = vrot.slane %v7348_v14, 7 }
 0x17a   : > { %v8364_v26 = vpop.eup %8363  ;;  %v6682_v6 = vadd.f32 -1.0, %v8362_v39  ;;  %v915_v23 = vrot.slane %v7345_v9, 7  ;;  %v8982_v39 = vrot.slane %v1325_v51, 5 }
 0x17b   : > { %v6685_v55 = vadd.f32 -1.0, %v8364_v26 }
 0x17c   : > { %v882_v8 = vsel %vm852_vm7, %v846_v37, %v6682_v6  ;;  %vm1303_vm7 = vsmask.f32 7440 }
 0x17d   : > { %v885_v11 = vsel %vm855_vm8, %v849_v40, %v6685_v55  ;;  %v7344_v13 = vpack.c.bf16 %v882_v8, %v882_v8  ;;  %vm8998_vm8 = vmor %vm969_vm15, %vm970_vm5 }
 0x17e   : > { %v7347_v15 = vpack.c.bf16 %v885_v11, %v885_v11  ;;  %vm9021_vm9 = vmor %vm1302_vm6, %vm1303_vm7 }
 0x17f   : > { %v912_v21 = vrot.slane %v7344_v13, 7 }
 0x180   : > { %v919_v20 = vrot.slane %v7347_v15, 7 }
 0x181   : > { %v914_v59 = vrot.slane %v912_v21, 4 }
 0x182   : > { %v921_v56 = vrot.slane %v919_v20, 4  ;;  %v8366_v28 = vpop.eup %8365 }
 0x183   : > { %v916_v25 = vsel %vm8947_vm11, %v914_v59, %v915_v23  ;;  %v8368_v30 = vpop.eup %8367  ;;  %v6684_v54 = vadd.f32 -1.0, %v8366_v28 }
 0x184   : > { %v923_v29 = vsel %vm8947_vm11, %v921_v56, %v922_v12  ;;  %930 = vst.msk [vmem:[#allocation3 + $0x10] sm:$0xf] %vm928_vm12, %v916_v25  ;;  %v6681_v60 = vadd.f32 -1.0, %v8368_v30 }
 0x185   : > { %932 = vst.msk [vmem:[#allocation3 + $0x30] sm:$0xf] %vm928_vm12, %v923_v29  ;;  %v884_v31 = vsel %vm854_vm13, %v848_v62, %v6684_v54  ;;  %v6696_v62 = vrot.slane %v936_v10, 11  ;;  %vm1460_vm13 = vcmask 1046532   ;;  %v8337_v54 = vld [vmem:[%s9879_s11 + $0xa8] sm:$0xff]  }
 0x186   : > { %v7346_v32 = vpack.c.bf16 %v884_v31, %v884_v31  ;;  %v881_v16 = vsel %vm851_vm14, %v845_v61, %v6681_v60  ;;  %vm9057_vm14 = vmor %vm1459_vm10, %vm1460_vm13 }
 0x187   : > { %v7343_v33 = vpack.c.bf16 %v881_v16, %v881_v16 }
 0x188   : > { %v6694_v36 = vrot.slane %v7346_v32, 11 }
 0x189   : > { %v6693_v37 = vrot.slane %v7343_v33, 11 }
 0x18a   : > { %v920_v40 = vsel %vm8947_vm11, %v6694_v36, %v919_v20 }
 0x18b   : > { %v8957_v17 = vld [vmem:[#allocation3 + $0x10] sm:$0xf]  ;;  %931 = vst.msk [vmem:[#allocation3 + $0x28] sm:$0xf] %vm928_vm12, %v920_v40  ;;  %v913_v42 = vsel %vm8947_vm11, %v6693_v37, %v912_v21 }
 0x18c   : > { %v987_v18 = vshrl.u32 %v8957_v17, 16  ;;  %v8965_v19 = vld [vmem:[#allocation3 + $0x30] sm:$0xf]  ;;  %929 = vst.msk [vmem:[#allocation3 + $0x8] sm:$0xf] %vm928_vm12, %v913_v42  ;;  %v990_v1 = vshll.u32 %v8957_v17, 16 }
 0x18d   : > { %v8967_v43 = vld [vmem:[#allocation3 + $0x10] sm:$0xf]  ;;  %v1009_v57 = vshrl.u32 %v8965_v19, 16  ;;  %v1012_v27 = vshll.u32 %v8965_v19, 16 }
 0x18e   : > { %v1315_v47 = vshll.u32 %v8967_v43, 16  ;;  %v1319_v50 = vshrl.u32 %v8967_v43, 16  ;;  %v935_v35 = vld [vmem:[#allocation3 + $0x10] sm:$0x7]  ;;  %v989_v58 = vrot.slane %v987_v18, 7 }
 0x18f   : > { %v938_v52 = vld [vmem:[#allocation3 + $0x30] sm:$0x7]  ;;  %v1011_v61 = vrot.slane %v1009_v57, 7  ;;  %v950_v3 = vrot.slane %v935_v35, 7 }
 0x190   : > { %v8976_v24 = vrot.slane %v1315_v47, 5  ;;  %v1321_v63 = vrot.slane %v1319_v50, 4  ;;  %v8978_v34 = vld [vmem:[#allocation3 + $0x30] sm:$0xf]  ;;  %v957_v38 = vrot.slane %v938_v52, 7  ;;  %v992_v6 = vor.u32 %v990_v1, %v989_v58 }
 0x191   : > { %v1339_v7 = vshll.u32 %v8978_v34, 16  ;;  %v1343_v55 = vshrl.u32 %v8978_v34, 16  ;;  %v1014_v13 = vor.u32 %v1012_v27, %v1011_v61  ;;  %v7862_v35 = vld [vmem:[%s9871_s3 + $0x70] sm:$0xff]  }
 0x192   : > { %v8984_v26 = vld [vmem:[#allocation3 + $0x28] sm:$0xf]  ;;  %v1322_v14 = vor.u32 %v1321_v63, %v8976_v24 }
 0x193   : > { %v934_v8 = vld [vmem:[#allocation3 + $0x8] sm:$0xf]  ;;  %v954_v9 = vrot.slane %v8984_v26, 7  ;;  %v1000_v11 = vshrl.u32 %v8984_v26, 16  ;;  %v1003_v23 = vshll.u32 %v8984_v26, 16  ;;  %v1341_v1 = vrot.slane %v1339_v7, 5 }
 0x194   : > { %v947_v15 = vrot.slane %v934_v8, 7  ;;  %v978_v21 = vshrl.u32 %v934_v8, 16  ;;  %v981_v20 = vshll.u32 %v934_v8, 16  ;;  %v1296_v59 = vld [vmem:[#allocation3 + $0x8] sm:$0xf] }
 0x195   : > { %v955_v12 = vsel %vm8947_vm11, %v6696_v62, %v954_v9  ;;  %v956_v56 = vrot.slane %v954_v9, 4  ;;  %v1002_v25 = vrot.slane %v1000_v11, 7  ;;  %v1306_v28 = vshrl.u32 %v1296_v59, 16  ;;  %v1299_v42 = vld [vmem:[#allocation3 + $0x28] sm:$0xf] }
 0x196   : > { %v948_v29 = vsel %vm8947_vm11, %v6695_v53, %v947_v15  ;;  %v949_v30 = vrot.slane %v947_v15, 4  ;;  %v980_v60 = vrot.slane %v978_v21, 7  ;;  %v1309_v31 = vshll.u32 %v1296_v59, 16  ;;  %v7864_v9 = vld [vmem:[%s9871_s3 + $0x68] sm:$0xff]   ;;  %v1301_v11 = vld [vmem:[#allocation3 + $0x38] sm:$0x1] }
 0x197   : > { %v958_v32 = vsel %vm8947_vm11, %v956_v56, %v957_v38  ;;  %v1005_v16 = vor.u32 %v1003_v23, %v1002_v25  ;;  %v1007_v33 = vrot.slane %v1002_v25, 4  ;;  %v1308_v36 = vrot.slane %v1306_v28, 4  ;;  %v1451_v15 = vld [vmem:[#allocation3 + $0x8] sm:$0xe]  ;;  %v7867_v21 = vld [vmem:[%s9871_s3 + $0x40] sm:$0xff]   ;;  %v7869_v28 = vld [vmem:[%s9871_s3 + $0x98] sm:$0xff]  }
 0x198   : > { %v951_v37 = vsel %vm8947_vm11, %v949_v30, %v950_v3  ;;  %v6716_v40 = vcombine.low %v955_v12, %v958_v32  ;;  %v983_v41 = vor.u32 %v981_v20, %v980_v60  ;;  %v985_v18 = vrot.slane %v980_v60, 4  ;;  %v7870_v32 = vld [vmem:[%s9871_s3 + $0x90] sm:$0xff]  }
 0x199   : > { %v6715_v10 = vcombine.low %v948_v29, %v951_v37  ;;  %v1006_v44 = vsel %vm8998_vm8, %v6698_v2, %v1005_v16  ;;  %v1015_v45 = vsel %vm8998_vm8, %v1007_v33, %v1014_v13  ;;  %v1311_v57 = vrot.slane %v1309_v31, 5  ;;  %v9076_v33 = vld [vmem:[#allocation2] sm:$0xff] }
 0x19a   : > { %v984_v47 = vsel %vm8998_vm8, %v6697_v0, %v983_v41  ;;  %v993_v50 = vsel %vm8998_vm8, %v985_v18, %v992_v6  ;;  %v6708_v51 = vcombine.low %v1006_v44, %v1015_v45  ;;  %v1323_v53 = vrot.slane %v1322_v14, 4  ;;  %v7863_v0 = vld [vmem:[%s9871_s3 + $0x50] sm:$0xff]   ;;  %v7872_v37 = vld [vmem:[%s9871_s3 + $0x80] sm:$0xff]  }
 0x19b   : > { %7610 = vmatprep.mubr.msk.bf16.mxu1 %vm1055_vm0, %v6715_v10  ;;  %v6707_v52 = vcombine.low %v984_v47, %v993_v50  ;;  %v1312_v58 = vor.u32 %v1311_v57, %v1308_v36  ;;  %v1330_v62 = vshrl.u32 %v1299_v42, 16  ;;  %v1333_v61 = vshll.u32 %v1299_v42, 16  ;;  %v1452_v36 = vld [vmem:[#allocation3 + $0x28] sm:$0xe]  ;;  %v7875_v44 = vld [vmem:[#allocation5 + $0x74] ss:$8 sps:$4 sm:$0xff]  }
 0x19c   : > { %7611 = vmatmul.mubr.msk.bf16.vlgmr.msra.gmra.mxu1 %vm1055_vm0, %v6716_v40  ;;  %v1345_v2 = vrot.slane %v1343_v55, 4  ;;  %v6731_v3 = vcombine.low %v934_v8, %v8957_v17  ;;  %v1328_v17 = vsel %vm9021_vm9, %v1323_v53, %v8982_v39  ;;  %v7865_v8 = vld [vmem:[%s9871_s3 + $0x48] sm:$0xff]   ;;  %v1349_v13 = vshll.u32 %v1301_v11, 16  ;;  %v7873_v45 = vld [vmem:[#allocation5 + $0x70] ss:$8 sps:$4 sm:$0xff]  }
 0x19d   : > { %7627 = vmatpush3.bf16.msra.mxu1 %v8815_v48  ;;  %7598 = vmatprep.mubr.msk.bf16.mxu0 %vm1055_vm0, %v6707_v52  ;;  %v1313_v27 = vrot.slane %v1312_v58, 4  ;;  %v1332_v38 = vrot.slane %v1330_v62, 4  ;;  %v1335_v6 = vrot.slane %v1333_v61, 5  ;;  %v1464_v39 = vrot.slane %v8967_v43, 5  ;;  %v7878_v57 = vld [vmem:[#allocation5 + $0xf4] ss:$8 sps:$4 sm:$0xff]  }
 0x19e   : > { %7599 = vmatmul.mubr.msk.bf16.vlgmr.msra.gmra.mxu0 %vm1055_vm0, %v6708_v51  ;;  %7628 = vmatprep.subr.bf16.mxu1 %v7862_v35  ;;  %v1351_v23 = vrot.slane %v1349_v13, 5  ;;  %v6755_v59 = vrot.slane %v1451_v15, 9  ;;  %v1467_v56 = vrot.slane %v8971_v46, 5  ;;  %v6732_v31 = vcombine.low %v8984_v26, %v8965_v19  ;;  %v7871_v19 = vld [vmem:[%s9871_s3 + $0x88] sm:$0xff]   ;;  %v7876_v50 = vld [vmem:[#allocation5 + $0xf0] ss:$8 sps:$4 sm:$0xff]  }
 0x19f   : > { %7615 = vmatpush3.bf16.msra.mxu0 %v8821_v49  ;;  %7622 = vmatprep.mubr.msk.bf16.mxu0 %vm1055_vm0, %v6731_v3  ;;  %v1318_v48 = vsel %vm9021_vm9, %v1313_v27, %v8976_v24  ;;  %v1336_v7 = vor.u32 %v1335_v6, %v1332_v38  ;;  %v1346_v49 = vor.u32 %v1345_v2, %v1341_v1  ;;  %v7866_v24 = vld [vmem:[%s9871_s3 + $0x60] sm:$0xff]   ;;  %v1466_v12 = vrot.slane %v1464_v39, 4  ;;  %v7885_v58 = vld [vmem:[#allocation5 + $0x50] ss:$8 sps:$4 sm:$0xff]  }
 0x1a0   : > { %v6747_v55 = vcombine.low %v1318_v48, %v1328_v17  ;;  %7616 = vmatprep.subr.bf16.mxu0 %v7863_v0  ;;  %v1465_v46 = vsel %vm9057_vm14, %v6755_v59, %v1464_v39  ;;  %v1471_v26 = vrot.slane %v8978_v34, 5  ;;  %v6756_v40 = vrot.slane %v1452_v36, 9  ;;  %v7881_v47 = vld [vmem:[#allocation5 + $0x64] ss:$8 sps:$4 sm:$0xff]   ;;  %v7879_v51 = vld [vmem:[#allocation5 + $0x60] ss:$8 sps:$4 sm:$0xff]  }
 0x1a1   : > { %7629 = vmatpush3.bf16.msra.mxu1 %v7862_v35  ;;  %v1337_v14 = vrot.slane %v1336_v7, 4  ;;  %v1347_v20 = vrot.slane %v1346_v49, 4  ;;  %v1468_v60 = vsel %vm9057_vm14, %v1466_v12, %v1467_v56  ;;  %v1474_v18 = vrot.slane %v1301_v11, 5  ;;  %v7884_v35 = vld [vmem:[#allocation5 + $0xe4] ss:$8 sps:$4 sm:$0xff]  }
 0x1a2   : > { %7634 = vmatprep.mubr.msk.bf16.mxu1 %vm1055_vm0, %v6747_v55  ;;  %7630 = vmatprep.subr.bf16.mxu1 %v7864_v9  ;;  %v6765_v16 = vcombine.low %v1465_v46, %v1468_v60  ;;  %v1473_v41 = vrot.slane %v1471_v26, 4  ;;  %v1472_v42 = vsel %vm9057_vm14, %v6756_v40, %v1471_v26  ;;  %v7887_v53 = vld [vmem:[#allocation5 + $0x54] ss:$8 sps:$4 sm:$0xff]   ;;  %v7882_v52 = vld [vmem:[#allocation5 + $0xe0] ss:$8 sps:$4 sm:$0xff]  }
 0x1a3   : > { %7617 = vmatpush3.bf16.msra.mxu0 %v7863_v0  ;;  %v1342_v43 = vsel %vm9021_vm9, %v1337_v14, %v1341_v1  ;;  %v1352_v29 = vsel %vm9021_vm9, %v1347_v20, %v1351_v23  ;;  %v7890_v62 = vld [vmem:[#allocation5 + $0xd4] ss:$8 sps:$4 sm:$0xff]   ;;  %v7893_v61 = vld [vmem:[#allocation5 + $0x44] ss:$8 sps:$4 sm:$0xff]   ;;  %v7888_v0 = vld [vmem:[#allocation5 + $0xd0] ss:$8 sps:$4 sm:$0xff]  }
 0x1a4   : > { %7618 = vmatprep.subr.bf16.mxu0 %v7865_v8  ;;  %v6748_v30 = vcombine.low %v1342_v43, %v1352_v29  ;;  %v1475_v10 = vsel %vm9057_vm14, %v1473_v41, %v1474_v18  ;;  %v7891_v1 = vld [vmem:[#allocation5 + $0x40] ss:$8 sps:$4 sm:$0xff]   ;;  %v7896_v3 = vld [vmem:[#allocation5 + $0xc4] ss:$8 sps:$4 sm:$0xff]   ;;  %v7897_v27 = vld [vmem:[#allocation5 + $0x30] ss:$8 sps:$4 sm:$0xff]  }
 0x1a5   : > { %7631 = vmatpush3.bf16.msra.mxu1 %v7864_v9  ;;  %v6766_v34 = vcombine.low %v1472_v42, %v1475_v10  ;;  %v7894_v2 = vld [vmem:[#allocation5 + $0xc0] ss:$8 sps:$4 sm:$0xff]   ;;  %v7899_v38 = vld [vmem:[#allocation5 + $0x34] ss:$8 sps:$4 sm:$0xff]   ;;  %v7905_v9 = vld [vmem:[#allocation5 + $0x24] ss:$8 sps:$4 sm:$0xff]  }
 0x1a6   : > { %7632 = vmatprep.subr.bf16.mxu1 %v7866_v24  ;;  %v7902_v6 = vld [vmem:[#allocation5 + $0xb4] ss:$8 sps:$4 sm:$0xff]   ;;  %v7900_v48 = vld [vmem:[#allocation5 + $0xb0] ss:$8 sps:$4 sm:$0xff]   ;;  %v7903_v17 = vld [vmem:[#allocation5 + $0x20] ss:$8 sps:$4 sm:$0xff]  }
 0x1a7   : > { %7619 = vmatpush3.bf16.msra.mxu0 %v7865_v8  ;;  %v7908_v7 = vld [vmem:[#allocation5 + $0xa4] ss:$8 sps:$4 sm:$0xff]   ;;  %v7911_v55 = vld [vmem:[#allocation5 + $0x14] ss:$8 sps:$4 sm:$0xff]   ;;  %v7906_v8 = vld [vmem:[#allocation5 + $0xa0] ss:$8 sps:$4 sm:$0xff]  }
 0x1a8   : > { %7620 = vmatprep.subr.bf16.mxu0 %v7867_v21  ;;  %v7909_v11 = vld [vmem:[#allocation5 + $0x10] ss:$8 sps:$4 sm:$0xff]   ;;  %v7914_v49 = vld [vmem:[#allocation5 + $0x94] ss:$8 sps:$4 sm:$0xff]   ;;  %v7917_v13 = vld [vmem:[#allocation5 + $0x4] ss:$8 sps:$4 sm:$0xff]  }
 0x1a9   : > { %7633 = vmatpush3.bf16.msra.mxu1 %v7866_v24  ;;  %v7912_v24 = vld [vmem:[#allocation5 + $0x90] ss:$8 sps:$4 sm:$0xff]   ;;  %v7915_v39 = vld [vmem:[#allocation5] ss:$8 sps:$4 sm:$0xff]   ;;  %v7920_v14 = vld [vmem:[#allocation5 + $0x84] ss:$8 sps:$4 sm:$0xff]  }
 0x1aa   : > { %1822 = vmatprep.subr.bf16.mxu1 %v7878_v57  ;;  %v7923_v15 = vld [vmem:[#allocation5 + $0x1f4] ss:$8 sps:$4 sm:$0xff]  }
 0x1ab   : > { %7621 = vmatpush3.bf16.msra.mxu0 %v7867_v21  ;;  %v7918_v21 = vld [vmem:[#allocation5 + $0x80] ss:$8 sps:$4 sm:$0xff]   ;;  %v7926_v20 = vld [vmem:[#allocation5 + $0x174] ss:$8 sps:$4 sm:$0xff]  }
 0x1ac   : > { %7635 = vmatmul.mubr.msk.bf16.vlgmr.msra.gmra.mxu1 %vm1055_vm0, %v6748_v30  ;;  %7638 = vmatprep.subr.bf16.mxu0 %v7869_v28 }
 0x1ad   : > { %1854 = vmatprep.mubr.bf16.mxu1 %v9076_v33  ;;  %1823 = vmatpush1.bf16.msra.mxu1 %v7876_v50 }
 0x1ae   : > { %7623 = vmatmul.mubr.msk.bf16.vlgmr.msra.gmra.mxu0 %vm1055_vm0, %v6732_v31  ;;  %1824 = vmatprep.subr.bf16.mxu1 %v7884_v35 }
 0x1af   : > { %7639 = vmatpush3.bf16.msra.mxu0 %v7869_v28  ;;  %7646 = vmatprep.mubr.msk.bf16.mxu0 %vm1055_vm0, %v6765_v16 }
 0x1b0   : > { %7640 = vmatprep.subr.bf16.mxu0 %v7870_v32 }
 0x1b1   : > { %1825 = vmatpush1.bf16.msra.mxu1 %v7882_v52 }
 0x1b2   : > { %1826 = vmatprep.subr.bf16.mxu1 %v7890_v62 }
 0x1b3   : > { %7641 = vmatpush3.bf16.msra.mxu0 %v7870_v32 }
 0x1b4   : > { %7642 = vmatprep.subr.bf16.mxu0 %v7871_v19 }
 0x1b5   : > { %1827 = vmatpush1.bf16.msra.mxu1 %v7888_v0 }
 0x1b6   : > { %1828 = vmatprep.subr.bf16.mxu1 %v7896_v3 }
 0x1b7   : > { %7643 = vmatpush3.bf16.msra.mxu0 %v7871_v19 }
 0x1b8   : > { %7644 = vmatprep.subr.bf16.mxu0 %v7872_v37 }
 0x1b9   : > { %1829 = vmatpush1.bf16.msra.mxu1 %v7894_v2 }
 0x1ba   : > { %1830 = vmatprep.subr.bf16.mxu1 %v7902_v6 }
 0x1bb   : > { %7645 = vmatpush3.bf16.msra.mxu0 %v7872_v37 }
 0x1bc   : > { %1963 = vmatprep.subr.bf16.mxu0 %v7875_v44  ;;  %v6773_v44 = vld [vmem:[%s9872_s4] ss:$0 sm:$0xff] }
 0x1bd   : > { %1831 = vmatpush1.bf16.msra.mxu1 %v7900_v48 }
 0x1be   : > { %7647 = vmatmul.mubr.msk.bf16.vlgmr.msra.gmra.mxu0 %vm1055_vm0, %v6766_v34  ;;  %1832 = vmatprep.subr.bf16.mxu1 %v7908_v7 }
 0x1bf   : > { %1995 = vmatprep.mubr.bf16.mxu0 %v9076_v33  ;;  %1964 = vmatpush1.bf16.msra.mxu0 %v7873_v45 }
 0x1c0   : > { %1965 = vmatprep.subr.bf16.mxu0 %v7881_v47 }
 0x1c1   : > { %1833 = vmatpush1.bf16.msra.mxu1 %v7906_v8 }
 0x1c2   : > { %1834 = vmatprep.subr.bf16.mxu1 %v7914_v49 }
 0x1c3   : > { %1966 = vmatpush1.bf16.msra.mxu0 %v7879_v51 }
 0x1c4   : > { %1967 = vmatprep.subr.bf16.mxu0 %v7887_v53 }
 0x1c5   : > { %1835 = vmatpush1.bf16.msra.mxu1 %v7912_v24 }
 0x1c6   : > { %1836 = vmatprep.subr.bf16.mxu1 %v7920_v14 }
 0x1c7   : > { %1968 = vmatpush1.bf16.msra.mxu0 %v7885_v58 }
 0x1c8   : > { %1969 = vmatprep.subr.bf16.mxu0 %v7893_v61 }
 0x1c9   : > { %1837 = vmatpush1.bf16.msra.mxu1 %v7918_v21 }
 0x1ca   : > { %2123 = vmatprep.subr.bf16.mxu1 %v7926_v20 }
 0x1cb   : > { %1970 = vmatpush1.bf16.msra.mxu0 %v7891_v1 }
 0x1cc   : > { %1971 = vmatprep.subr.bf16.mxu0 %v7899_v38 }
 0x1cf   : > { %1972 = vmatpush1.bf16.msra.mxu0 %v7897_v27 }
 0x1d0   : > { %1973 = vmatprep.subr.bf16.mxu0 %v7905_v9 }
 0x1d3   : > { %1974 = vmatpush1.bf16.msra.mxu0 %v7903_v17 }
 0x1d4   : > { %1975 = vmatprep.subr.bf16.mxu0 %v7911_v55 }
 0x1d7   : > { %1976 = vmatpush1.bf16.msra.mxu0 %v7909_v11 }
 0x1d8   : > { %1977 = vmatprep.subr.bf16.mxu0 %v7917_v13 }
 0x1db   : > { %1978 = vmatpush1.bf16.msra.mxu0 %v7915_v39 }
 0x1dc   : > { %2343 = vmatprep.subr.bf16.mxu0 %v7923_v15 }
 0x25c   : > { %v7612_v12 = vpop.f32.mrf.mxu1 }
 0x25e   : > { %v7600_v23 = vpop.f32.mrf.mxu0  ;;  %v1181_v43 = vpop.f32.mrf.mxu1 }
 0x25f   : > { %v1190_v31 = vadd.f32 %v7612_v12, %v7600_v23 }
 0x260   : > { %v1096_v59 = vpop.f32.mrf.mxu0  ;;  %v7613_v30 = vpop.f32.mrf.mxu1 }
 0x261   : > { %v1182_v19 = vadd.f32 %v1181_v43, %v1096_v59 }
 0x262   : > { %v7601_v56 = vpop.f32.mrf.mxu0  ;;  %v1184_v60 = vpop.f32.mrf.mxu1 }
 0x263   : > { %v1193_v36 = vadd.f32 %v7613_v30, %v7601_v56 }
 0x264   : > { %v1099_v28 = vpop.f32.mrf.mxu0 }
 0x265   : > { %v1185_v10 = vadd.f32 %v1184_v60, %v1099_v28 }
 0x26c   : > { %v7636_v32 = vpop.f32.mrf.mxu1 }
 0x26e   : > { %v7624_v29 = vpop.f32.mrf.mxu0  ;;  %v1432_v37 = vpop.f32.mrf.mxu1 }
 0x26f   : > { %v1294_v26 = vadd.f32 %v7624_v29, %v1190_v31 }
 0x270   : > { %v1277_v46 = vpop.f32.mrf.mxu0  ;;  %v7637_v45 = vpop.f32.mrf.mxu1 }
 0x271   : > { %v1292_v40 = vadd.f32 %v1277_v46, %v1182_v19  ;;  %v1449_v42 = vadd.f32 %v7636_v32, %v1294_v26  ;;  %v1629_v46 = vld [vmem:[#allocation2] sm:$0x8] }
 0x272   : > { %v7625_v16 = vpop.f32.mrf.mxu0  ;;  %v1435_v62 = vpop.f32.mrf.mxu1  ;;  %v1674_v19 = vshrl.u32 %v1629_v46, 16 }
 0x273   : > { %v1295_v18 = vadd.f32 %v7625_v16, %v1193_v36  ;;  %v1447_v47 = vadd.f32 %v1432_v37, %v1292_v40  ;;  %v6782_v16 = vrot.slane %v1629_v46, 11 }
 0x274   : > { %v1280_v41 = vpop.f32.mrf.mxu0 }
 0x275   : > { %v1293_v50 = vadd.f32 %v1280_v41, %v1185_v10  ;;  %v1450_v52 = vadd.f32 %v7637_v45, %v1295_v18 }
 0x277   : > { %v1448_v2 = vadd.f32 %v1435_v62, %v1293_v50 }
 0x27e   : > { %v7648_v34 = vpop.f32.mrf.mxu0 }
 0x27f   : > { %v1572_v57 = vadd.f32 %v7648_v34, %v1449_v42 }
 0x280   : > { %v1555_v51 = vpop.f32.mrf.mxu0 }
 0x281   : > { %v1583_v35 = vadd.f32 %v6773_v44, %v1572_v57  ;;  %v1570_v53 = vadd.f32 %v1555_v51, %v1447_v47  ;;  %v6784_v57 = vrot.slane %v1674_v19, 11 }
 0x282   : > { %v7649_v58 = vpop.f32.mrf.mxu0 }
 0x283   : > { %v1591_v61 = vmin.f32 %v1583_v35, 0.0  ;;  %v1581_v0 = vadd.f32 %v6773_v44, %v1570_v53  ;;  %v1573_v1 = vadd.f32 %v7649_v58, %v1450_v52  ;;  %vm1587_vm15 = vcmp.gt.f32.partialorder %v1583_v35, 0.0 }
 0x284   : > { %v1558_v3 = vpop.f32.mrf.mxu0 }
 0x285   : > { %v1597_v27 = vmul.f32 1.442695, %v1591_v61  ;;  %v1589_v38 = vmin.f32 %v1581_v0, 0.0  ;;  %v1584_v6 = vadd.f32 %v6773_v44, %v1573_v1  ;;  %v1571_v9 = vadd.f32 %v1558_v3, %v1448_v2  ;;  %v1632_v61 = vld [vmem:[#allocation2 + $0x20] sm:$0x8] }
 0x286   : > { %vm1585_vm5 = vcmp.gt.f32.partialorder %v1581_v0, 0.0  ;;  %v7929_v1 = vld [vmem:[#allocation5 + $0x1e4] ss:$8 sps:$4 sm:$0xff]  }
 0x287   : > { %8369 = vpow2.f32 %v1597_v27  ;;  %v1593_v48 = vmul.f32 1.442695, %v1589_v38  ;;  %v1592_v17 = vmin.f32 %v1584_v6, 0.0  ;;  %v1582_v7 = vadd.f32 %v6773_v44, %v1571_v9 }
 0x288   : > { %vm1588_vm6 = vcmp.gt.f32.partialorder %v1584_v6, 0.0 }
 0x289   : > { %8371 = vpow2.f32 %v1593_v48  ;;  %v1599_v55 = vmul.f32 1.442695, %v1592_v17  ;;  %v1590_v8 = vmin.f32 %v1582_v7, 0.0  ;;  %vm1586_vm7 = vcmp.gt.f32.partialorder %v1582_v7, 0.0  ;;  %v7924_v17 = vld [vmem:[#allocation5 + $0x170] ss:$8 sps:$4 sm:$0xff]  }
 0x28a   : > { %v1696_v48 = vshrl.u32 %v1632_v61, 16 }
 0x28b   : > { %8373 = vpow2.f32 %v1599_v55  ;;  %v1595_v11 = vmul.f32 1.442695, %v1590_v8 }
 0x28d   : > { %8375 = vpow2.f32 %v1595_v11 }
 0x294   : > { %v8370_v49 = vpop.eup %8369 }
 0x295   : > { %v6776_v13 = vadd.f32 -1.0, %v8370_v49 }
 0x296   : > { %v8372_v24 = vpop.eup %8371 }
 0x297   : > { %v1607_v39 = vsel %vm1587_vm15, %v1583_v35, %v6776_v13  ;;  %v6774_v14 = vadd.f32 -1.0, %v8372_v24  ;;  %v7921_v35 = vld [vmem:[#allocation5 + $0x1f0] ss:$8 sps:$4 sm:$0xff]   ;;  %v7932_v24 = vld [vmem:[#allocation5 + $0x164] ss:$8 sps:$4 sm:$0xff]  }
 0x298   : > { %v8374_v15 = vpop.eup %8373  ;;  %v7351_v21 = vpack.c.bf16 %v1607_v39, %v1607_v39  ;;  %v7935_v39 = vld [vmem:[#allocation5 + $0x1d4] ss:$8 sps:$4 sm:$0xff]  }
 0x299   : > { %v1605_v20 = vsel %vm1585_vm5, %v1581_v0, %v6774_v14  ;;  %v6777_v23 = vadd.f32 -1.0, %v8374_v15 }
 0x29a   : > { %1627 = vst [vmem:[#allocation2 + $0x28] sm:$0xf] %v7351_v21  ;;  %v7349_v59 = vpack.c.bf16 %v1605_v20, %v1605_v20  ;;  %v8376_v12 = vpop.eup %8375  ;;  %v7930_v20 = vld [vmem:[#allocation5 + $0x160] ss:$8 sps:$4 sm:$0xff]  }
 0x29b   : > { %v1608_v56 = vsel %vm1588_vm6, %v1584_v6, %v6777_v23  ;;  %v6775_v28 = vadd.f32 -1.0, %v8376_v12  ;;  %v6783_v6 = vrot.slane %v1632_v61, 11  ;;  %v7933_v23 = vld [vmem:[#allocation5 + $0x1d0] ss:$8 sps:$4 sm:$0xff]   ;;  %v6785_v12 = vrot.slane %v1696_v48, 11 }
 0x29c   : > { %1625 = vst [vmem:[#allocation2 + $0x8] sm:$0xf] %v7349_v59  ;;  %v7352_v43 = vpack.c.bf16 %v1608_v56, %v1608_v56  ;;  %v7951_v61 = vld [vmem:[#allocation5 + $0x1a0] ss:$8 sps:$4 sm:$0xff]  }
 0x29d   : > { %v1606_v29 = vsel %vm1586_vm7, %v1582_v7, %v6775_v28  ;;  %v7927_v7 = vld [vmem:[#allocation5 + $0x1e0] ss:$8 sps:$4 sm:$0xff]  }
 0x29e   : > { %1628 = vst [vmem:[#allocation2 + $0x30] sm:$0xf] %v7352_v43  ;;  %v7350_v30 = vpack.c.bf16 %v1606_v29, %v1606_v29  ;;  %v7938_v29 = vld [vmem:[#allocation5 + $0x154] ss:$8 sps:$4 sm:$0xff]  }
 0x2a0   : > { %1626 = vst [vmem:[#allocation2 + $0x10] sm:$0xf] %v7350_v30  ;;  %v7941_v30 = vld [vmem:[#allocation5 + $0x1c4] ss:$8 sps:$4 sm:$0xff]  }
 0x2a1   : > { %v9103_v37 = vld [vmem:[#allocation2 + $0x28] sm:$0xf] }
 0x2a2   : > { %v1650_v50 = vrot.slane %v9103_v37, 7  ;;  %v1701_v51 = vshrl.u32 %v9103_v37, 16  ;;  %v1704_v15 = vshll.u32 %v9103_v37, 16 }
 0x2a3   : > { %v9097_v60 = vld [vmem:[#allocation2 + $0x8] sm:$0xf] }
 0x2a4   : > { %v1679_v31 = vshrl.u32 %v9097_v60, 16  ;;  %v1643_v32 = vrot.slane %v9097_v60, 7  ;;  %v1682_v18 = vshll.u32 %v9097_v60, 16  ;;  %v1652_v9 = vrot.slane %v1650_v50, 4 }
 0x2a5   : > { %v9101_v26 = vld [vmem:[#allocation2 + $0x30] sm:$0xf]  ;;  %v1703_v11 = vrot.slane %v1701_v51, 7  ;;  %v1651_v59 = vsel %vm8947_vm11, %v6783_v6, %v1650_v50  ;;  %v7950_v50 = vld [vmem:[#allocation5 + $0x134] ss:$8 sps:$4 sm:$0xff]  }
 0x2a6   : > { %v1681_v36 = vrot.slane %v1679_v31, 7  ;;  %v1645_v42 = vrot.slane %v1643_v32, 4  ;;  %v1710_v44 = vshrl.u32 %v9101_v26, 16  ;;  %v1644_v45 = vsel %vm8947_vm11, %v6782_v16, %v1643_v32  ;;  %v1634_v47 = vld [vmem:[#allocation2 + $0x30] sm:$0x7] }
 0x2a7   : > { %v1631_v40 = vld [vmem:[#allocation2 + $0x10] sm:$0x7]  ;;  %v1653_v27 = vrot.slane %v1634_v47, 7  ;;  %v1713_v49 = vshll.u32 %v9101_v26, 16  ;;  %v1706_v56 = vor.u32 %v1704_v15, %v1703_v11  ;;  %v1708_v43 = vrot.slane %v1703_v11, 4 }
 0x2a8   : > { %v9105_v41 = vld [vmem:[#allocation2 + $0x10] sm:$0xf]  ;;  %v1646_v10 = vrot.slane %v1631_v40, 7  ;;  %v1684_v52 = vor.u32 %v1682_v18, %v1681_v36  ;;  %v1686_v2 = vrot.slane %v1681_v36, 4  ;;  %v1712_v38 = vrot.slane %v1710_v44, 7 }
 0x2a9   : > { %v1688_v34 = vshrl.u32 %v9105_v41, 16  ;;  %v1691_v62 = vshll.u32 %v9105_v41, 16  ;;  %v1654_v14 = vsel %vm8947_vm11, %v1652_v9, %v1653_v27  ;;  %v9131_v31 = vld [vmem:[#allocation2 + $0x10] sm:$0xf]  ;;  %v7939_v16 = vld [vmem:[#allocation5 + $0x1c0] ss:$8 sps:$4 sm:$0xff]   ;;  %v1707_v19 = vsel %vm8998_vm8, %v6785_v12, %v1706_v56 }
 0x2aa   : > { %v1647_v53 = vsel %vm8947_vm11, %v1645_v42, %v1646_v10  ;;  %v1685_v55 = vsel %vm8998_vm8, %v6784_v57, %v1684_v52  ;;  %v1715_v21 = vor.u32 %v1713_v49, %v1712_v38  ;;  %v6805_v28 = vcombine.low %v1651_v59, %v1654_v14  ;;  %v7936_v32 = vld [vmem:[#allocation5 + $0x150] ss:$8 sps:$4 sm:$0xff]   ;;  %v7944_v40 = vld [vmem:[#allocation5 + $0x144] ss:$8 sps:$4 sm:$0xff]   ;;  %v7947_v18 = vld [vmem:[#allocation5 + $0x1b4] ss:$8 sps:$4 sm:$0xff]  }
 0x2ab   : > { %v1690_v58 = vrot.slane %v1688_v34, 7  ;;  %v6804_v0 = vcombine.low %v1644_v45, %v1647_v53  ;;  %v2184_v42 = vld [vmem:[#allocation2 + $0x8] sm:$0xf]  ;;  %v2200_v10 = vshll.u32 %v9131_v31, 16  ;;  %v2204_v34 = vshrl.u32 %v9131_v31, 16 }
 0x2ac   : > { %v1716_v46 = vsel %vm8998_vm8, %v1708_v43, %v1715_v21  ;;  %v7942_v44 = vld [vmem:[#allocation5 + $0x140] ss:$8 sps:$4 sm:$0xff]   ;;  %v7945_v45 = vld [vmem:[#allocation5 + $0x1b0] ss:$8 sps:$4 sm:$0xff]   ;;  %v2191_v57 = vshrl.u32 %v2184_v42, 16  ;;  %v2194_v47 = vshll.u32 %v2184_v42, 16 }
 0x2ad   : > { %v1693_v3 = vor.u32 %v1691_v62, %v1690_v58  ;;  %1996 = vmatmul.mubr.bf16.vlgmr.msra.gmra.mxu0 %v6804_v0  ;;  %v6787_v36 = vcombine.low %v1707_v19, %v1716_v46  ;;  %v7953_v51 = vld [vmem:[#allocation5 + $0x1a4] ss:$8 sps:$4 sm:$0xff]   ;;  %v2206_v53 = vrot.slane %v2204_v34, 4  ;;  %v9139_v52 = vld [vmem:[#allocation2 + $0x18] sm:$0x1]  ;;  %v6822_v34 = vcombine.low %v9097_v60, %v9105_v41 }
 0x2ae   : > { %2344 = vmatpush1.bf16.msra.mxu0 %v7921_v35  ;;  %2005 = vmatprep.mubr.bf16.mxu0 %v9076_v33  ;;  %v2202_v35 = vrot.slane %v2200_v10, 5  ;;  %v9141_v58 = vld [vmem:[#allocation2 + $0x30] sm:$0xf]  ;;  %v2193_v0 = vrot.slane %v2191_v57, 4  ;;  %v2187_v27 = vld [vmem:[#allocation2 + $0x28] sm:$0xf]  ;;  %v6823_v60 = vcombine.low %v9103_v37, %v9101_v26 }
 0x2af   : > { %v1694_v8 = vsel %vm8998_vm8, %v1686_v2, %v1693_v3  ;;  %2345 = vmatprep.subr.bf16.mxu0 %v7929_v1  ;;  %v7948_v62 = vld [vmem:[#allocation5 + $0x130] ss:$8 sps:$4 sm:$0xff]   ;;  %v2196_v1 = vrot.slane %v2194_v47, 5  ;;  %v7956_v2 = vld [vmem:[#allocation5 + $0x124] ss:$8 sps:$4 sm:$0xff]   ;;  %v2210_v6 = vshll.u32 %v9139_v52, 16 }
 0x2b0   : > { %v6786_v13 = vcombine.low %v1685_v55, %v1694_v8  ;;  %v7959_v3 = vld [vmem:[#allocation5 + $0x194] ss:$8 sps:$4 sm:$0xff]   ;;  %v2207_v38 = vor.u32 %v2206_v53, %v2202_v35  ;;  %v2224_v9 = vshll.u32 %v9141_v58, 16  ;;  %v2228_v48 = vshrl.u32 %v9141_v58, 16  ;;  %v7960_v21 = vld [vmem:[#allocation5 + $0x110] ss:$8 sps:$4 sm:$0xff]  }
 0x2b1   : > { %v2197_v55 = vor.u32 %v2196_v1, %v2193_v0  ;;  %v2215_v8 = vshrl.u32 %v2187_v27, 16  ;;  %v2218_v11 = vshll.u32 %v2187_v27, 16  ;;  %v7962_v49 = vld [vmem:[#allocation5 + $0x114] ss:$8 sps:$4 sm:$0xff]   ;;  %v7968_v56 = vld [vmem:[#allocation5 + $0x104] ss:$8 sps:$4 sm:$0xff]  }
 0x2b2   : > { %1855 = vmatmul.mubr.bf16.vlgmr.msra.gmra.mxu1 %v6786_v13  ;;  %2346 = vmatpush1.bf16.msra.mxu0 %v7927_v7  ;;  %v7957_v7 = vld [vmem:[#allocation5 + $0x190] ss:$8 sps:$4 sm:$0xff]   ;;  %v7965_v13 = vld [vmem:[#allocation5 + $0x184] ss:$8 sps:$4 sm:$0xff]   ;;  %v2226_v14 = vrot.slane %v2224_v9, 5  ;;  %v2230_v15 = vrot.slane %v2228_v48, 4 }
 0x2b3   : > { %2124 = vmatpush1.bf16.msra.mxu1 %v7924_v17  ;;  %2347 = vmatprep.subr.bf16.mxu0 %v7935_v39  ;;  %v7954_v17 = vld [vmem:[#allocation5 + $0x120] ss:$8 sps:$4 sm:$0xff]   ;;  %v2212_v39 = vrot.slane %v2210_v6, 5  ;;  %v2217_v59 = vrot.slane %v2215_v8, 4  ;;  %v2220_v12 = vrot.slane %v2218_v11, 5 }
 0x2b4   : > { %2125 = vmatprep.subr.bf16.mxu1 %v7932_v24  ;;  %1864 = vmatprep.mubr.bf16.mxu1 %v9076_v33  ;;  %v2208_v24 = vrot.slane %v2207_v38, 4  ;;  %v9146_v43 = vld [vmem:[#allocation2 + $0x38] sm:$0x1]  ;;  %v7966_v46 = vld [vmem:[#allocation5 + $0x100] ss:$8 sps:$4 sm:$0xff]   ;;  %v2417_v38 = vrot.slane %v9139_v52, 5 }
 0x2b5   : > { %2006 = vmatmul.mubr.bf16.gmra.mxu0 %v6805_v28  ;;  %v7970_v42 = vld [vmem:[#allocation5 + $0x270] ss:$8 sps:$4 sm:$0xff]   ;;  %v7973_v47 = vld [vmem:[#allocation5 + $0x260] ss:$8 sps:$4 sm:$0xff]   ;;  %v7982_v41 = vld [vmem:[#allocation5 + $0x244] ss:$8 sps:$4 sm:$0xff]  }
 0x2b6   : > { %2348 = vmatpush1.bf16.msra.mxu0 %v7933_v23  ;;  %2375 = vmatprep.mubr.bf16.mxu0 %v9076_v33  ;;  %v2198_v23 = vrot.slane %v2197_v55, 4  ;;  %v2213_v28 = vsel %vm9021_vm9, %v2208_v24, %v2212_v39  ;;  %v7980_v53 = vld [vmem:[#allocation5 + $0x240] ss:$8 sps:$4 sm:$0xff]   ;;  %v7988_v0 = vld [vmem:[#allocation5 + $0x224] ss:$8 sps:$4 sm:$0xff]   ;;  %v2424_v11 = vrot.slane %v9146_v43, 5 }
 0x2b7   : > { %2126 = vmatpush1.bf16.msra.mxu1 %v7930_v20  ;;  %2349 = vmatprep.subr.bf16.mxu0 %v7941_v30  ;;  %v7963_v20 = vld [vmem:[#allocation5 + $0x180] ss:$8 sps:$4 sm:$0xff]   ;;  %v2234_v30 = vshll.u32 %v9146_v43, 16  ;;  %v7989_v26 = vld [vmem:[#allocation5 + $0x210] ss:$8 sps:$4 sm:$0xff]  }
 0x2b8   : > { %2127 = vmatprep.subr.bf16.mxu1 %v7938_v29  ;;  %v2231_v29 = vor.u32 %v2230_v15, %v2226_v14  ;;  %v7986_v1 = vld [vmem:[#allocation5 + $0x220] ss:$8 sps:$4 sm:$0xff]   ;;  %v7994_v37 = vld [vmem:[#allocation5 + $0x204] ss:$8 sps:$4 sm:$0xff]   ;;  %v7995_v39 = vld [vmem:[#allocation8 + $0x70] ss:$8 sps:$4 sm:$0xff]  }
 0x2b9   : > { %v2404_v6 = vld [vmem:[#allocation2 + $0x8] sm:$0xe]  ;;  %v7998_v15 = vld [vmem:[#allocation8 + $0x170] ss:$8 sps:$4 sm:$0xff]  }
 0x2ba   : > { %1865 = vmatmul.mubr.bf16.gmra.mxu1 %v6787_v36  ;;  %2350 = vmatpush1.bf16.msra.mxu0 %v7939_v16  ;;  %v2221_v16 = vor.u32 %v2220_v12, %v2217_v59  ;;  %v7972_v36 = vld [vmem:[#allocation5 + $0x274] ss:$8 sps:$4 sm:$0xff]   ;;  %v7992_v9 = vld [vmem:[#allocation5 + $0x200] ss:$8 sps:$4 sm:$0xff]   ;;  %v6858_v48 = vrot.slane %v2404_v6, 9 }
 0x2bb   : > { %2128 = vmatpush1.bf16.msra.mxu1 %v7936_v32  ;;  %2351 = vmatprep.subr.bf16.mxu0 %v7947_v18  ;;  %v2203_v32 = vsel %vm9021_vm9, %v2198_v23, %v2202_v35  ;;  %v2236_v18 = vrot.slane %v2234_v30, 5  ;;  %v7977_v35 = vld [vmem:[#allocation5 + $0x250] ss:$8 sps:$4 sm:$0xff]   ;;  %v2405_v52 = vld [vmem:[#allocation2 + $0x28] sm:$0xe] }
 0x2bc   : > { %2129 = vmatprep.subr.bf16.mxu1 %v7944_v40  ;;  %2155 = vmatprep.mubr.bf16.mxu1 %v9076_v33  ;;  %v6840_v19 = vcombine.low %v2203_v32, %v2213_v28  ;;  %v2232_v40 = vrot.slane %v2231_v29, 4  ;;  %v2222_v10 = vrot.slane %v2221_v16, 4  ;;  %v8006_v23 = vld [vmem:[#allocation8 + $0x164] ss:$8 sps:$4 sm:$0xff]   ;;  %v8001_v59 = vld [vmem:[#allocation8 + $0x60] ss:$8 sps:$4 sm:$0xff]  }
 0x2bd   : > { %v8009_v12 = vld [vmem:[#allocation8 + $0x54] ss:$8 sps:$4 sm:$0xff]   ;;  %v8007_v43 = vld [vmem:[#allocation8 + $0x50] ss:$8 sps:$4 sm:$0xff]   ;;  %v8015_v29 = vld [vmem:[#allocation8 + $0x44] ss:$8 sps:$4 sm:$0xff]  }
 0x2be   : > { %2352 = vmatpush1.bf16.msra.mxu0 %v7945_v45  ;;  %v2237_v45 = vsel %vm9021_vm9, %v2232_v40, %v2236_v18  ;;  %v2227_v57 = vsel %vm9021_vm9, %v2222_v10, %v2226_v14  ;;  %v7997_v14 = vld [vmem:[#allocation8 + $0x74] ss:$8 sps:$4 sm:$0xff]   ;;  %v8010_v28 = vld [vmem:[#allocation8 + $0x150] ss:$8 sps:$4 sm:$0xff]   ;;  %v8018_v30 = vld [vmem:[#allocation8 + $0x144] ss:$8 sps:$4 sm:$0xff]  }
 0x2bf   : > { %2130 = vmatpush1.bf16.msra.mxu1 %v7942_v44  ;;  %2353 = vmatprep.subr.bf16.mxu0 %v7953_v51  ;;  %v7975_v44 = vld [vmem:[#allocation5 + $0x264] ss:$8 sps:$4 sm:$0xff]   ;;  %v7979_v51 = vld [vmem:[#allocation5 + $0x254] ss:$8 sps:$4 sm:$0xff]   ;;  %v8016_v32 = vld [vmem:[#allocation8 + $0x140] ss:$8 sps:$4 sm:$0xff]  }
 0x2c0   : > { %2131 = vmatprep.subr.bf16.mxu1 %v7950_v50  ;;  %v6841_v50 = vcombine.low %v2227_v57, %v2237_v45  ;;  %v8021_v16 = vld [vmem:[#allocation8 + $0x34] ss:$8 sps:$4 sm:$0xff]   ;;  %v8022_v40 = vld [vmem:[#allocation8 + $0x130] ss:$8 sps:$4 sm:$0xff]   ;;  %v8030_v18 = vld [vmem:[#allocation8 + $0x124] ss:$8 sps:$4 sm:$0xff]  }
 0x2c1   : > { %v8027_v10 = vld [vmem:[#allocation8 + $0x24] ss:$8 sps:$4 sm:$0xff]   ;;  %v8034_v45 = vld [vmem:[#allocation8 + $0x110] ss:$8 sps:$4 sm:$0xff]   ;;  %v8033_v57 = vld [vmem:[#allocation8 + $0x14] ss:$8 sps:$4 sm:$0xff]  }
 0x2c2   : > { %2354 = vmatpush1.bf16.msra.mxu0 %v7951_v61  ;;  %v7983_v61 = vld [vmem:[#allocation5 + $0x230] ss:$8 sps:$4 sm:$0xff]  }
 0x2c3   : > { %2132 = vmatpush1.bf16.msra.mxu1 %v7948_v62  ;;  %2355 = vmatprep.subr.bf16.mxu0 %v7959_v3  ;;  %v7985_v62 = vld [vmem:[#allocation5 + $0x234] ss:$8 sps:$4 sm:$0xff]   ;;  %v2414_v3 = vrot.slane %v9131_v31, 5  ;;  %v8055_v6 = vld [vmem:[#allocation8 + $0xd0] ss:$8 sps:$4 sm:$0xff]  }
 0x2c4   : > { %2133 = vmatprep.subr.bf16.mxu1 %v7956_v2  ;;  %v7991_v2 = vld [vmem:[#allocation5 + $0x214] ss:$8 sps:$4 sm:$0xff]  }
 0x2c5   : > { %v2416_v27 = vrot.slane %v2414_v3, 4  ;;  %v2415_v31 = vsel %vm9057_vm14, %v6858_v48, %v2414_v3  ;;  %v8060_v3 = vld [vmem:[#allocation8 + $0x1d4] ss:$8 sps:$4 sm:$0xff]   ;;  %v8063_v48 = vld [vmem:[#allocation8 + $0xc4] ss:$8 sps:$4 sm:$0xff]  }
 0x2c6   : > { %2356 = vmatpush1.bf16.msra.mxu0 %v7957_v7  ;;  %v2421_v7 = vrot.slane %v9141_v58, 5 }
 0x2c7   : > { %2134 = vmatpush1.bf16.msra.mxu1 %v7954_v17  ;;  %2357 = vmatprep.subr.bf16.mxu0 %v7965_v13  ;;  %v2418_v17 = vsel %vm9057_vm14, %v2416_v27, %v2417_v38  ;;  %v8057_v27 = vld [vmem:[#allocation8 + $0xd4] ss:$8 sps:$4 sm:$0xff]   ;;  %v8066_v38 = vld [vmem:[#allocation8 + $0x1c4] ss:$8 sps:$4 sm:$0xff]  }
 0x2c8   : > { %2135 = vmatprep.subr.bf16.mxu1 %v7962_v49  ;;  %v6860_v55 = vcombine.low %v2415_v31, %v2418_v17  ;;  %v2423_v8 = vrot.slane %v2421_v7, 4  ;;  %v6859_v49 = vrot.slane %v2405_v52, 9  ;;  %v8072_v17 = vld [vmem:[#allocation8 + $0x1b4] ss:$8 sps:$4 sm:$0xff]   ;;  %v8070_v31 = vld [vmem:[#allocation8 + $0x1b0] ss:$8 sps:$4 sm:$0xff]  }
 0x2c9   : > { %v8076_v52 = vld [vmem:[#allocation8 + $0x1a0] ss:$8 sps:$4 sm:$0xff]  }
 0x2ca   : > { %2358 = vmatpush1.bf16.msra.mxu0 %v7963_v20  ;;  %v2425_v13 = vsel %vm9057_vm14, %v2423_v8, %v2424_v11  ;;  %v2422_v24 = vsel %vm9057_vm14, %v6859_v49, %v2421_v7  ;;  %v8003_v20 = vld [vmem:[#allocation8 + $0x64] ss:$8 sps:$4 sm:$0xff]   ;;  %v8061_v7 = vld [vmem:[#allocation8 + $0xc0] ss:$8 sps:$4 sm:$0xff]   ;;  %v8067_v11 = vld [vmem:[#allocation8 + $0xb0] ss:$8 sps:$4 sm:$0xff]  }
 0x2cb   : > { %2136 = vmatpush1.bf16.msra.mxu1 %v7960_v21  ;;  %v6861_v58 = vcombine.low %v2422_v24, %v2425_v13  ;;  %v8000_v21 = vld [vmem:[#allocation8 + $0x174] ss:$8 sps:$4 sm:$0xff]   ;;  %v8078_v8 = vld [vmem:[#allocation8 + $0x1a4] ss:$8 sps:$4 sm:$0xff]   ;;  %v8073_v13 = vld [vmem:[#allocation8 + $0xa0] ss:$8 sps:$4 sm:$0xff]  }
 0x2cc   : > { %2137 = vmatprep.subr.bf16.mxu1 %v7968_v56  ;;  %3001 = vmatprep.subr.bf16.mxu0 %v8000_v21  ;;  %v8012_v56 = vld [vmem:[#allocation8 + $0x154] ss:$8 sps:$4 sm:$0xff]   ;;  %v8075_v49 = vld [vmem:[#allocation8 + $0xa4] ss:$8 sps:$4 sm:$0xff]   ;;  %v8082_v24 = vld [vmem:[#allocation8 + $0x190] ss:$8 sps:$4 sm:$0xff]  }
 0x2cd   : > { %2376 = vmatmul.mubr.bf16.vlgmr.msra.gmra.mxu0 %v6840_v19  ;;  %v8019_v19 = vld [vmem:[#allocation8 + $0x30] ss:$8 sps:$4 sm:$0xff]   ;;  %v8088_v21 = vld [vmem:[#allocation8 + $0x180] ss:$8 sps:$4 sm:$0xff]  }
 0x2ce   : > { %2385 = vmatprep.mubr.bf16.mxu0 %v9076_v33  ;;  %3002 = vmatpush1.bf16.msra.mxu0 %v7998_v15  ;;  %v8079_v15 = vld [vmem:[#allocation8 + $0x90] ss:$8 sps:$4 sm:$0xff]  }
 0x2cf   : > { %2138 = vmatpush1.bf16.msra.mxu1 %v7966_v46  ;;  %3003 = vmatprep.subr.bf16.mxu0 %v8006_v23  ;;  %v8013_v46 = vld [vmem:[#allocation8 + $0x40] ss:$8 sps:$4 sm:$0xff]   ;;  %v8096_v23 = vld [vmem:[#allocation8 + $0x274] ss:$8 sps:$4 sm:$0xff]  }
 0x2d0   : > { %2531 = vmatprep.subr.bf16.mxu1 %v7972_v36  ;;  %v8024_v36 = vld [vmem:[#allocation8 + $0x134] ss:$8 sps:$4 sm:$0xff]  }
 0x2d2   : > { %2156 = vmatmul.mubr.bf16.vlgmr.msra.gmra.mxu1 %v6822_v34  ;;  %v8036_v34 = vld [vmem:[#allocation8 + $0x114] ss:$8 sps:$4 sm:$0xff]  }
 0x2d3   : > { %2532 = vmatpush1.bf16.msra.mxu1 %v7970_v42  ;;  %2165 = vmatprep.mubr.bf16.mxu1 %v9076_v33  ;;  %v8028_v42 = vld [vmem:[#allocation8 + $0x120] ss:$8 sps:$4 sm:$0xff]  }
 0x2d4   : > { %2533 = vmatprep.subr.bf16.mxu1 %v7975_v44  ;;  %v8025_v44 = vld [vmem:[#allocation8 + $0x20] ss:$8 sps:$4 sm:$0xff]  }
 0x2d5   : > { %2386 = vmatmul.mubr.bf16.gmra.mxu0 %v6841_v50  ;;  %v8031_v50 = vld [vmem:[#allocation8 + $0x10] ss:$8 sps:$4 sm:$0xff]  }
 0x2d7   : > { %2534 = vmatpush1.bf16.msra.mxu1 %v7973_v47  ;;  %v8042_v47 = vld [vmem:[#allocation8 + $0x104] ss:$8 sps:$4 sm:$0xff]  }
 0x2d8   : > { %2535 = vmatprep.subr.bf16.mxu1 %v7979_v51  ;;  %v8040_v51 = vld [vmem:[#allocation8 + $0x100] ss:$8 sps:$4 sm:$0xff]  }
 0x2da   : > { %2166 = vmatmul.mubr.bf16.gmra.mxu1 %v6823_v60  ;;  %v8048_v60 = vld [vmem:[#allocation8 + $0x1f4] ss:$8 sps:$4 sm:$0xff]  }
 0x2db   : > { %2536 = vmatpush1.bf16.msra.mxu1 %v7977_v35  ;;  %2563 = vmatprep.mubr.bf16.mxu1 %v9076_v33  ;;  %v8039_v35 = vld [vmem:[#allocation8 + $0x4] ss:$8 sps:$4 sm:$0xff]  }
 0x2dc   : > { %2537 = vmatprep.subr.bf16.mxu1 %v7982_v41  ;;  %v8037_v41 = vld [vmem:[#allocation8] ss:$8 sps:$4 sm:$0xff]  }
 0x2df   : > { %2538 = vmatpush1.bf16.msra.mxu1 %v7980_v53  ;;  %v8046_v53 = vld [vmem:[#allocation8 + $0x1f0] ss:$8 sps:$4 sm:$0xff]  }
 0x2e0   : > { %2539 = vmatprep.subr.bf16.mxu1 %v7985_v62  ;;  %v8045_v62 = vld [vmem:[#allocation8 + $0xf4] ss:$8 sps:$4 sm:$0xff]  }
 0x2e3   : > { %2540 = vmatpush1.bf16.msra.mxu1 %v7983_v61  ;;  %v8054_v61 = vld [vmem:[#allocation8 + $0x1e4] ss:$8 sps:$4 sm:$0xff]  }
 0x2e4   : > { %2541 = vmatprep.subr.bf16.mxu1 %v7988_v0  ;;  %v8043_v0 = vld [vmem:[#allocation8 + $0xf0] ss:$8 sps:$4 sm:$0xff]  }
 0x2e7   : > { %2542 = vmatpush1.bf16.msra.mxu1 %v7986_v1  ;;  %v8052_v1 = vld [vmem:[#allocation8 + $0x1e0] ss:$8 sps:$4 sm:$0xff]  }
 0x2e8   : > { %2543 = vmatprep.subr.bf16.mxu1 %v7991_v2  ;;  %v8051_v2 = vld [vmem:[#allocation8 + $0xe4] ss:$8 sps:$4 sm:$0xff]  }
 0x2eb   : > { %2544 = vmatpush1.bf16.msra.mxu1 %v7989_v26  ;;  %v8049_v26 = vld [vmem:[#allocation8 + $0xe0] ss:$8 sps:$4 sm:$0xff]  }
 0x2ec   : > { %2545 = vmatprep.subr.bf16.mxu1 %v7994_v37  ;;  %v8058_v37 = vld [vmem:[#allocation8 + $0x1d0] ss:$8 sps:$4 sm:$0xff]  }
 0x2ef   : > { %2546 = vmatpush1.bf16.msra.mxu1 %v7992_v9  ;;  %v8064_v9 = vld [vmem:[#allocation8 + $0x1c0] ss:$8 sps:$4 sm:$0xff]  }
 0x2f0   : > { %3230 = vmatprep.subr.bf16.mxu1 %v7997_v14  ;;  %v8090_v14 = vld [vmem:[#allocation8 + $0x184] ss:$8 sps:$4 sm:$0xff]  }
 0x2f2   : > { %2564 = vmatmul.mubr.bf16.vlgmr.msra.gmra.mxu1 %v6860_v55  ;;  %v8069_v55 = vld [vmem:[#allocation8 + $0xb4] ss:$8 sps:$4 sm:$0xff]  }
 0x2f3   : > { %2573 = vmatprep.mubr.bf16.mxu1 %v9076_v33  ;;  %3231 = vmatpush1.bf16.msra.mxu1 %v7995_v39  ;;  %v8004_v33 = vld [vmem:[#allocation8 + $0x160] ss:$8 sps:$4 sm:$0xff]   ;;  %v8081_v39 = vld [vmem:[#allocation8 + $0x94] ss:$8 sps:$4 sm:$0xff]  }
 0x2f4   : > { %3232 = vmatprep.subr.bf16.mxu1 %v8003_v20  ;;  %3004 = vmatpush1.bf16.msra.mxu0 %v8004_v33  ;;  %v8087_v20 = vld [vmem:[#allocation8 + $0x84] ss:$8 sps:$4 sm:$0xff]   ;;  %v8093_v33 = vld [vmem:[#allocation8 + $0x374] ss:$8 sps:$4 sm:$0xff]  }
 0x2f5   : > { %3005 = vmatprep.subr.bf16.mxu0 %v8012_v56 }
 0x2f7   : > { %3233 = vmatpush1.bf16.msra.mxu1 %v8001_v59  ;;  %v8085_v59 = vld [vmem:[#allocation8 + $0x80] ss:$8 sps:$4 sm:$0xff]  }
 0x2f8   : > { %3234 = vmatprep.subr.bf16.mxu1 %v8009_v12  ;;  %3006 = vmatpush1.bf16.msra.mxu0 %v8010_v28 }
 0x2f9   : > { %3007 = vmatprep.subr.bf16.mxu0 %v8018_v30 }
 0x2fa   : > { %2574 = vmatmul.mubr.bf16.gmra.mxu1 %v6861_v58  ;;  %v8084_v58 = vld [vmem:[#allocation8 + $0x194] ss:$8 sps:$4 sm:$0xff]  }
 0x2fb   : > { %3235 = vmatpush1.bf16.msra.mxu1 %v8007_v43 }
 0x2fc   : > { %3236 = vmatprep.subr.bf16.mxu1 %v8015_v29  ;;  %3008 = vmatpush1.bf16.msra.mxu0 %v8016_v32 }
 0x2fd   : > { %3009 = vmatprep.subr.bf16.mxu0 %v8024_v36 }
 0x2ff   : > { %3237 = vmatpush1.bf16.msra.mxu1 %v8013_v46 }
 0x300   : > { %3238 = vmatprep.subr.bf16.mxu1 %v8021_v16  ;;  %3010 = vmatpush1.bf16.msra.mxu0 %v8022_v40 }
 0x301   : > { %3011 = vmatprep.subr.bf16.mxu0 %v8030_v18 }
 0x303   : > { %3239 = vmatpush1.bf16.msra.mxu1 %v8019_v19 }
 0x304   : > { %3012 = vmatpush1.bf16.msra.mxu0 %v8028_v42  ;;  %3240 = vmatprep.subr.bf16.mxu1 %v8027_v10 }
 0x305   : > { %3013 = vmatprep.subr.bf16.mxu0 %v8036_v34 }
 0x307   : > { %3241 = vmatpush1.bf16.msra.mxu1 %v8025_v44 }
 0x308   : > { %3014 = vmatpush1.bf16.msra.mxu0 %v8034_v45  ;;  %3242 = vmatprep.subr.bf16.mxu1 %v8033_v57 }
 0x309   : > { %3015 = vmatprep.subr.bf16.mxu0 %v8042_v47 }
 0x30b   : > { %3243 = vmatpush1.bf16.msra.mxu1 %v8031_v50 }
 0x30c   : > { %3016 = vmatpush1.bf16.msra.mxu0 %v8040_v51  ;;  %3244 = vmatprep.subr.bf16.mxu1 %v8039_v35 }
 0x30d   : > { %3017 = vmatprep.subr.bf16.mxu0 %v8048_v60 }
 0x30f   : > { %3245 = vmatpush1.bf16.msra.mxu1 %v8037_v41 }
 0x310   : > { %3018 = vmatpush2.bf16.msra.mxu0 %v8046_v53  ;;  %3246 = vmatprep.subr.bf16.mxu1 %v8045_v62 }
 0x311   : > { %3019 = vmatprep.subr.bf16.mxu0 %v8054_v61 }
 0x313   : > { %3247 = vmatpush2.bf16.msra.mxu1 %v8043_v0 }
 0x314   : > { %3020 = vmatpush2.bf16.msra.mxu0 %v8052_v1  ;;  %3248 = vmatprep.subr.bf16.mxu1 %v8051_v2  ;;  %v2596_v1 = vsub.s32 0, %v8780_v5 }
 0x315   : > { %3021 = vmatprep.subr.bf16.mxu0 %v8060_v3  ;;  %v2592_v3 = vld [vmem:[%s9874_s6] sm:$0x3] }
 0x317   : > { %3249 = vmatpush2.bf16.msra.mxu1 %v8049_v26 }
 0x318   : > { %3022 = vmatpush2.bf16.msra.mxu0 %v8058_v37  ;;  %3250 = vmatprep.subr.bf16.mxu1 %v8057_v27  ;;  %v2600_v27 = vsub.s32 1, %v8780_v5 }
 0x319   : > { %3023 = vmatprep.subr.bf16.mxu0 %v8066_v38 }
 0x31b   : > { %3251 = vmatpush2.bf16.msra.mxu1 %v8055_v6 }
 0x31c   : > { %3024 = vmatpush2.bf16.msra.mxu0 %v8064_v9  ;;  %3252 = vmatprep.subr.bf16.mxu1 %v8063_v48  ;;  %v2597_v48 = vrot.slane %v2592_v3, %v2596_v1 }
 0x31d   : > { %3025 = vmatprep.subr.bf16.mxu0 %v8072_v17 }
 0x31f   : > { %3253 = vmatpush2.bf16.msra.mxu1 %v8061_v7 }
 0x320   : > { %3026 = vmatpush2.bf16.msra.mxu0 %v8070_v31  ;;  %3254 = vmatprep.subr.bf16.mxu1 %v8069_v55 }
 0x321   : > { %3027 = vmatprep.subr.bf16.mxu0 %v8078_v8 }
 0x323   : > { %3255 = vmatpush2.bf16.msra.mxu1 %v8067_v11  ;;  %v2601_v11 = vrot.slane %v2592_v3, %v2600_v27 }
 0x324   : > { %3028 = vmatpush2.bf16.msra.mxu0 %v8076_v52  ;;  %3256 = vmatprep.subr.bf16.mxu1 %v8075_v49 }
 0x325   : > { %3029 = vmatprep.subr.bf16.mxu0 %v8084_v58 }
 0x327   : > { %3257 = vmatpush2.bf16.msra.mxu1 %v8073_v13 }
 0x328   : > { %3030 = vmatpush2.bf16.msra.mxu0 %v8082_v24  ;;  %3258 = vmatprep.subr.bf16.mxu1 %v8081_v39 }
 0x329   : > { %3031 = vmatprep.subr.bf16.mxu0 %v8090_v14 }
 0x32b   : > { %3259 = vmatpush2.bf16.msra.mxu1 %v8079_v15 }
 0x32c   : > { %3032 = vmatpush2.bf16.msra.mxu0 %v8088_v21  ;;  %3260 = vmatprep.subr.bf16.mxu1 %v8087_v20 }
 0x32d   : > { %3494 = vmatprep.subr.bf16.mxu0 %v8096_v23 }
 0x32f   : > { %3261 = vmatpush2.bf16.msra.mxu1 %v8085_v59 }
 0x330   : > { %3818 = vmatprep.subr.bf16.mxu1 %v8093_v33 }
 0x36d   : > { %v1997_v29 = vpop.f32.mrf.mxu0 }
 0x36f   : > { %v1999_v46 = vpop.f32.mrf.mxu0 }
 0x371   : > { %v2001_v16 = vpop.f32.mrf.mxu0 }
 0x372   : > { %v1856_v12 = vpop.f32.mrf.mxu1 }
 0x373   : > { %v2003_v36 = vpop.f32.mrf.mxu0  ;;  %v1998_v53 = vadd.f32 %v1997_v29, %v1856_v12 }
 0x374   : > { %v1858_v56 = vpop.f32.mrf.mxu1 }
 0x375   : > { %v2007_v18 = vpop.f32.mrf.mxu0  ;;  %v2000_v61 = vadd.f32 %v1999_v46, %v1858_v56 }
 0x376   : > { %v1860_v43 = vpop.f32.mrf.mxu1 }
 0x377   : > { %v2009_v10 = vpop.f32.mrf.mxu0  ;;  %v2002_v26 = vadd.f32 %v2001_v16, %v1860_v43 }
 0x378   : > { %v1862_v28 = vpop.f32.mrf.mxu1 }
 0x379   : > { %v2011_v44 = vpop.f32.mrf.mxu0  ;;  %v2004_v17 = vadd.f32 %v2003_v36, %v1862_v28 }
 0x37a   : > { %v1866_v30 = vpop.f32.mrf.mxu1 }
 0x37b   : > { %v2013_v57 = vpop.f32.mrf.mxu0  ;;  %v2008_v52 = vadd.f32 %v2007_v18, %v1866_v30 }
 0x37c   : > { %v1868_v32 = vpop.f32.mrf.mxu1 }
 0x37d   : > { %v2010_v49 = vadd.f32 %v2009_v10, %v1868_v32 }
 0x37e   : > { %v1870_v19 = vpop.f32.mrf.mxu1 }
 0x37f   : > { %v2012_v59 = vadd.f32 %v2011_v44, %v1870_v19 }
 0x380   : > { %v1872_v40 = vpop.f32.mrf.mxu1 }
 0x381   : > { %v2014_v43 = vadd.f32 %v2013_v57, %v1872_v40 }
 0x38d   : > { %v2377_v50 = vpop.f32.mrf.mxu0 }
 0x38f   : > { %v2379_v35 = vpop.f32.mrf.mxu0 }
 0x391   : > { %v2381_v41 = vpop.f32.mrf.mxu0 }
 0x392   : > { %v2157_v42 = vpop.f32.mrf.mxu1 }
 0x393   : > { %v2176_v0 = vadd.f32 %v2157_v42, %v1998_v53  ;;  %v2383_v2 = vpop.f32.mrf.mxu0 }
 0x394   : > { %v2159_v34 = vpop.f32.mrf.mxu1 }
 0x395   : > { %v2177_v37 = vadd.f32 %v2159_v34, %v2000_v61  ;;  %v2396_v9 = vadd.f32 %v2377_v50, %v2176_v0  ;;  %v2387_v7 = vpop.f32.mrf.mxu0 }
 0x396   : > { %v2161_v45 = vpop.f32.mrf.mxu1 }
 0x397   : > { %v2178_v6 = vadd.f32 %v2161_v45, %v2002_v26  ;;  %v2397_v8 = vadd.f32 %v2379_v35, %v2177_v37  ;;  %v2389_v15 = vpop.f32.mrf.mxu0 }
 0x398   : > { %v2163_v47 = vpop.f32.mrf.mxu1 }
 0x399   : > { %v2179_v13 = vadd.f32 %v2163_v47, %v2004_v17  ;;  %v2398_v14 = vadd.f32 %v2381_v41, %v2178_v6  ;;  %v2391_v36 = vpop.f32.mrf.mxu0 }
 0x39a   : > { %v2167_v51 = vpop.f32.mrf.mxu1 }
 0x39b   : > { %v2180_v21 = vadd.f32 %v2167_v51, %v2008_v52  ;;  %v2399_v28 = vadd.f32 %v2383_v2, %v2179_v13 }
 0x39c   : > { %v2169_v60 = vpop.f32.mrf.mxu1 }
 0x39d   : > { %v2181_v20 = vadd.f32 %v2169_v60, %v2010_v49  ;;  %v2400_v42 = vadd.f32 %v2387_v7, %v2180_v21  ;;  %v2393_v60 = vpop.f32.mrf.mxu0 }
 0x39e   : > { %v2171_v62 = vpop.f32.mrf.mxu1 }
 0x39f   : > { %v2182_v30 = vadd.f32 %v2171_v62, %v2012_v59  ;;  %v2401_v34 = vadd.f32 %v2389_v15, %v2181_v20 }
 0x3a0   : > { %v2173_v38 = vpop.f32.mrf.mxu1 }
 0x3a1   : > { %v2183_v45 = vadd.f32 %v2173_v38, %v2014_v43  ;;  %v2402_v35 = vadd.f32 %v2391_v36, %v2182_v30  ;;  %v2688_v43 = vld [vmem:[#allocation3] sm:$0x88] }
 0x3a2   : > { %v2749_v30 = vshrl.u32 %v2688_v43, 16 }
 0x3a3   : > { %v2403_v2 = vadd.f32 %v2393_v60, %v2183_v45 }
 0x3b2   : > { %v2565_v31 = vpop.f32.mrf.mxu1 }
 0x3b3   : > { %v2584_v55 = vadd.f32 %v2565_v31, %v2396_v9 }
 0x3b4   : > { %v2567_v24 = vpop.f32.mrf.mxu1 }
 0x3b5   : > { %v9186_v58 = vadd.f32 %v2597_v48, %v2584_v55  ;;  %v2585_v39 = vadd.f32 %v2567_v24, %v2397_v8 }
 0x3b6   : > { %v2569_v23 = vpop.f32.mrf.mxu1 }
 0x3b7   : > { %v2620_v33 = vmin.f32 %v9186_v58, 0.0  ;;  %v2605_v12 = vadd.f32 %v2601_v11, %v2585_v39  ;;  %v2586_v56 = vadd.f32 %v2569_v23, %v2398_v14  ;;  %vm2612_vm10 = vcmp.gt.f32.partialorder %v9186_v58, 0.0 }
 0x3b8   : > { %v2571_v29 = vpop.f32.mrf.mxu1 }
 0x3b9   : > { %v2628_v46 = vmul.f32 1.442695, %v2620_v33  ;;  %v2621_v32 = vmin.f32 %v2605_v12, 0.0  ;;  %v9189_v16 = vadd.f32 %v2597_v48, %v2586_v56  ;;  %v2587_v18 = vadd.f32 %v2571_v29, %v2399_v28 }
 0x3ba   : > { %v2575_v10 = vpop.f32.mrf.mxu1  ;;  %vm2613_vm13 = vcmp.gt.f32.partialorder %v2605_v12, 0.0 }
 0x3bb   : > { %8377 = vpow2.f32 %v2628_v46  ;;  %v2630_v19 = vmul.f32 1.442695, %v2621_v32  ;;  %v2622_v44 = vmin.f32 %v9189_v16, 0.0  ;;  %v2607_v47 = vadd.f32 %v2601_v11, %v2587_v18 }
 0x3bc   : > { %v2588_v50 = vadd.f32 %v2575_v10, %v2400_v42  ;;  %v2577_v40 = vpop.f32.mrf.mxu1  ;;  %vm2614_vm15 = vcmp.gt.f32.partialorder %v9189_v16, 0.0  ;;  %v6890_v18 = vrot.slane %v2688_v43, 11 }
 0x3bd   : > { %8379 = vpow2.f32 %v2630_v19  ;;  %v2632_v57 = vmul.f32 1.442695, %v2622_v44  ;;  %v2589_v51 = vadd.f32 %v2577_v40, %v2401_v34  ;;  %v2623_v41 = vmin.f32 %v2607_v47, 0.0  ;;  %v9223_v19 = vld [vmem:[#allocation3 + $0x18] sm:$0x11] }
 0x3be   : > { %v2608_v53 = vadd.f32 %v2597_v48, %v2588_v50  ;;  %v2579_v62 = vpop.f32.mrf.mxu1  ;;  %vm2615_vm5 = vcmp.gt.f32.partialorder %v2607_v47, 0.0  ;;  %v6892_v50 = vrot.slane %v2749_v30, 11 }
 0x3bf   : > { %8381 = vpow2.f32 %v2632_v57  ;;  %v2609_v61 = vadd.f32 %v2601_v11, %v2589_v51  ;;  %v2590_v0 = vadd.f32 %v2579_v62, %v2402_v35  ;;  %v2634_v3 = vmul.f32 1.442695, %v2623_v41  ;;  %v9231_v51 = vld [vmem:[#allocation3 + $0x20] sm:$0x88] }
 0x3c0   : > { %v2624_v26 = vmin.f32 %v2608_v53, 0.0  ;;  %v2581_v37 = vpop.f32.mrf.mxu1  ;;  %vm2616_vm6 = vcmp.gt.f32.partialorder %v2608_v53, 0.0  ;;  %v3581_v41 = vshll.u32 %v9223_v19, 16 }
 0x3c1   : > { %v2625_v38 = vmin.f32 %v2609_v61, 0.0  ;;  %v9192_v6 = vadd.f32 %v2597_v48, %v2590_v0  ;;  %v2591_v9 = vadd.f32 %v2581_v37, %v2403_v2  ;;  %8383 = vpow2.f32 %v2634_v3 }
 0x3c2   : > { %v2636_v17 = vmul.f32 1.442695, %v2624_v26  ;;  %vm2617_vm7 = vcmp.gt.f32.partialorder %v2609_v61, 0.0 }
 0x3c3   : > { %v2638_v7 = vmul.f32 1.442695, %v2625_v38  ;;  %v2626_v31 = vmin.f32 %v9192_v6, 0.0  ;;  %v2611_v55 = vadd.f32 %v2601_v11, %v2591_v9 }
 0x3c4   : > { %8385 = vpow2.f32 %v2636_v17 }
 0x3c5   : > { %8387 = vpow2.f32 %v2638_v7  ;;  %v2640_v8 = vmul.f32 1.442695, %v2626_v31  ;;  %v2627_v52 = vmin.f32 %v2611_v55, 0.0 }
 0x3c7   : > { %8389 = vpow2.f32 %v2640_v8  ;;  %v2642_v49 = vmul.f32 1.442695, %v2627_v52 }
 0x3c8   : > { %v8378_v13 = vpop.eup %8377 }
 0x3c9   : > { %v6878_v24 = vadd.f32 -1.0, %v8378_v13  ;;  %8391 = vpow2.f32 %v2642_v49 }
 0x3ca   : > { %v8380_v39 = vpop.eup %8379 }
 0x3cb   : > { %v6879_v14 = vadd.f32 -1.0, %v8380_v39  ;;  %v9197_v15 = vsel %vm2612_vm10, %v9186_v58, %v6878_v24  ;;  %vm2618_vm10 = vcmp.gt.f32.partialorder %v9192_v6, 0.0 }
 0x3cc   : > { %v8382_v48 = vpop.eup %8381 }
 0x3cd   : > { %v9199_v21 = vsel %vm2613_vm13, %v2605_v12, %v6879_v14  ;;  %v6880_v20 = vadd.f32 -1.0, %v8382_v48  ;;  %vm2619_vm13 = vcmp.gt.f32.partialorder %v2611_v55, 0.0 }
 0x3ce   : > { %v9203_v11 = vpack.c.bf16 %v9199_v21, %v9197_v15  ;;  %v8384_v23 = vpop.eup %8383 }
 0x3cf   : > { %v6881_v59 = vadd.f32 -1.0, %v8384_v23  ;;  %v9209_v12 = vsel %vm2614_vm15, %v9189_v16, %v6880_v20 }
 0x3d0   : > { %2684 = vst [vmem:[#allocation3 + $0x8] sm:$0xff] %v9203_v11  ;;  %v2754_v33 = vshrl.u32 %v9203_v11, 16  ;;  %v2702_v45 = vrot.slane %v9203_v11, 7  ;;  %v2757_v40 = vshll.u32 %v9203_v11, 16  ;;  %v8094_v11 = vld [vmem:[#allocation8 + $0x270] ss:$8 sps:$4 sm:$0xff]  }
 0x3d1   : > { %v8386_v56 = vpop.eup %8385  ;;  %v9211_v28 = vsel %vm2615_vm5, %v2607_v47, %v6881_v59  ;;  %v6891_v59 = vrot.slane %v9231_v51, 11 }
 0x3d2   : > { %v8388_v58 = vpop.eup %8387  ;;  %v6882_v29 = vadd.f32 -1.0, %v8386_v56  ;;  %v9215_v46 = vpack.c.bf16 %v9211_v28, %v9209_v12  ;;  %v2756_v42 = vrot.slane %v2754_v33, 7  ;;  %v2704_v3 = vrot.slane %v2702_v45, 4 }
 0x3d3   : > { %v6883_v32 = vadd.f32 -1.0, %v8388_v58  ;;  %v9248_v17 = vrot.slane %v2754_v33, 4  ;;  %v9250_v7 = vrot.slane %v2757_v40, 5  ;;  %v2703_v23 = vsel %vm8947_vm11, %v6890_v18, %v2702_v45  ;;  %v8102_v33 = vld [vmem:[#allocation8 + $0x264] ss:$8 sps:$4 sm:$0xff]  }
 0x3d4   : > { %v8390_v36 = vpop.eup %8389  ;;  %2685 = vst [vmem:[#allocation3 + $0x10] sm:$0xff] %v9215_v46  ;;  %v9218_v10 = vsel %vm2616_vm6, %v2608_v53, %v6882_v29  ;;  %v2763_v57 = vshrl.u32 %v9215_v46, 16  ;;  %v2766_v60 = vshll.u32 %v9215_v46, 16  ;;  %v2771_v53 = vshrl.u32 %v9231_v51, 16  ;;  %v8099_v45 = vld [vmem:[#allocation8 + $0x364] ss:$8 sps:$4 sm:$0xff]  }
 0x3d5   : > { %v9220_v16 = vsel %vm2617_vm7, %v2609_v61, %v6883_v32  ;;  %v6884_v34 = vadd.f32 -1.0, %v8390_v36  ;;  %v2759_v62 = vor.u32 %v2757_v40, %v2756_v42  ;;  %v2761_v38 = vrot.slane %v2756_v42, 4 }
 0x3d6   : > { %v8392_v44 = vpop.eup %8391  ;;  %v9227_v47 = vpack.c.bf16 %v9220_v16, %v9218_v10  ;;  %v2765_v61 = vrot.slane %v2763_v57, 7  ;;  %v9252_v31 = vrot.slane %v2766_v60, 5  ;;  %v3577_v8 = vrot.slane %v2763_v57, 4  ;;  %v8100_v57 = vld [vmem:[#allocation8 + $0x260] ss:$8 sps:$4 sm:$0xff]  }
 0x3d7   : > { %v6885_v35 = vadd.f32 -1.0, %v8392_v44  ;;  %v9239_v0 = vsel %vm2618_vm10, %v9192_v6, %v6884_v34  ;;  %v2760_v52 = vsel %vm8998_vm8, %v6892_v50, %v2759_v62  ;;  %v6893_v56 = vrot.slane %v2771_v53, 11  ;;  %v3879_v36 = vld [vmem:[#allocation3 + $0x8] sm:$0xee]  ;;  %v8091_v34 = vld [vmem:[#allocation8 + $0x370] ss:$8 sps:$4 sm:$0xff]  }
 0x3d8   : > { %2686 = vst [vmem:[#allocation3 + $0x28] sm:$0xff] %v9227_v47  ;;  %v2776_v26 = vshrl.u32 %v9227_v47, 16  ;;  %v2768_v9 = vor.u32 %v2766_v60, %v2765_v61  ;;  %v2709_v13 = vrot.slane %v9227_v47, 7  ;;  %v2779_v20 = vshll.u32 %v9227_v47, 16  ;;  %v8108_v62 = vld [vmem:[#allocation8 + $0x254] ss:$8 sps:$4 sm:$0xff]  }
 0x3d9   : > { %v9241_v2 = vsel %vm2619_vm13, %v2611_v55, %v6885_v35  ;;  %v3578_v29 = vor.u32 %v3577_v8, %v9252_v31  ;;  %v3583_v44 = vrot.slane %v3581_v41, 5  ;;  %v3892_v50 = vrot.slane %v9223_v19, 5  ;;  %v9290_v8 = vld [vmem:[#allocation3 + $0x38] sm:$0x11]  ;;  %v8181_v47 = vld [vmem:[#allocation8 + $0x380] ss:$8 sps:$4 sm:$0xff]  }
 0x3da   : > { %v9246_v37 = vpack.c.bf16 %v9241_v2, %v9239_v0  ;;  %v2778_v6 = vrot.slane %v2776_v26, 7  ;;  %v2769_v49 = vsel %vm8998_vm8, %v2761_v38, %v2768_v9  ;;  %v2711_v40 = vrot.slane %v2709_v13, 4 }
 0x3db   : > { %v2690_v55 = vld [vmem:[#allocation3 + $0x10] sm:$0x77]  ;;  %v6894_v14 = vcombine.low %v2760_v52, %v2769_v49  ;;  %v6895_v48 = vcombine.high %v2760_v52, %v2769_v49  ;;  %v3568_v51 = vor.u32 %v9250_v7, %v9248_v17  ;;  %v8426_v61 = vpack.c.bf16 %v9209_v12, %v9197_v15  ;;  %v8196_v15 = vld [vmem:[#allocation8 + $0x440] ss:$8 sps:$4 sm:$0xff]  }
 0x3dc   : > { %2687 = vst [vmem:[#allocation3 + $0x30] sm:$0xff] %v9246_v37  ;;  %v2785_v24 = vshrl.u32 %v9246_v37, 16  ;;  %v2705_v39 = vrot.slane %v2690_v55, 7  ;;  %v2781_v30 = vor.u32 %v2779_v20, %v2778_v6  ;;  %v2788_v32 = vshll.u32 %v9246_v37, 16  ;;  %v8097_v55 = vld [vmem:[#allocation8 + $0x360] ss:$8 sps:$4 sm:$0xff]  }
 0x3dd   : > { %3033 = vmatprep.mubr.bf16.mxu0 %v6895_v48  ;;  %v2783_v35 = vrot.slane %v2778_v6, 4  ;;  %v8427_v19 = vpack.c.bf16 %v9241_v2, %v9220_v16  ;;  %v8428_v41 = vpack.c.bf16 %v9239_v0, %v9218_v10  ;;  %v3579_v9 = vrot.slane %v3578_v29, 4  ;;  %v8105_v48 = vld [vmem:[#allocation8 + $0x354] ss:$8 sps:$4 sm:$0xff]   ;;  %v8199_v16 = vld [vmem:[#allocation8 + $0x430] ss:$8 sps:$4 sm:$0xff]  }
 0x3de   : > { %v2787_v43 = vrot.slane %v2785_v24, 7  ;;  %v2706_v58 = vsel %vm8947_vm11, %v2704_v3, %v2705_v39  ;;  %3034 = vmatmul.mubr.bf16.vlgmr.msra.gmra.mxu0 %v6894_v14  ;;  %v7038_v3 = vrot.slane %v3879_v36, 9  ;;  %v2782_v17 = vsel %vm8998_vm8, %v6893_v56, %v2781_v30  ;;  %v8201_v12 = vld [vmem:[#allocation8 + $0x434] ss:$8 sps:$4 sm:$0xff]   ;;  %v8204_v2 = vld [vmem:[#allocation8 + $0x424] ss:$8 sps:$4 sm:$0xff]  }
 0x3df   : > { %v6930_v18 = vcombine.low %v2703_v23, %v2706_v58  ;;  %v6931_v42 = vcombine.high %v2703_v23, %v2706_v58  ;;  %3495 = vmatpush1.bf16.msra.mxu0 %v8094_v11  ;;  %v3880_v53 = vld [vmem:[#allocation3 + $0x28] sm:$0xee]  ;;  %v3889_v6 = vrot.slane %v9215_v46, 5  ;;  %v3569_v11 = vrot.slane %v3568_v51, 4  ;;  %v8106_v58 = vld [vmem:[#allocation8 + $0x250] ss:$8 sps:$4 sm:$0xff]  }
 0x3e0   : > { %v2790_v60 = vor.u32 %v2788_v32, %v2787_v43  ;;  %3496 = vmatprep.subr.bf16.mxu0 %v8102_v33  ;;  %v7039_v14 = vrot.slane %v3880_v53, 9  ;;  %v3896_v56 = vrot.slane %v9246_v37, 5  ;;  %v2710_v46 = vsel %vm8947_vm11, %v6891_v59, %v2709_v13  ;;  %v8103_v59 = vld [vmem:[#allocation8 + $0x350] ss:$8 sps:$4 sm:$0xff]   ;;  %v8112_v51 = vld [vmem:[#allocation8 + $0x240] ss:$8 sps:$4 sm:$0xff]  }
 0x3e1   : > { %3262 = vmatprep.mubr.bf16.mxu1 %v6931_v42  ;;  %v9295_v23 = vsel %vm9057_vm14, %v7038_v3, %v3889_v6  ;;  %v3891_v33 = vrot.slane %v3889_v6, 4  ;;  %v8429_v29 = vpack.c.bf16 %v9211_v28, %v9199_v21  ;;  %v3899_v30 = vrot.slane %v9290_v8, 5  ;;  %v8117_v3 = vld [vmem:[#allocation8 + $0x334] ss:$8 sps:$4 sm:$0xff]   ;;  %v8124_v6 = vld [vmem:[#allocation8 + $0x220] ss:$8 sps:$4 sm:$0xff]  }
 0x3e2   : > { %3263 = vmatmul.mubr.bf16.vlgmr.msra.gmra.mxu1 %v6930_v18  ;;  %v2791_v7 = vsel %vm8998_vm8, %v2783_v35, %v2790_v60  ;;  %v9307_v42 = vsel %vm9021_vm9, %v3579_v9, %v3583_v44  ;;  %v9319_v28 = vsel %vm9057_vm14, %v7039_v14, %v3896_v56  ;;  %v3898_v44 = vrot.slane %v3896_v56, 4  ;;  %v8120_v60 = vld [vmem:[#allocation8 + $0x234] ss:$8 sps:$4 sm:$0xff]   ;;  %v8126_v9 = vld [vmem:[#allocation8 + $0x224] ss:$8 sps:$4 sm:$0xff]  }
 0x3e3   : > { %v2693_v38 = vld [vmem:[#allocation3 + $0x30] sm:$0x77]  ;;  %3819 = vmatpush1.bf16.msra.mxu1 %v8091_v34  ;;  %v6897_v49 = vcombine.high %v2782_v17, %v2791_v7  ;;  %v6896_v39 = vcombine.low %v2782_v17, %v2791_v7  ;;  %3497 = vmatpush1.bf16.msra.mxu0 %v8100_v57  ;;  %v9311_v13 = vsel %vm9057_vm14, %v3891_v33, %v3892_v50  ;;  %v8136_v33 = vld [vmem:[#allocation8 + $0x200] ss:$8 sps:$4 sm:$0xff]  }
 0x3e4   : > { %v2712_v52 = vrot.slane %v2693_v38, 7  ;;  %3820 = vmatprep.subr.bf16.mxu1 %v8099_v45  ;;  %3498 = vmatprep.subr.bf16.mxu0 %v8108_v62  ;;  %v8114_v34 = vld [vmem:[#allocation8 + $0x244] ss:$8 sps:$4 sm:$0xff]   ;;  %v7040_v45 = vcombine.low %v9295_v23, %v9311_v13  ;;  %v7041_v21 = vcombine.high %v9295_v23, %v9311_v13  ;;  %v9324_v50 = vsel %vm9021_vm9, %v3569_v11, %v9252_v31  ;;  %v8109_v62 = vld [vmem:[#allocation8 + $0x340] ss:$8 sps:$4 sm:$0xff]  }
 0x3e5   : > { %3043 = vmatprep.mubr.bf16.mxu0 %v6897_v49  ;;  %v7003_v57 = vcombine.high %v9324_v50, %v9307_v42  ;;  %v9330_v35 = vsel %vm9057_vm14, %v3898_v44, %v3899_v30  ;;  %v8118_v38 = vld [vmem:[#allocation8 + $0x230] ss:$8 sps:$4 sm:$0xff]   ;;  %v8123_v7 = vld [vmem:[#allocation8 + $0x324] ss:$8 sps:$4 sm:$0xff]   ;;  %v8129_v49 = vld [vmem:[#allocation8 + $0x314] ss:$8 sps:$4 sm:$0xff]  }
 0x3e6   : > { %v2713_v43 = vsel %vm8947_vm11, %v2711_v40, %v2712_v52  ;;  %3044 = vmatmul.mubr.bf16.gmra.mxu0 %v6896_v39  ;;  %v8111_v40 = vld [vmem:[#allocation8 + $0x344] ss:$8 sps:$4 sm:$0xff]   ;;  %v7043_v53 = vcombine.high %v9319_v28, %v9330_v35  ;;  %v7042_v31 = vcombine.low %v9319_v28, %v9330_v35  ;;  %v8115_v17 = vld [vmem:[#allocation8 + $0x330] ss:$8 sps:$4 sm:$0xff]   ;;  %v8121_v52 = vld [vmem:[#allocation8 + $0x320] ss:$8 sps:$4 sm:$0xff]  }
 0x3e7   : > { %v6933_v36 = vcombine.high %v2710_v46, %v2713_v43  ;;  %v6932_v18 = vcombine.low %v2710_v46, %v2713_v43  ;;  %3821 = vmatpush1.bf16.msra.mxu1 %v8097_v55  ;;  %3499 = vmatpush1.bf16.msra.mxu0 %v8106_v58  ;;  %v8132_v55 = vld [vmem:[#allocation8 + $0x214] ss:$8 sps:$4 sm:$0xff]   ;;  %v8130_v39 = vld [vmem:[#allocation8 + $0x210] ss:$8 sps:$4 sm:$0xff]   ;;  %v8138_v14 = vld [vmem:[#allocation8 + $0x204] ss:$8 sps:$4 sm:$0xff]  }
 0x3e8   : > { %3822 = vmatprep.subr.bf16.mxu1 %v8105_v48  ;;  %3526 = vmatprep.mubr.bf16.mxu0 %v8429_v29  ;;  %v8127_v48 = vld [vmem:[#allocation8 + $0x310] ss:$8 sps:$4 sm:$0xff]   ;;  %v8135_v11 = vld [vmem:[#allocation8 + $0x304] ss:$8 sps:$4 sm:$0xff]   ;;  %v8144_v56 = vld [vmem:[#allocation8 + $0x2f4] ss:$8 sps:$4 sm:$0xff]  }
 0x3e9   : > { %3272 = vmatprep.mubr.bf16.mxu1 %v6933_v36  ;;  %3500 = vmatprep.subr.bf16.mxu0 %v8114_v34  ;;  %v8133_v46 = vld [vmem:[#allocation8 + $0x300] ss:$8 sps:$4 sm:$0xff]   ;;  %v8141_v43 = vld [vmem:[#allocation8 + $0x3f4] ss:$8 sps:$4 sm:$0xff]   ;;  %v8142_v58 = vld [vmem:[#allocation8 + $0x2f0] ss:$8 sps:$4 sm:$0xff]  }
 0x3ea   : > { %3273 = vmatmul.mubr.bf16.gmra.mxu1 %v6932_v18  ;;  %v8150_v29 = vld [vmem:[#allocation8 + $0x2e4] ss:$8 sps:$4 sm:$0xff]   ;;  %v8139_v30 = vld [vmem:[#allocation8 + $0x3f0] ss:$8 sps:$4 sm:$0xff]   ;;  %v8148_v18 = vld [vmem:[#allocation8 + $0x2e0] ss:$8 sps:$4 sm:$0xff]  }
 0x3eb   : > { %3823 = vmatpush1.bf16.msra.mxu1 %v8103_v59  ;;  %3850 = vmatprep.mubr.bf16.mxu1 %v7003_v57  ;;  %v8147_v36 = vld [vmem:[#allocation8 + $0x3e4] ss:$8 sps:$4 sm:$0xff]   ;;  %v8156_v34 = vld [vmem:[#allocation8 + $0x2d4] ss:$8 sps:$4 sm:$0xff]   ;;  %v8145_v59 = vld [vmem:[#allocation8 + $0x3e0] ss:$8 sps:$4 sm:$0xff]  }
 0x3ec   : > { %3824 = vmatprep.subr.bf16.mxu1 %v8111_v40  ;;  %3501 = vmatpush1.bf16.msra.mxu0 %v8112_v51  ;;  %v8153_v44 = vld [vmem:[#allocation8 + $0x3d4] ss:$8 sps:$4 sm:$0xff]   ;;  %v8154_v40 = vld [vmem:[#allocation8 + $0x2d0] ss:$8 sps:$4 sm:$0xff]   ;;  %v8162_v57 = vld [vmem:[#allocation8 + $0x2c4] ss:$8 sps:$4 sm:$0xff]  }
 0x3ed   : > { %3502 = vmatprep.subr.bf16.mxu0 %v8120_v60  ;;  %v8151_v51 = vld [vmem:[#allocation8 + $0x3d0] ss:$8 sps:$4 sm:$0xff]   ;;  %v8159_v60 = vld [vmem:[#allocation8 + $0x3c4] ss:$8 sps:$4 sm:$0xff]  }
 0x3ee   : > { %v8175_v37 = vld [vmem:[#allocation8 + $0x390] ss:$8 sps:$4 sm:$0xff]   ;;  %v8210_v0 = vld [vmem:[#allocation8 + $0x404] ss:$8 sps:$4 sm:$0xff]  }
 0x3ef   : > { %3825 = vmatpush1.bf16.msra.mxu1 %v8109_v62  ;;  %v8160_v62 = vld [vmem:[#allocation8 + $0x2c0] ss:$8 sps:$4 sm:$0xff]   ;;  %v8205_v10 = vld [vmem:[#allocation8 + $0x410] ss:$8 sps:$4 sm:$0xff]  }
 0x3f0   : > { %3826 = vmatprep.subr.bf16.mxu1 %v8117_v3  ;;  %3503 = vmatpush1.bf16.msra.mxu0 %v8118_v38  ;;  %v8168_v3 = vld [vmem:[#allocation8 + $0x2b4] ss:$8 sps:$4 sm:$0xff]   ;;  %v8157_v38 = vld [vmem:[#allocation8 + $0x3c0] ss:$8 sps:$4 sm:$0xff]  }
 0x3f1   : > { %3504 = vmatprep.subr.bf16.mxu0 %v8126_v9  ;;  %v8165_v9 = vld [vmem:[#allocation8 + $0x3b4] ss:$8 sps:$4 sm:$0xff]   ;;  %v8241_v23 = vld [vmem:[#allocation10 + $0x168] sm:$0xff]   ;;  %v8245_v28 = vld [vmem:[#allocation10 + $0x160] sm:$0xff]  }
 0x3f2   : > { %v8242_v13 = vld [vmem:[#allocation10 + $0x128] sm:$0xff]   ;;  %v8246_v35 = vld [vmem:[#allocation10 + $0x120] sm:$0xff]  }
 0x3f3   : > { %3827 = vmatpush1.bf16.msra.mxu1 %v8115_v17  ;;  %v8166_v17 = vld [vmem:[#allocation8 + $0x2b0] ss:$8 sps:$4 sm:$0xff]  }
 0x3f4   : > { %3828 = vmatprep.subr.bf16.mxu1 %v8123_v7  ;;  %3505 = vmatpush1.bf16.msra.mxu0 %v8124_v6  ;;  %v8174_v7 = vld [vmem:[#allocation8 + $0x2a4] ss:$8 sps:$4 sm:$0xff]   ;;  %v8163_v6 = vld [vmem:[#allocation8 + $0x3b0] ss:$8 sps:$4 sm:$0xff]  }
 0x3f5   : > { %3506 = vmatprep.subr.bf16.mxu0 %v8132_v55  ;;  %v8171_v55 = vld [vmem:[#allocation8 + $0x3a4] ss:$8 sps:$4 sm:$0xff]  }
 0x3f7   : > { %3829 = vmatpush1.bf16.msra.mxu1 %v8121_v52  ;;  %v8172_v52 = vld [vmem:[#allocation8 + $0x2a0] ss:$8 sps:$4 sm:$0xff]  }
 0x3f8   : > { %3830 = vmatprep.subr.bf16.mxu1 %v8129_v49  ;;  %3507 = vmatpush1.bf16.msra.mxu0 %v8130_v39  ;;  %v8180_v49 = vld [vmem:[#allocation8 + $0x294] ss:$8 sps:$4 sm:$0xff]   ;;  %v3597_v39 = vrot.slane %v2788_v32, 5  ;;  %v3605_v32 = vshll.u32 %v9290_v8, 16 }
 0x3f9   : > { %3508 = vmatprep.subr.bf16.mxu0 %v8138_v14  ;;  %v3601_v14 = vrot.slane %v2785_v24, 4  ;;  %v8183_v24 = vld [vmem:[#allocation8 + $0x384] ss:$8 sps:$4 sm:$0xff]  }
 0x3fb   : > { %3831 = vmatpush1.bf16.msra.mxu1 %v8127_v48  ;;  %v8169_v48 = vld [vmem:[#allocation8 + $0x3a0] ss:$8 sps:$4 sm:$0xff]  }
 0x3fc   : > { %3832 = vmatprep.subr.bf16.mxu1 %v8135_v11  ;;  %3509 = vmatpush1.bf16.msra.mxu0 %v8136_v33  ;;  %v8177_v11 = vld [vmem:[#allocation8 + $0x394] ss:$8 sps:$4 sm:$0xff]   ;;  %v3588_v33 = vrot.slane %v2776_v26, 4  ;;  %v3607_v26 = vrot.slane %v3605_v32, 5 }
 0x3fd   : > { %3510 = vmatprep.subr.bf16.mxu0 %v8144_v56  ;;  %v3591_v56 = vrot.slane %v2779_v20, 5  ;;  %v8238_v32 = vld [vmem:[#allocation10 + $0x130] sm:$0xff]  }
 0x3ff   : > { %3833 = vmatpush1.bf16.msra.mxu1 %v8133_v46  ;;  %v8178_v46 = vld [vmem:[#allocation8 + $0x290] ss:$8 sps:$4 sm:$0xff]  }
 0x400   : > { %3834 = vmatprep.subr.bf16.mxu1 %v8141_v43  ;;  %3511 = vmatpush2.bf16.msra.mxu0 %v8142_v58  ;;  %v8186_v43 = vld [vmem:[#allocation8 + $0x284] ss:$8 sps:$4 sm:$0xff]   ;;  %v3602_v58 = vor.u32 %v3601_v14, %v3597_v39  ;;  %v8226_v14 = vld [vmem:[#allocation8 + $0x4a0] ss:$8 sps:$4 sm:$0xff]  }
 0x401   : > { %3512 = vmatprep.subr.bf16.mxu0 %v8150_v29  ;;  %v3592_v29 = vor.u32 %v3591_v56, %v3588_v33  ;;  %v8234_v33 = vld [vmem:[#allocation8 + $0x484] ss:$8 sps:$4 sm:$0xff]   ;;  %v8232_v56 = vld [vmem:[#allocation8 + $0x480] ss:$8 sps:$4 sm:$0xff]  }
 0x403   : > { %3835 = vmatpush2.bf16.msra.mxu1 %v8139_v30  ;;  %v8184_v30 = vld [vmem:[#allocation8 + $0x280] ss:$8 sps:$4 sm:$0xff]   ;;  %v3593_v20 = vrot.slane %v3592_v29, 4 }
 0x404   : > { %3836 = vmatprep.subr.bf16.mxu1 %v8147_v36  ;;  %3513 = vmatpush2.bf16.msra.mxu0 %v8148_v18  ;;  %v3603_v36 = vrot.slane %v3602_v58, 4  ;;  %v8189_v18 = vld [vmem:[#allocation8 + $0x474] ss:$8 sps:$4 sm:$0xff]   ;;  %v8248_v29 = vld [vmem:[#allocation10 + $0xa8] sm:$0xff]  }
 0x405   : > { %3514 = vmatprep.subr.bf16.mxu0 %v8156_v34  ;;  %v8187_v34 = vld [vmem:[#allocation8 + $0x470] ss:$8 sps:$4 sm:$0xff]  }
 0x406   : > { %v3608_v8 = vsel %vm9021_vm9, %v3603_v36, %v3607_v26  ;;  %v8237_v58 = vld [vmem:[#allocation10 + $0x170] sm:$0xff]   ;;  %v8250_v36 = vld [vmem:[#allocation10 + $0x118] sm:$0xff]   ;;  %v8251_v26 = vld [vmem:[#allocation10 + $0xe0] sm:$0xff]  }
 0x407   : > { %3837 = vmatpush2.bf16.msra.mxu1 %v8145_v59  ;;  %v8192_v59 = vld [vmem:[#allocation8 + $0x464] ss:$8 sps:$4 sm:$0xff]  }
 0x408   : > { %3838 = vmatprep.subr.bf16.mxu1 %v8153_v44  ;;  %3515 = vmatpush2.bf16.msra.mxu0 %v8154_v40  ;;  %v7002_v44 = vcombine.low %v9324_v50, %v9307_v42  ;;  %v3598_v40 = vsel %vm9021_vm9, %v3593_v20, %v3597_v39  ;;  %v8193_v42 = vld [vmem:[#allocation8 + $0x450] ss:$8 sps:$4 sm:$0xff]   ;;  %v8198_v50 = vld [vmem:[#allocation8 + $0x444] ss:$8 sps:$4 sm:$0xff]  }
 0x409   : > { %3516 = vmatprep.subr.bf16.mxu0 %v8162_v57  ;;  %v7005_v57 = vcombine.high %v3598_v40, %v3608_v8  ;;  %v8228_v39 = vld [vmem:[#allocation8 + $0x4a4] ss:$8 sps:$4 sm:$0xff]   ;;  %v8254_v20 = vld [vmem:[#allocation10 + $0x110] sm:$0xff]  }
 0x40b   : > { %3839 = vmatpush2.bf16.msra.mxu1 %v8151_v51  ;;  %v8190_v51 = vld [vmem:[#allocation8 + $0x460] ss:$8 sps:$4 sm:$0xff]  }
 0x40c   : > { %3840 = vmatprep.subr.bf16.mxu1 %v8159_v60  ;;  %3517 = vmatpush2.bf16.msra.mxu0 %v8160_v62  ;;  %v8195_v60 = vld [vmem:[#allocation8 + $0x454] ss:$8 sps:$4 sm:$0xff]   ;;  %v7004_v62 = vcombine.low %v3598_v40, %v3608_v8 }
 0x40d   : > { %3518 = vmatprep.subr.bf16.mxu0 %v8168_v3  ;;  %v8211_v3 = vld [vmem:[#allocation8 + $0x4f0] ss:$8 sps:$4 sm:$0xff]  }
 0x40e   : > { %v8256_v8 = vld [vmem:[#allocation10 + $0x98] sm:$0xff]   ;;  %v8259_v40 = vld [vmem:[#allocation10 + $0xd0] sm:$0xff]  }
 0x40f   : > { %3841 = vmatpush2.bf16.msra.mxu1 %v8157_v38  ;;  %v8216_v38 = vld [vmem:[#allocation8 + $0x4e4] ss:$8 sps:$4 sm:$0xff]  }
 0x410   : > { %3842 = vmatprep.subr.bf16.mxu1 %v8165_v9  ;;  %3519 = vmatpush2.bf16.msra.mxu0 %v8166_v17  ;;  %v8214_v9 = vld [vmem:[#allocation8 + $0x4e0] ss:$8 sps:$4 sm:$0xff]   ;;  %v8219_v17 = vld [vmem:[#allocation8 + $0x4d4] ss:$8 sps:$4 sm:$0xff]  }
 0x411   : > { %3520 = vmatprep.subr.bf16.mxu0 %v8174_v7  ;;  %v8217_v7 = vld [vmem:[#allocation8 + $0x4d0] ss:$8 sps:$4 sm:$0xff]  }
 0x413   : > { %3843 = vmatpush2.bf16.msra.mxu1 %v8163_v6  ;;  %v8222_v6 = vld [vmem:[#allocation8 + $0x4c4] ss:$8 sps:$4 sm:$0xff]  }
 0x414   : > { %3844 = vmatprep.subr.bf16.mxu1 %v8171_v55  ;;  %3521 = vmatpush2.bf16.msra.mxu0 %v8172_v52  ;;  %v8220_v55 = vld [vmem:[#allocation8 + $0x4c0] ss:$8 sps:$4 sm:$0xff]   ;;  %v8225_v52 = vld [vmem:[#allocation8 + $0x4b4] ss:$8 sps:$4 sm:$0xff]  }
 0x415   : > { %3522 = vmatprep.subr.bf16.mxu0 %v8180_v49  ;;  %v8223_v49 = vld [vmem:[#allocation8 + $0x4b0] ss:$8 sps:$4 sm:$0xff]  }
 0x417   : > { %3845 = vmatpush2.bf16.msra.mxu1 %v8169_v48  ;;  %v8231_v48 = vld [vmem:[#allocation8 + $0x494] ss:$8 sps:$4 sm:$0xff]  }
 0x418   : > { %3846 = vmatprep.subr.bf16.mxu1 %v8177_v11  ;;  %3523 = vmatpush2.bf16.msra.mxu0 %v8178_v46  ;;  %v8229_v11 = vld [vmem:[#allocation8 + $0x490] ss:$8 sps:$4 sm:$0xff]  }
 0x419   : > { %3524 = vmatprep.subr.bf16.mxu0 %v8186_v43  ;;  %v8235_v46 = vld [vmem:[#allocation10 + $0x178] sm:$0xff]  }
 0x41a   : > { %v8236_v43 = vld [vmem:[#allocation10 + $0x138] sm:$0xff]  }
 0x41b   : > { %3847 = vmatpush2.bf16.msra.mxu1 %v8175_v37  ;;  %v8239_v37 = vld [vmem:[#allocation10 + $0xf8] sm:$0xff]  }
 0x41c   : > { %3848 = vmatprep.subr.bf16.mxu1 %v8183_v24  ;;  %3525 = vmatpush2.bf16.msra.mxu0 %v8184_v30  ;;  %v8240_v24 = vld [vmem:[#allocation10 + $0xb8] sm:$0xff]  }
 0x41d   : > { %4110 = vmatprep.subr.bf16.mxu0 %v8189_v18  ;;  %v8249_v30 = vld [vmem:[#allocation10 + $0x158] sm:$0xff]   ;;  %v8252_v18 = vld [vmem:[#allocation10 + $0xa0] sm:$0xff]  }
 0x41f   : > { %3849 = vmatpush2.bf16.msra.mxu1 %v8181_v47  ;;  %3527 = vmatmul.mubr.bf16.vlgmr.msra.gmra.mxu0 %v8426_v61  ;;  %v8202_v61 = vld [vmem:[#allocation8 + $0x420] ss:$8 sps:$4 sm:$0xff]   ;;  %v8253_v47 = vld [vmem:[#allocation10 + $0x150] sm:$0xff]  }
 0x420   : > { %3536 = vmatprep.mubr.bf16.mxu0 %v8427_v19  ;;  %4111 = vmatpush1.bf16.msra.mxu0 %v8187_v34  ;;  %v8207_v19 = vld [vmem:[#allocation8 + $0x414] ss:$8 sps:$4 sm:$0xff]  }
 0x421   : > { %4112 = vmatprep.subr.bf16.mxu0 %v8192_v59  ;;  %7400 = vmatprep.subr.bf16.mxu1 %v8239_v37  ;;  %v8255_v34 = vld [vmem:[#allocation10 + $0xd8] sm:$0xff]   ;;  %v8257_v59 = vld [vmem:[#allocation10 + $0x148] sm:$0xff]  }
 0x422   : > { %3851 = vmatmul.mubr.bf16.vlgmr.msra.gmra.mxu1 %v7002_v44  ;;  %v8258_v44 = vld [vmem:[#allocation10 + $0x108] sm:$0xff]  }
 0x423   : > { %3860 = vmatprep.mubr.bf16.mxu1 %v7005_v57  ;;  %7401 = vmatpush3.bf16.msra.mxu1 %v8240_v24  ;;  %v8260_v57 = vld [vmem:[#allocation10 + $0x90] sm:$0xff]  }
 0x424   : > { %4113 = vmatpush1.bf16.msra.mxu0 %v8190_v51  ;;  %v8261_v51 = vld [vmem:[#allocation10 + $0x140] sm:$0xff]  }
 0x425   : > { %4114 = vmatprep.subr.bf16.mxu0 %v8195_v60  ;;  %v8262_v60 = vld [vmem:[#allocation10 + $0x100] sm:$0xff]  }
 0x427   : > { %3537 = vmatmul.mubr.bf16.gmra.mxu0 %v8428_v41  ;;  %v8208_v41 = vld [vmem:[#allocation8 + $0x400] ss:$8 sps:$4 sm:$0xff]  }
 0x428   : > { %4115 = vmatpush1.bf16.msra.mxu0 %v8193_v42  ;;  %4142 = vmatprep.mubr.bf16.mxu0 %v7041_v21  ;;  %v8213_v21 = vld [vmem:[#allocation8 + $0x4f4] ss:$8 sps:$4 sm:$0xff]   ;;  %v8263_v42 = vld [vmem:[#allocation10 + $0xc8] sm:$0xff]  }
 0x429   : > { %4116 = vmatprep.subr.bf16.mxu0 %v8198_v50  ;;  %v8264_v50 = vld [vmem:[#allocation10 + $0x88] sm:$0xff]  }
 0x42a   : > { %3861 = vmatmul.mubr.bf16.gmra.mxu1 %v7004_v62  ;;  %v8265_v62 = vld [vmem:[#allocation10 + $0x278] sm:$0xff]  }
 0x42c   : > { %4117 = vmatpush1.bf16.msra.mxu0 %v8196_v15  ;;  %v8267_v15 = vld [vmem:[#allocation10 + $0xc0] sm:$0xff]  }
 0x42d   : > { %4118 = vmatprep.subr.bf16.mxu0 %v8201_v12  ;;  %v8268_v12 = vld [vmem:[#allocation10 + $0x80] sm:$0xff]  }
 0x430   : > { %4119 = vmatpush1.bf16.msra.mxu0 %v8199_v16  ;;  %v8271_v16 = vld [vmem:[#allocation10 + $0x78] sm:$0xff]  }
 0x431   : > { %4120 = vmatprep.subr.bf16.mxu0 %v8204_v2 }
 0x434   : > { %4121 = vmatpush1.bf16.msra.mxu0 %v8202_v61 }
 0x435   : > { %4122 = vmatprep.subr.bf16.mxu0 %v8207_v19 }
 0x438   : > { %4123 = vmatpush1.bf16.msra.mxu0 %v8205_v10 }
 0x439   : > { %4124 = vmatprep.subr.bf16.mxu0 %v8210_v0 }
 0x43c   : > { %4125 = vmatpush1.bf16.msra.mxu0 %v8208_v41 }
 0x43d   : > { %4126 = vmatprep.subr.bf16.mxu0 %v8213_v21 }
 0x440   : > { %4127 = vmatpush2.bf16.msra.mxu0 %v8211_v3 }
 0x441   : > { %4128 = vmatprep.subr.bf16.mxu0 %v8216_v38 }
 0x444   : > { %4129 = vmatpush2.bf16.msra.mxu0 %v8214_v9 }
 0x445   : > { %4130 = vmatprep.subr.bf16.mxu0 %v8219_v17 }
 0x448   : > { %4131 = vmatpush2.bf16.msra.mxu0 %v8217_v7 }
 0x449   : > { %4132 = vmatprep.subr.bf16.mxu0 %v8222_v6 }
 0x44c   : > { %4133 = vmatpush2.bf16.msra.mxu0 %v8220_v55 }
 0x44d   : > { %4134 = vmatprep.subr.bf16.mxu0 %v8225_v52 }
 0x450   : > { %4135 = vmatpush2.bf16.msra.mxu0 %v8223_v49 }
 0x451   : > { %4136 = vmatprep.subr.bf16.mxu0 %v8228_v39 }
 0x454   : > { %4137 = vmatpush2.bf16.msra.mxu0 %v8226_v14 }
 0x455   : > { %4138 = vmatprep.subr.bf16.mxu0 %v8231_v48 }
 0x458   : > { %4139 = vmatpush2.bf16.msra.mxu0 %v8229_v11 }
 0x459   : > { %4140 = vmatprep.subr.bf16.mxu0 %v8234_v33 }
 0x45c   : > { %4141 = vmatpush2.bf16.msra.mxu0 %v8232_v56 }
 0x45d   : > { %7456 = vmatprep.subr.bf16.mxu0 %v8235_v46 }
 0x45f   : > { %4143 = vmatmul.mubr.bf16.vlgmr.msra.gmra.mxu0 %v7040_v45  ;;  %v8243_v45 = vld [vmem:[#allocation10 + $0xf0] sm:$0xff]  }
 0x460   : > { %4152 = vmatprep.mubr.bf16.mxu0 %v7043_v53  ;;  %7457 = vmatpush3.bf16.msra.mxu0 %v8236_v43  ;;  %v8244_v53 = vld [vmem:[#allocation10 + $0xb0] sm:$0xff]  }
 0x461   : > { %7458 = vmatprep.subr.bf16.mxu0 %v8237_v58  ;;  %7402 = vmatprep.subr.bf16.mxu1 %v8243_v45 }
 0x462   : > { %7403 = vmatpush3.bf16.msra.mxu1 %v8244_v53 }
 0x464   : > { %7459 = vmatpush3.bf16.msra.mxu0 %v8238_v32 }
 0x465   : > { %7460 = vmatprep.subr.bf16.mxu0 %v8241_v23  ;;  %v4171_v23 = vld [vmem:[%s9876_s8] sm:$0x3] }
 0x467   : > { %4153 = vmatmul.mubr.bf16.gmra.mxu0 %v7042_v31  ;;  %v8247_v31 = vld [vmem:[#allocation10 + $0xe8] sm:$0xff]  }
 0x468   : > { %7461 = vmatpush3.bf16.msra.mxu0 %v8242_v13  ;;  %7404 = vmatprep.subr.bf16.mxu1 %v8247_v31 }
 0x469   : > { %7462 = vmatprep.subr.bf16.mxu0 %v8245_v28  ;;  %7405 = vmatpush3.bf16.msra.mxu1 %v8248_v29 }
 0x46a   : > { %7406 = vmatprep.subr.bf16.mxu1 %v8251_v26 }
 0x46c   : > { %7463 = vmatpush3.bf16.msra.mxu0 %v8246_v35 }
 0x46d   : > { %7464 = vmatprep.subr.bf16.mxu0 %v8249_v30  ;;  %7407 = vmatpush3.bf16.msra.mxu1 %v8252_v18  ;;  %v4176_v30 = vrot.slane %v4171_v23, %v2596_v1 }
 0x46e   : > { %7408 = vmatprep.subr.bf16.mxu1 %v8255_v34 }
 0x470   : > { %7465 = vmatpush3.bf16.msra.mxu0 %v8250_v36 }
 0x471   : > { %7466 = vmatprep.subr.bf16.mxu0 %v8253_v47  ;;  %7409 = vmatpush3.bf16.msra.mxu1 %v8256_v8 }
 0x472   : > { %7410 = vmatprep.subr.bf16.mxu1 %v8259_v40 }
 0x474   : > { %7467 = vmatpush3.bf16.msra.mxu0 %v8254_v20  ;;  %v4180_v20 = vrot.slane %v4171_v23, %v2600_v27 }
 0x475   : > { %7468 = vmatprep.subr.bf16.mxu0 %v8257_v59  ;;  %7411 = vmatpush3.bf16.msra.mxu1 %v8260_v57 }
 0x476   : > { %7412 = vmatprep.subr.bf16.mxu1 %v8263_v42 }
 0x478   : > { %7469 = vmatpush3.bf16.msra.mxu0 %v8258_v44 }
 0x479   : > { %7470 = vmatprep.subr.bf16.mxu0 %v8261_v51  ;;  %7413 = vmatpush3.bf16.msra.mxu1 %v8264_v50 }
 0x47a   : > { %7414 = vmatprep.subr.bf16.mxu1 %v8267_v15 }
 0x47c   : > { %7471 = vmatpush3.bf16.msra.mxu0 %v8262_v60 }
 0x47d   : > { %7512 = vmatprep.subr.bf16.mxu0 %v8265_v62  ;;  %7415 = vmatpush3.bf16.msra.mxu1 %v8268_v12 }
 0x47e   : > { %7428 = vmatprep.subr.bf16.mxu1 %v8271_v16 }
 0x49e   : > { %v3035_v2 = vpop.f32.mrf.mxu0 }
 0x4a0   : > { %v3037_v61 = vpop.f32.mrf.mxu0 }
 0x4a2   : > { %v3039_v19 = vpop.f32.mrf.mxu0  ;;  %v3264_v10 = vpop.f32.mrf.mxu1 }
 0x4a3   : > { %v3265_v24 = vadd.f32 %v3264_v10, %v3035_v2 }
 0x4a4   : > { %v3041_v0 = vpop.f32.mrf.mxu0  ;;  %v3266_v41 = vpop.f32.mrf.mxu1 }
 0x4a5   : > { %v3267_v13 = vadd.f32 %v3266_v41, %v3037_v61 }
 0x4a6   : > { %v3045_v21 = vpop.f32.mrf.mxu0  ;;  %v3268_v3 = vpop.f32.mrf.mxu1 }
 0x4a7   : > { %v3269_v35 = vadd.f32 %v3268_v3, %v3039_v19 }
 0x4a8   : > { %v3047_v38 = vpop.f32.mrf.mxu0  ;;  %v3270_v9 = vpop.f32.mrf.mxu1 }
 0x4a9   : > { %v3271_v34 = vadd.f32 %v3270_v9, %v3041_v0 }
 0x4aa   : > { %v3049_v17 = vpop.f32.mrf.mxu0  ;;  %v3274_v7 = vpop.f32.mrf.mxu1 }
 0x4ab   : > { %v3275_v51 = vadd.f32 %v3274_v7, %v3045_v21 }
 0x4ac   : > { %v3051_v6 = vpop.f32.mrf.mxu0  ;;  %v3276_v52 = vpop.f32.mrf.mxu1 }
 0x4ad   : > { %v3277_v50 = vadd.f32 %v3276_v52, %v3047_v38 }
 0x4ae   : > { %v3278_v39 = vpop.f32.mrf.mxu1 }
 0x4af   : > { %v3279_v12 = vadd.f32 %v3278_v39, %v3049_v17 }
 0x4b0   : > { %v3280_v48 = vpop.f32.mrf.mxu1 }
 0x4b1   : > { %v3281_v21 = vadd.f32 %v3280_v48, %v3051_v6 }
 0x4df   : > { %v3528_v55 = vpop.f32.mrf.mxu0 }
 0x4e0   : > { %v3547_v45 = vadd.f32 %v3528_v55, %v3265_v24 }
 0x4e1   : > { %v3530_v49 = vpop.f32.mrf.mxu0 }
 0x4e2   : > { %v3852_v11 = vpop.f32.mrf.mxu1  ;;  %v3548_v31 = vadd.f32 %v3530_v49, %v3267_v13 }
 0x4e3   : > { %v3532_v14 = vpop.f32.mrf.mxu0  ;;  %v3871_v29 = vadd.f32 %v3852_v11, %v3547_v45 }
 0x4e4   : > { %v3854_v56 = vpop.f32.mrf.mxu1  ;;  %v3549_v26 = vadd.f32 %v3532_v14, %v3269_v35 }
 0x4e5   : > { %v3534_v33 = vpop.f32.mrf.mxu0  ;;  %v3872_v47 = vadd.f32 %v3854_v56, %v3548_v31 }
 0x4e6   : > { %v3856_v43 = vpop.f32.mrf.mxu1  ;;  %v3550_v60 = vadd.f32 %v3534_v33, %v3271_v34 }
 0x4e7   : > { %v3538_v46 = vpop.f32.mrf.mxu0  ;;  %v3873_v57 = vadd.f32 %v3856_v43, %v3549_v26 }
 0x4e8   : > { %v3858_v32 = vpop.f32.mrf.mxu1  ;;  %v3551_v16 = vadd.f32 %v3538_v46, %v3275_v51 }
 0x4e9   : > { %v3540_v58 = vpop.f32.mrf.mxu0  ;;  %v3874_v27 = vadd.f32 %v3858_v32, %v3550_v60 }
 0x4ea   : > { %v3862_v53 = vpop.f32.mrf.mxu1  ;;  %v3552_v19 = vadd.f32 %v3540_v58, %v3277_v50 }
 0x4eb   : > { %v3542_v37 = vpop.f32.mrf.mxu0  ;;  %v3875_v38 = vadd.f32 %v3862_v53, %v3551_v16  ;;  %v9403_v16 = vld [vmem:[#allocation2] sm:$0x88] }
 0x4ec   : > { %v3864_v8 = vpop.f32.mrf.mxu1  ;;  %v3553_v3 = vadd.f32 %v3542_v37, %v3279_v12 }
 0x4ed   : > { %v3544_v28 = vpop.f32.mrf.mxu0  ;;  %v3876_v17 = vadd.f32 %v3864_v8, %v3552_v19 }
 0x4ee   : > { %v3866_v2 = vpop.f32.mrf.mxu1  ;;  %v3554_v39 = vadd.f32 %v3544_v28, %v3281_v21 }
 0x4ef   : > { %v3877_v43 = vadd.f32 %v3866_v2, %v3553_v3 }
 0x4f0   : > { %v3868_v49 = vpop.f32.mrf.mxu1 }
 0x4f1   : > { %v3878_v24 = vadd.f32 %v3868_v49, %v3554_v39  ;;  %v8269_v39 = vld [vmem:[#allocation10 + $0x270] sm:$0xff]  }
 0x51f   : > { %v4144_v36 = vpop.f32.mrf.mxu0 }
 0x520   : > { %v4163_v18 = vadd.f32 %v4144_v36, %v3871_v29 }
 0x521   : > { %v4146_v59 = vpop.f32.mrf.mxu0 }
 0x522   : > { %v9379_v44 = vadd.f32 %v4176_v30, %v4163_v18  ;;  %v4164_v40 = vadd.f32 %v4146_v59, %v3872_v47 }
 0x523   : > { %v4148_v42 = vpop.f32.mrf.mxu0 }
 0x524   : > { %v4199_v1 = vmin.f32 %v9379_v44, 0.0  ;;  %v9382_v62 = vadd.f32 %v4180_v20, %v4164_v40  ;;  %v4165_v15 = vadd.f32 %v4148_v42, %v3873_v57  ;;  %vm4191_vm15 = vcmp.gt.f32.partialorder %v9379_v44, 0.0 }
 0x525   : > { %v4150_v61 = vpop.f32.mrf.mxu0 }
 0x526   : > { %v4207_v10 = vmul.f32 1.442695, %v4199_v1  ;;  %v4200_v0 = vmin.f32 %v9382_v62, 0.0  ;;  %v9385_v41 = vadd.f32 %v4176_v30, %v4165_v15  ;;  %v4166_v9 = vadd.f32 %v4150_v61, %v3874_v27 }
 0x527   : > { %v4154_v7 = vpop.f32.mrf.mxu0  ;;  %vm4192_vm5 = vcmp.gt.f32.partialorder %v9382_v62, 0.0  ;;  %v4328_v61 = vshrl.u32 %v9403_v16, 16 }
 0x528   : > { %8393 = vpow2.f32 %v4207_v10  ;;  %v4209_v55 = vmul.f32 1.442695, %v4200_v0  ;;  %v4201_v52 = vmin.f32 %v9385_v41, 0.0  ;;  %v4186_v14 = vadd.f32 %v4180_v20, %v4166_v9 }
 0x529   : > { %v4167_v11 = vadd.f32 %v4154_v7, %v3875_v38  ;;  %v4156_v33 = vpop.f32.mrf.mxu0  ;;  %vm4193_vm6 = vcmp.gt.f32.partialorder %v9385_v41, 0.0 }
 0x52a   : > { %8395 = vpow2.f32 %v4209_v55  ;;  %v4211_v56 = vmul.f32 1.442695, %v4201_v52  ;;  %v4168_v46 = vadd.f32 %v4156_v33, %v3876_v17  ;;  %v4202_v58 = vmin.f32 %v4186_v14, 0.0  ;;  %v8266_v52 = vld [vmem:[#allocation10 + $0x238] sm:$0xff]  }
 0x52b   : > { %v4187_v6 = vadd.f32 %v4176_v30, %v4167_v11  ;;  %v4158_v48 = vpop.f32.mrf.mxu0  ;;  %vm4194_vm7 = vcmp.gt.f32.partialorder %v4186_v14, 0.0  ;;  %v9420_v33 = vld [vmem:[#allocation2 + $0x18] sm:$0x11] }
 0x52c   : > { %8397 = vpow2.f32 %v4211_v56  ;;  %v4188_v32 = vadd.f32 %v4180_v20, %v4168_v46  ;;  %v4169_v37 = vadd.f32 %v4158_v48, %v3877_v43  ;;  %v4213_v23 = vmul.f32 1.442695, %v4202_v58 }
 0x52d   : > { %v4203_v13 = vmin.f32 %v4187_v6, 0.0  ;;  %v4160_v45 = vpop.f32.mrf.mxu0  ;;  %vm4195_vm10 = vcmp.gt.f32.partialorder %v4187_v6, 0.0 }
 0x52e   : > { %v4204_v53 = vmin.f32 %v4188_v32, 0.0  ;;  %v9388_v35 = vadd.f32 %v4176_v30, %v4169_v37  ;;  %v4170_v28 = vadd.f32 %v4160_v45, %v3878_v24  ;;  %8399 = vpow2.f32 %v4213_v23 }
 0x52f   : > { %v4215_v31 = vmul.f32 1.442695, %v4203_v13  ;;  %vm4196_vm13 = vcmp.gt.f32.partialorder %v4188_v32, 0.0  ;;  %v8270_v13 = vld [vmem:[#allocation10 + $0x230] sm:$0xff]   ;;  %v5191_v45 = vrot.slane %v9420_v33, 5 }
 0x530   : > { %v4217_v29 = vmul.f32 1.442695, %v4204_v53  ;;  %v4205_v36 = vmin.f32 %v9388_v35, 0.0  ;;  %v9391_v26 = vadd.f32 %v4180_v20, %v4170_v28 }
 0x531   : > { %8401 = vpow2.f32 %v4215_v31 }
 0x532   : > { %8403 = vpow2.f32 %v4217_v29  ;;  %v4219_v18 = vmul.f32 1.442695, %v4205_v36  ;;  %v4206_v47 = vmin.f32 %v9391_v26, 0.0  ;;  %v8273_v29 = vld [vmem:[#allocation10 + $0x268] sm:$0xff]  }
 0x534   : > { %8405 = vpow2.f32 %v4219_v18  ;;  %v4221_v34 = vmul.f32 1.442695, %v4206_v47  ;;  %v9440_v18 = vld [vmem:[#allocation2 + $0x20] sm:$0x88] }
 0x535   : > { %v8394_v8 = vpop.eup %8393  ;;  %v4350_v47 = vshrl.u32 %v9440_v18, 16 }
 0x536   : > { %v7076_v59 = vadd.f32 -1.0, %v8394_v8  ;;  %8407 = vpow2.f32 %v4221_v34 }
 0x537   : > { %v8396_v30 = vpop.eup %8395 }
 0x538   : > { %v7077_v40 = vadd.f32 -1.0, %v8396_v30  ;;  %v4231_v20 = vsel %vm4191_vm15, %v9379_v44, %v7076_v59  ;;  %vm4197_vm15 = vcmp.gt.f32.partialorder %v9388_v35, 0.0 }
 0x539   : > { %v8398_v57 = vpop.eup %8397 }
 0x53a   : > { %v4232_v51 = vsel %vm4192_vm5, %v9382_v62, %v7077_v40  ;;  %v7078_v42 = vadd.f32 -1.0, %v8398_v57  ;;  %vm4198_vm5 = vcmp.gt.f32.partialorder %v9391_v26, 0.0 }
 0x53b   : > { %v9398_v60 = vpack.c.bf16 %v4232_v51, %v4231_v20  ;;  %v8400_v50 = vpop.eup %8399 }
 0x53c   : > { %v7079_v1 = vadd.f32 -1.0, %v8400_v50  ;;  %v4233_v44 = vsel %vm4193_vm6, %v9385_v41, %v7078_v42 }
 0x53d   : > { %4263 = vst [vmem:[#allocation2 + $0x8] sm:$0xff] %v9398_v60  ;;  %v4333_v15 = vshrl.u32 %v9398_v60, 16  ;;  %v4336_v9 = vshll.u32 %v9398_v60, 16  ;;  %v8431_v55 = vpack.c.bf16 %v4233_v44, %v4231_v20  ;;  %v8272_v20 = vld [vmem:[#allocation10 + $0x38] sm:$0xff]  }
 0x53e   : > { %v8402_v12 = vpop.eup %8401  ;;  %v4234_v27 = vsel %vm4194_vm7, %v4186_v14, %v7079_v1  ;;  %v7090_v14 = vrot.slane %v4328_v61, 11  ;;  %v8275_v1 = vld [vmem:[#allocation10 + $0x70] sm:$0xff]   ;;  %v7091_v61 = vrot.slane %v4350_v47, 11  ;;  %v8290_v47 = vld [vmem:[#allocation10 + $0x208] sm:$0xff]  }
 0x53f   : > { %v8404_v2 = vpop.eup %8403  ;;  %v7080_v62 = vadd.f32 -1.0, %v8402_v12  ;;  %v9407_v19 = vpack.c.bf16 %v4234_v27, %v4233_v44  ;;  %v4335_v0 = vrot.slane %v4333_v15, 7  ;;  %v8430_v7 = vpack.c.bf16 %v4234_v27, %v4232_v51  ;;  %v8274_v51 = vld [vmem:[#allocation10 + $0x228] sm:$0xff]  }
 0x540   : > { %v7081_v10 = vadd.f32 -1.0, %v8404_v2  ;;  %v4281_v44 = vrot.slane %v9398_v60, 7 }
 0x541   : > { %v8406_v21 = vpop.eup %8405  ;;  %v9411_v3 = vsel %vm4195_vm10, %v4187_v6, %v7080_v62  ;;  %4264 = vst [vmem:[#allocation2 + $0x10] sm:$0xff] %v9407_v19  ;;  %v4342_v11 = vshrl.u32 %v9407_v19, 16  ;;  %4905 = vmatprep.mubr.bf16.mxu0 %v8430_v7  ;;  %v4338_v46 = vor.u32 %v4336_v9, %v4335_v0  ;;  %v5188_v58 = vrot.slane %v9407_v19, 5  ;;  %v8277_v62 = vld [vmem:[#allocation10 + $0x260] sm:$0xff]  }
 0x542   : > { %v4236_v41 = vsel %vm4196_vm13, %v4188_v32, %v7081_v10  ;;  %v7082_v38 = vadd.f32 -1.0, %v8406_v21  ;;  %4906 = vmatmul.mubr.bf16.vlgmr.msra.gmra.mxu0 %v8431_v55  ;;  %v4345_v48 = vshll.u32 %v9407_v19, 16  ;;  %v4340_v28 = vrot.slane %v4335_v0, 4 }
 0x543   : > { %v8408_v17 = vpop.eup %8407  ;;  %v9416_v49 = vpack.c.bf16 %v4236_v41, %v9411_v3  ;;  %v4344_v6 = vrot.slane %v4342_v11, 7  ;;  %7513 = vmatpush3.bf16.msra.mxu0 %v8266_v52  ;;  %v5190_v36 = vrot.slane %v5188_v58, 4  ;;  %v8279_v52 = vld [vmem:[#allocation10 + $0x68] sm:$0xff]  }
 0x544   : > { %v7083_v56 = vadd.f32 -1.0, %v8408_v17  ;;  %v5178_v43 = vld [vmem:[#allocation2 + $0x8] sm:$0xee]  ;;  %v4237_v24 = vsel %vm4197_vm15, %v9388_v35, %v7082_v38  ;;  %7514 = vmatprep.subr.bf16.mxu0 %v8269_v39  ;;  %v4339_v35 = vsel %vm8998_vm8, %v7090_v14, %v4338_v46  ;;  %v8278_v38 = vld [vmem:[#allocation10 + $0x220] sm:$0xff]   ;;  %v8281_v17 = vld [vmem:[#allocation10 + $0x258] sm:$0xff]   ;;  %v7088_v39 = vrot.slane %v9403_v16, 11 }
 0x545   : > { %4265 = vst [vmem:[#allocation2 + $0x28] sm:$0xff] %v9416_v49  ;;  %v7172_v32 = vrot.slane %v5178_v43, 9  ;;  %v4355_v37 = vshrl.u32 %v9416_v49, 16  ;;  %v4347_v31 = vor.u32 %v4345_v48, %v4344_v6  ;;  %v8433_v59 = vpack.c.bf16 %v4237_v24, %v9411_v3 }
 0x546   : > { %v4238_v23 = vsel %vm4198_vm5, %v9391_v26, %v7083_v56  ;;  %v9457_v50 = vsel %vm9057_vm14, %v5190_v36, %v5191_v45  ;;  %v4358_v12 = vshll.u32 %v9416_v49, 16  ;;  %v4283_v14 = vrot.slane %v4281_v44, 4  ;;  %v8285_v45 = vld [vmem:[#allocation10 + $0x250] sm:$0xff]   ;;  %v8289_v36 = vld [vmem:[#allocation10 + $0x248] sm:$0xff]  }
 0x547   : > { %v9436_v53 = vpack.c.bf16 %v4238_v23, %v4237_v24  ;;  %v9446_v26 = vsel %vm9057_vm14, %v7172_v32, %v5188_v58  ;;  %v4348_v34 = vsel %vm8998_vm8, %v4340_v28, %v4347_v31  ;;  %v8432_v8 = vpack.c.bf16 %v4238_v23, %v4236_v41  ;;  %7515 = vmatpush3.bf16.msra.mxu0 %v8270_v13  ;;  %v8276_v41 = vld [vmem:[#allocation10 + $0x30] sm:$0xff]   ;;  %v8280_v32 = vld [vmem:[#allocation10 + $0x28] sm:$0xff]   ;;  %v8282_v24 = vld [vmem:[#allocation10 + $0x218] sm:$0xff]  }
 0x548   : > { %v4357_v30 = vrot.slane %v4355_v37, 7  ;;  %v7092_v40 = vcombine.low %v4339_v35, %v4348_v34  ;;  %v7093_v57 = vcombine.high %v4339_v35, %v4348_v34  ;;  %v4269_v42 = vld [vmem:[#allocation2 + $0x10] sm:$0x77]  ;;  %7516 = vmatprep.subr.bf16.mxu0 %v8273_v29  ;;  %v7175_v27 = vcombine.high %v9446_v26, %v9457_v50  ;;  %v8283_v23 = vld [vmem:[#allocation10 + $0x60] sm:$0xff]   ;;  %v8287_v29 = vld [vmem:[#allocation10 + $0x58] sm:$0xff]  }
 0x549   : > { %4266 = vst [vmem:[#allocation2 + $0x30] sm:$0xff] %v9436_v53  ;;  %4913 = vmatprep.mubr.bf16.mxu0 %v8432_v8  ;;  %v4364_v2 = vshrl.u32 %v9436_v53, 16  ;;  %v4367_v21 = vshll.u32 %v9436_v53, 16  ;;  %v4284_v3 = vrot.slane %v4269_v42, 7  ;;  %v9482_v16 = vsel %vm8947_vm11, %v7088_v39, %v4281_v44  ;;  %v8284_v28 = vld [vmem:[#allocation10 + $0x20] sm:$0xff]   ;;  %v8286_v31 = vld [vmem:[#allocation10 + $0x210] sm:$0xff]  }
 0x54a   : > { %4548 = vmatprep.mubr.bf16.mxu1 %v7093_v57  ;;  %4914 = vmatmul.mubr.bf16.gmra.mxu0 %v8433_v59  ;;  %v4360_v10 = vor.u32 %v4358_v12, %v4357_v30  ;;  %v4362_v7 = vrot.slane %v4357_v30, 4  ;;  %v8288_v35 = vld [vmem:[#allocation10 + $0x18] sm:$0xff]   ;;  %v8291_v34 = vld [vmem:[#allocation10 + $0x50] sm:$0xff]   ;;  %v8293_v59 = vld [vmem:[#allocation10 + $0x240] sm:$0xff]   ;;  %v5195_v30 = vrot.slane %v9436_v53, 5 }
 0x54b   : > { %4549 = vmatmul.mubr.bf16.vlgmr.msra.gmra.mxu1 %v7092_v40  ;;  %v4366_v0 = vrot.slane %v4364_v2, 7  ;;  %7517 = vmatpush3.bf16.msra.mxu0 %v8274_v51  ;;  %v9478_v43 = vsel %vm8947_vm11, %v4283_v14, %v4284_v3  ;;  %v9487_v40 = vld [vmem:[#allocation2 + $0x38] sm:$0x11]  ;;  %v8294_v51 = vld [vmem:[#allocation10 + $0x200] sm:$0xff]   ;;  %v8295_v42 = vld [vmem:[#allocation10 + $0x48] sm:$0xff]   ;;  %v7174_v3 = vcombine.low %v9446_v26, %v9457_v50  ;;  %v7089_v14 = vrot.slane %v9440_v18, 11 }
 0x54c   : > { %7429 = vmatpush3.bf16.msra.mxu1 %v8272_v20  ;;  %5377 = vmatprep.mubr.bf16.mxu0 %v7175_v27  ;;  %v4361_v56 = vsel %vm8998_vm8, %v7091_v61, %v4360_v10  ;;  %v7113_v13 = vcombine.high %v9482_v16, %v9478_v43  ;;  %v5179_v8 = vld [vmem:[#allocation2 + $0x28] sm:$0xee]  ;;  %v8292_v57 = vld [vmem:[#allocation10 + $0x10] sm:$0xff]   ;;  %v5198_v44 = vrot.slane %v9487_v40, 5  ;;  %v8297_v10 = vld [vmem:[#allocation10 + $0x40] sm:$0xff]   ;;  %v4935_v50 = vrot.slane %v4333_v15, 4 }
 0x54d   : > { %7430 = vmatprep.subr.bf16.mxu1 %v8275_v1  ;;  %v4369_v55 = vor.u32 %v4367_v21, %v4366_v0  ;;  %7518 = vmatprep.subr.bf16.mxu0 %v8277_v62  ;;  %v7173_v20 = vrot.slane %v5179_v8, 9  ;;  %v5197_v1 = vrot.slane %v5195_v30, 4  ;;  %v8296_v27 = vld [vmem:[#allocation10 + $0x8] sm:$0xff]   ;;  %v4288_v0 = vrot.slane %v9416_v49, 7  ;;  %v8299_v39 = vld [vmem:[#allocation10 + $0x1f8] sm:$0xff]  }
 0x54e   : > { %v4968_v8 = vrot.slane %v4367_v21, 5  ;;  %v8313_v21 = vld [vmem:[#allocation10 + $0x1c0] sm:$0xff]  }
 0x54f   : > { %v4370_v46 = vsel %vm8998_vm8, %v4362_v7, %v4369_v55  ;;  %7519 = vmatpush3.bf16.msra.mxu0 %v8278_v38  ;;  %v5196_v62 = vsel %vm9057_vm14, %v7173_v20, %v5195_v30  ;;  %v4944_v55 = vrot.slane %v4345_v48, 5  ;;  %v4290_v26 = vrot.slane %v4288_v0, 4  ;;  %v8310_v30 = vld [vmem:[#allocation10 + $0x190] sm:$0xff]  }
 0x550   : > { %7431 = vmatpush3.bf16.msra.mxu1 %v8276_v41  ;;  %v7095_v58 = vcombine.high %v4361_v56, %v4370_v46  ;;  %v7094_v6 = vcombine.low %v4361_v56, %v4370_v46  ;;  %7520 = vmatprep.subr.bf16.mxu0 %v8281_v17  ;;  %v4272_v61 = vld [vmem:[#allocation2 + $0x30] sm:$0x77]  ;;  %v5199_v41 = vsel %vm9057_vm14, %v5197_v1, %v5198_v44  ;;  %v8298_v17 = vld [vmem:[#allocation10] sm:$0xff]   ;;  %v4938_v56 = vrot.slane %v4336_v9, 5  ;;  %v8300_v46 = vld [vmem:[#allocation10 + $0x1b8] sm:$0xff]  }
 0x551   : > { %7432 = vmatprep.subr.bf16.mxu1 %v8279_v52  ;;  %v7177_v38 = vcombine.high %v5196_v62, %v5199_v41  ;;  %v4291_v7 = vrot.slane %v4272_v61, 7  ;;  %v4948_v52 = vrot.slane %v4342_v11, 4  ;;  %v4952_v11 = vshll.u32 %v9420_v33, 16  ;;  %v8303_v33 = vld [vmem:[#allocation10 + $0x1e8] sm:$0xff]  }
 0x552   : > { %4556 = vmatprep.mubr.bf16.mxu1 %v7095_v58  ;;  %v7112_v58 = vcombine.low %v9482_v16, %v9478_v43  ;;  %v4289_v18 = vsel %vm8947_vm11, %v7089_v14, %v4288_v0  ;;  %v4939_v15 = vor.u32 %v4938_v56, %v4935_v50  ;;  %v7176_v60 = vcombine.low %v5196_v62, %v5199_v41  ;;  %v8304_v16 = vld [vmem:[#allocation10 + $0x1a8] sm:$0xff]   ;;  %v8314_v62 = vld [vmem:[#allocation10 + $0x180] sm:$0xff]   ;;  %v8315_v0 = vld [vmem:[%s9879_s11 + $0x38] sm:$0xff]  }
 0x553   : > { %4557 = vmatmul.mubr.bf16.gmra.mxu1 %v7094_v6  ;;  %7521 = vmatpush3.bf16.msra.mxu0 %v8282_v24  ;;  %v4292_v48 = vsel %vm8947_vm11, %v4290_v26, %v4291_v7  ;;  %v4949_v19 = vor.u32 %v4948_v52, %v4944_v55  ;;  %v8301_v6 = vld [vmem:[#allocation10 + $0x1f0] sm:$0xff]   ;;  %v4954_v24 = vrot.slane %v4952_v11, 5  ;;  %v4959_v20 = vrot.slane %v4355_v37, 4  ;;  %v8312_v44 = vld [vmem:[#allocation10 + $0x188] sm:$0xff]   ;;  %v8321_v52 = vld [vmem:[%s9879_s11 + $0x20] sm:$0xff]  }
 0x554   : > { %7433 = vmatpush3.bf16.msra.mxu1 %v8280_v32  ;;  %4709 = vmatprep.mubr.bf16.mxu1 %v7113_v13  ;;  %v7115_v32 = vcombine.high %v4289_v18, %v4292_v48  ;;  %v4940_v13 = vrot.slane %v4939_v15, 4  ;;  %v4976_v1 = vshll.u32 %v9487_v40, 16  ;;  %v8317_v41 = vld [vmem:[%s9879_s11 + $0x30] sm:$0xff]   ;;  %v8319_v7 = vld [vmem:[%s9879_s11 + $0x28] sm:$0xff]   ;;  %v8324_v14 = vld [vmem:[%s9879_s11 + $0x58] sm:$0xff]  }
 0x555   : > { %7434 = vmatprep.subr.bf16.mxu1 %v8283_v23  ;;  %7522 = vmatprep.subr.bf16.mxu0 %v8285_v45  ;;  %v4950_v9 = vrot.slane %v4949_v19, 4  ;;  %v8302_v23 = vld [vmem:[#allocation10 + $0x1b0] sm:$0xff]   ;;  %v7114_v45 = vcombine.low %v4289_v18, %v4292_v48  ;;  %v8327_v56 = vld [vmem:[%s9879_s11 + $0x8] sm:$0xff]   ;;  %v8329_v19 = vld [vmem:[%s9879_s11] sm:$0xff]  }
 0x556   : > { %v8325_v26 = vld [vmem:[%s9879_s11 + $0x10] sm:$0xff]   ;;  %v8328_v48 = vld [vmem:[%s9879_s11 + $0x48] sm:$0xff]   ;;  %v8330_v11 = vld [vmem:[%s9879_s11 + $0x40] sm:$0xff]  }
 0x557   : > { %7523 = vmatpush3.bf16.msra.mxu0 %v8286_v31  ;;  %v4955_v43 = vsel %vm9021_vm9, %v4950_v9, %v4954_v24  ;;  %v8305_v31 = vld [vmem:[#allocation10 + $0x1e0] sm:$0xff]   ;;  %v8326_v50 = vld [vmem:[%s9879_s11 + $0x50] sm:$0xff]  }
 0x558   : > { %7435 = vmatpush3.bf16.msra.mxu1 %v8284_v28  ;;  %7524 = vmatprep.subr.bf16.mxu0 %v8289_v36  ;;  %v4945_v28 = vsel %vm9021_vm9, %v4940_v13, %v4944_v55  ;;  %v8306_v36 = vld [vmem:[#allocation10 + $0x1a0] sm:$0xff]  }
 0x559   : > { %7436 = vmatprep.subr.bf16.mxu1 %v8287_v29  ;;  %v7153_v29 = vcombine.high %v4945_v28, %v4955_v43  ;;  %v7152_v49 = vcombine.low %v4945_v28, %v4955_v43  ;;  %v8320_v55 = vld [vmem:[%s9879_s11 + $0x68] sm:$0xff]  }
 0x55b   : > { %7525 = vmatpush3.bf16.msra.mxu0 %v8290_v47  ;;  %v8308_v47 = vld [vmem:[#allocation10 + $0x198] sm:$0xff]  }
 0x55c   : > { %7437 = vmatpush3.bf16.msra.mxu1 %v8288_v35  ;;  %7526 = vmatprep.subr.bf16.mxu0 %v8293_v59  ;;  %v8307_v35 = vld [vmem:[#allocation10 + $0x1d8] sm:$0xff]   ;;  %v4972_v59 = vrot.slane %v4364_v2, 4  ;;  %v4978_v2 = vrot.slane %v4976_v1, 5 }
 0x55d   : > { %7438 = vmatprep.subr.bf16.mxu1 %v8291_v34  ;;  %v8309_v34 = vld [vmem:[#allocation10 + $0x1d0] sm:$0xff]  }
 0x55f   : > { %7527 = vmatpush3.bf16.msra.mxu0 %v8294_v51  ;;  %v4962_v51 = vrot.slane %v4358_v12, 5 }
 0x560   : > { %7439 = vmatpush3.bf16.msra.mxu1 %v8292_v57  ;;  %v8311_v57 = vld [vmem:[#allocation10 + $0x1c8] sm:$0xff]   ;;  %7670 = vmatprep.subr.bf16.mxu0 %v8315_v0 }
 0x561   : > { %7440 = vmatprep.subr.bf16.mxu1 %v8295_v42  ;;  %v4973_v42 = vor.u32 %v4972_v59, %v4968_v8 }
 0x562   : > { %5378 = vmatmul.mubr.bf16.vlgmr.msra.gmra.mxu0 %v7174_v3  ;;  %v8316_v3 = vld [vmem:[%s9879_s11 + $0x78] sm:$0xff]  }
 0x563   : > { %5385 = vmatprep.mubr.bf16.mxu0 %v7177_v38  ;;  %v4974_v53 = vrot.slane %v4973_v42, 4  ;;  %7671 = vmatpush3.bf16.msra.mxu0 %v8315_v0  ;;  %v8318_v38 = vld [vmem:[%s9879_s11 + $0x70] sm:$0xff]  }
 0x564   : > { %7441 = vmatpush3.bf16.msra.mxu1 %v8296_v27  ;;  %v4963_v27 = vor.u32 %v4962_v51, %v4959_v20  ;;  %7672 = vmatprep.subr.bf16.mxu0 %v8317_v41 }
 0x565   : > { %7442 = vmatprep.subr.bf16.mxu1 %v8297_v10  ;;  %v4979_v37 = vsel %vm9021_vm9, %v4974_v53, %v4978_v2 }
 0x566   : > { %v4964_v61 = vrot.slane %v4963_v27, 4 }
 0x567   : > { %7673 = vmatpush3.bf16.msra.mxu0 %v8317_v41 }
 0x568   : > { %7443 = vmatpush3.bf16.msra.mxu1 %v8298_v17  ;;  %v4969_v12 = vsel %vm9021_vm9, %v4964_v61, %v4968_v8  ;;  %7674 = vmatprep.subr.bf16.mxu0 %v8319_v7  ;;  %v8322_v17 = vld [vmem:[%s9879_s11 + $0x60] sm:$0xff]  }
 0x569   : > { %7484 = vmatprep.subr.bf16.mxu1 %v8299_v39  ;;  %v7155_v40 = vcombine.high %v4969_v12, %v4979_v37  ;;  %v7154_v10 = vcombine.low %v4969_v12, %v4979_v37  ;;  %v8323_v39 = vld [vmem:[%s9879_s11 + $0x18] sm:$0xff]  }
 0x56a   : > { %5386 = vmatmul.mubr.bf16.gmra.mxu0 %v7176_v60 }
 0x56b   : > { %4710 = vmatmul.mubr.bf16.vlgmr.msra.gmra.mxu1 %v7112_v58  ;;  %7675 = vmatpush3.bf16.msra.mxu0 %v8319_v7  ;;  %v9587_v58 = vld [vmem:[%s9879_s11 + $0xb8] sm:$0xff]  }
 0x56c   : > { %4717 = vmatprep.mubr.bf16.mxu1 %v7115_v32  ;;  %7485 = vmatpush3.bf16.msra.mxu1 %v8300_v46  ;;  %v9581_v46 = vld [vmem:[%s9879_s11 + $0xf8] sm:$0xff]  }
 0x56d   : > { %7486 = vmatprep.subr.bf16.mxu1 %v8301_v6  ;;  %7676 = vmatprep.subr.bf16.mxu0 %v8321_v52 }
 0x56f   : > { %7677 = vmatpush3.bf16.msra.mxu0 %v8321_v52  ;;  %v7194_v52 = vld [vmem:[%s9878_s10] ss:$0 sm:$0xff] }
 0x570   : > { %7487 = vmatpush3.bf16.msra.mxu1 %v8302_v23  ;;  %7678 = vmatprep.subr.bf16.mxu0 %v8323_v39 }
 0x571   : > { %7488 = vmatprep.subr.bf16.mxu1 %v8303_v33 }
 0x573   : > { %4718 = vmatmul.mubr.bf16.gmra.mxu1 %v7114_v45  ;;  %7679 = vmatpush3.bf16.msra.mxu0 %v8323_v39 }
 0x574   : > { %7489 = vmatpush3.bf16.msra.mxu1 %v8304_v16  ;;  %5157 = vmatprep.mubr.bf16.mxu1 %v7153_v29 }
 0x575   : > { %7490 = vmatprep.subr.bf16.mxu1 %v8305_v31  ;;  %7680 = vmatprep.subr.bf16.mxu0 %v8325_v26 }
 0x577   : > { %7681 = vmatpush3.bf16.msra.mxu0 %v8325_v26 }
 0x578   : > { %7491 = vmatpush3.bf16.msra.mxu1 %v8306_v36  ;;  %7682 = vmatprep.subr.bf16.mxu0 %v8327_v56 }
 0x579   : > { %7492 = vmatprep.subr.bf16.mxu1 %v8307_v35 }
 0x57b   : > { %7683 = vmatpush3.bf16.msra.mxu0 %v8327_v56 }
 0x57c   : > { %7493 = vmatpush3.bf16.msra.mxu1 %v8308_v47  ;;  %7684 = vmatprep.subr.bf16.mxu0 %v8329_v19 }
 0x57d   : > { %7494 = vmatprep.subr.bf16.mxu1 %v8309_v34 }
 0x57f   : > { %7685 = vmatpush3.bf16.msra.mxu0 %v8329_v19 }
 0x580   : > { %7495 = vmatpush3.bf16.msra.mxu1 %v8310_v30  ;;  %7710 = vmatprep.subr.bf16.mxu0 %v9581_v46 }
 0x581   : > { %7496 = vmatprep.subr.bf16.mxu1 %v8311_v57 }
 0x584   : > { %7497 = vmatpush3.bf16.msra.mxu1 %v8312_v44 }
 0x585   : > { %7498 = vmatprep.subr.bf16.mxu1 %v8313_v21 }
 0x588   : > { %7499 = vmatpush3.bf16.msra.mxu1 %v8314_v62 }
 0x589   : > { %7650 = vmatprep.subr.bf16.mxu1 %v8316_v3 }
 0x58b   : > { %5158 = vmatmul.mubr.bf16.vlgmr.msra.gmra.mxu1 %v7152_v49 }
 0x58c   : > { %5165 = vmatprep.mubr.bf16.mxu1 %v7155_v40  ;;  %7651 = vmatpush3.bf16.msra.mxu1 %v8316_v3 }
 0x58d   : > { %7652 = vmatprep.subr.bf16.mxu1 %v8318_v38 }
 0x590   : > { %7653 = vmatpush3.bf16.msra.mxu1 %v8318_v38 }
 0x591   : > { %7654 = vmatprep.subr.bf16.mxu1 %v8320_v55 }
 0x593   : > { %5166 = vmatmul.mubr.bf16.gmra.mxu1 %v7154_v10 }
 0x594   : > { %7655 = vmatpush3.bf16.msra.mxu1 %v8320_v55 }
 0x595   : > { %7656 = vmatprep.subr.bf16.mxu1 %v8322_v17 }
 0x598   : > { %7657 = vmatpush3.bf16.msra.mxu1 %v8322_v17 }
 0x599   : > { %7658 = vmatprep.subr.bf16.mxu1 %v8324_v14 }
 0x59c   : > { %7659 = vmatpush3.bf16.msra.mxu1 %v8324_v14 }
 0x59d   : > { %7660 = vmatprep.subr.bf16.mxu1 %v8326_v50 }
 0x5a0   : > { %7661 = vmatpush3.bf16.msra.mxu1 %v8326_v50 }
 0x5a1   : > { %7662 = vmatprep.subr.bf16.mxu1 %v8328_v48 }
 0x5a4   : > { %7663 = vmatpush3.bf16.msra.mxu1 %v8328_v48 }
 0x5a5   : > { %7664 = vmatprep.subr.bf16.mxu1 %v8330_v11 }
 0x5a8   : > { %7665 = vmatpush3.bf16.msra.mxu1 %v8330_v11 }
 0x5a9   : > { %7690 = vmatprep.subr.bf16.mxu1 %v9587_v58 }
 0x602   : > { %v7472_v9 = vpop.f32.mrf.mxu0 }
 0x604   : > { %v7473_v23 = vpop.f32.mrf.mxu0 }
 0x605   : > { %v7474_v62 = vadd.f32 %v7473_v23, %v7472_v9 }
 0x606   : > { %v7475_v13 = vpop.f32.mrf.mxu0 }
 0x608   : > { %v7476_v16 = vpop.f32.mrf.mxu0 }
 0x609   : > { %v7477_v41 = vadd.f32 %v7476_v16, %v7475_v13 }
 0x60a   : > { %v7478_v28 = vpop.f32.mrf.mxu0 }
 0x60b   : > { %v7416_v18 = vpop.f32.mrf.mxu1 }
 0x60c   : > { %v7479_v29 = vpop.f32.mrf.mxu0 }
 0x60d   : > { %v7417_v6 = vpop.f32.mrf.mxu1  ;;  %v7480_v11 = vadd.f32 %v7479_v29, %v7478_v28 }
 0x60e   : > { %v7481_v35 = vpop.f32.mrf.mxu0  ;;  %v7418_v1 = vadd.f32 %v7417_v6, %v7416_v18 }
 0x60f   : > { %v7419_v15 = vpop.f32.mrf.mxu1 }
 0x610   : > { %v7482_v34 = vpop.f32.mrf.mxu0 }
 0x611   : > { %v7420_v32 = vpop.f32.mrf.mxu1 }
 0x612   : > { %v7421_v61 = vadd.f32 %v7420_v32, %v7419_v15 }
 0x613   : > { %v7422_v60 = vpop.f32.mrf.mxu1 }
 0x615   : > { %v7423_v24 = vpop.f32.mrf.mxu1 }
 0x616   : > { %v7424_v38 = vadd.f32 %v7423_v24, %v7422_v60 }
 0x617   : > { %v7425_v33 = vpop.f32.mrf.mxu1 }
 0x619   : > { %v7426_v43 = vpop.f32.mrf.mxu1 }
 0x61a   : > { %v7427_v32 = vadd.f32 %v7426_v43, %v7425_v33 }
 0x622   : > { %v7528_v59 = vpop.f32.mrf.mxu0 }
 0x624   : > { %v7529_v57 = vpop.f32.mrf.mxu0 }
 0x625   : > { %v7530_v7 = vadd.f32 %v7529_v57, %v7528_v59 }
 0x626   : > { %v7531_v51 = vpop.f32.mrf.mxu0 }
 0x628   : > { %v7532_v21 = vpop.f32.mrf.mxu0 }
 0x629   : > { %v7533_v18 = vadd.f32 %v7532_v21, %v7531_v51 }
 0x62a   : > { %v7534_v49 = vpop.f32.mrf.mxu0 }
 0x62b   : > { %v7444_v45 = vpop.f32.mrf.mxu1 }
 0x62c   : > { %v7535_v39 = vpop.f32.mrf.mxu0 }
 0x62d   : > { %v7445_v31 = vpop.f32.mrf.mxu1 }
 0x62e   : > { %v7446_v42 = vadd.f32 %v7445_v31, %v7444_v45  ;;  %v7537_v9 = vpop.f32.mrf.mxu0 }
 0x62f   : > { %v7447_v36 = vpop.f32.mrf.mxu1 }
 0x630   : > { %v4712_v27 = vadd.f32 %v7446_v42, %v7418_v1 }
 0x631   : > { %v7448_v47 = vpop.f32.mrf.mxu1 }
 0x632   : > { %v7449_v53 = vadd.f32 %v7448_v47, %v7447_v36  ;;  %v4922_v10 = vadd.f32 %v7474_v62, %v4712_v27  ;;  %v7536_v36 = vadd.f32 %v7535_v39, %v7534_v49 }
 0x633   : > { %v7450_v8 = vpop.f32.mrf.mxu1 }
 0x634   : > { %v4715_v12 = vadd.f32 %v7449_v53, %v7421_v61 }
 0x635   : > { %v7451_v30 = vpop.f32.mrf.mxu1 }
 0x636   : > { %v7452_v40 = vadd.f32 %v7451_v30, %v7450_v8  ;;  %v4923_v50 = vadd.f32 %v7477_v41, %v4715_v12  ;;  %v7483_v30 = vadd.f32 %v7482_v34, %v7481_v35 }
 0x637   : > { %v7453_v20 = vpop.f32.mrf.mxu1 }
 0x638   : > { %v4720_v14 = vadd.f32 %v7452_v40, %v7424_v38  ;;  %v5453_v38 = vld [vmem:[#allocation3] sm:$0x8] }
 0x639   : > { %v7454_v44 = vpop.f32.mrf.mxu1 }
 0x63a   : > { %v7455_v48 = vadd.f32 %v7454_v44, %v7453_v20  ;;  %v4924_v13 = vadd.f32 %v7480_v11, %v4720_v14  ;;  %v7538_v20 = vpop.f32.mrf.mxu0  ;;  %v9597_v11 = vld [vmem:[#allocation3 + $0x18] sm:$0x1] }
 0x63b   : > { %v7539_v1 = vadd.f32 %v7538_v20, %v7537_v9  ;;  %v5922_v9 = vshll.u32 %v9597_v11, 16 }
 0x63c   : > { %v4723_v45 = vadd.f32 %v7455_v48, %v7427_v32 }
 0x63e   : > { %v4925_v51 = vadd.f32 %v7483_v30, %v4723_v45 }
 0x64b   : > { %v7500_v2 = vpop.f32.mrf.mxu1 }
 0x64d   : > { %v7501_v37 = vpop.f32.mrf.mxu1 }
 0x64e   : > { %v7502_v0 = vadd.f32 %v7501_v37, %v7500_v2 }
 0x64f   : > { %v7503_v3 = vpop.f32.mrf.mxu1 }
 0x650   : > { %v5174_v55 = vadd.f32 %v7502_v0, %v4922_v10 }
 0x651   : > { %v7504_v17 = vpop.f32.mrf.mxu1 }
 0x652   : > { %v5394_v26 = vadd.f32 %v7530_v7, %v5174_v55  ;;  %v7505_v56 = vadd.f32 %v7504_v17, %v7503_v3  ;;  %v5498_v55 = vshrl.u32 %v5453_v38, 16 }
 0x653   : > { %v7506_v19 = vpop.f32.mrf.mxu1 }
 0x654   : > { %v5405_v6 = vadd.f32 %v7194_v52, %v5394_v26  ;;  %v5175_v15 = vadd.f32 %v7505_v56, %v4923_v50  ;;  %v7203_v50 = vrot.slane %v5453_v38, 11 }
 0x655   : > { %v7507_v60 = vpop.f32.mrf.mxu1 }
 0x656   : > { %v5413_v24 = vmin.f32 %v5405_v6, 0.0  ;;  %v5395_v23 = vadd.f32 %v7533_v18, %v5175_v15  ;;  %v7508_v16 = vadd.f32 %v7507_v60, %v7506_v19  ;;  %vm5409_vm6 = vcmp.gt.f32.partialorder %v5405_v6, 0.0 }
 0x657   : > { %v7509_v31 = vpop.f32.mrf.mxu1  ;;  %v7205_v19 = vrot.slane %v5498_v55, 11 }
 0x658   : > { %v5417_v47 = vmul.f32 1.442695, %v5413_v24  ;;  %v5406_v8 = vadd.f32 %v7194_v52, %v5395_v23  ;;  %v5176_v59 = vadd.f32 %v7508_v16, %v4924_v13 }
 0x659   : > { %v7510_v57 = vpop.f32.mrf.mxu1 }
 0x65a   : > { %8409 = vpow2.f32 %v5417_v47  ;;  %v5414_v28 = vmin.f32 %v5406_v8, 0.0  ;;  %v5396_v29 = vadd.f32 %v7536_v36, %v5176_v59  ;;  %v7511_v33 = vadd.f32 %v7510_v57, %v7509_v31 }
 0x65b   : > { %vm5410_vm7 = vcmp.gt.f32.partialorder %v5406_v8, 0.0 }
 0x65c   : > { %v5419_v43 = vmul.f32 1.442695, %v5414_v28  ;;  %v5407_v42 = vadd.f32 %v7194_v52, %v5396_v29  ;;  %v5177_v44 = vadd.f32 %v7511_v33, %v4925_v51  ;;  %v5456_v51 = vld [vmem:[#allocation3 + $0x20] sm:$0x8] }
 0x65e   : > { %8411 = vpow2.f32 %v5419_v43  ;;  %v5415_v21 = vmin.f32 %v5407_v42, 0.0  ;;  %v5397_v27 = vadd.f32 %v7539_v1, %v5177_v44  ;;  %vm5411_vm10 = vcmp.gt.f32.partialorder %v5407_v42, 0.0 }
 0x660   : > { %v5421_v53 = vmul.f32 1.442695, %v5415_v21  ;;  %v5408_v2 = vadd.f32 %v7194_v52, %v5397_v27 }
 0x662   : > { %8413 = vpow2.f32 %v5421_v53  ;;  %v5416_v62 = vmin.f32 %v5408_v2, 0.0  ;;  %vm5412_vm13 = vcmp.gt.f32.partialorder %v5408_v2, 0.0 }
 0x664   : > { %v5423_v61 = vmul.f32 1.442695, %v5416_v62  ;;  %v7204_v62 = vrot.slane %v5456_v51, 11 }
 0x666   : > { %8415 = vpow2.f32 %v5423_v61 }
 0x667   : > { %v8410_v35 = vpop.eup %8409 }
 0x668   : > { %v7195_v34 = vadd.f32 -1.0, %v8410_v35  ;;  %v5924_v35 = vrot.slane %v5922_v9, 5 }
 0x66a   : > { %v5429_v37 = vsel %vm5409_vm6, %v5405_v6, %v7195_v34 }
 0x66b   : > { %v8412_v49 = vpop.eup %8411  ;;  %v7361_v12 = vpack.c.bf16 %v5429_v37, %v5429_v37 }
 0x66c   : > { %v7196_v40 = vadd.f32 -1.0, %v8412_v49 }
 0x66d   : > { %5449 = vst [vmem:[#allocation3 + $0x8] sm:$0xf] %v7361_v12  ;;  %v5520_v12 = vshrl.u32 %v5456_v51, 16 }
 0x66e   : > { %v5430_v10 = vsel %vm5410_vm7, %v5406_v8, %v7196_v40 }
 0x66f   : > { %v8414_v0 = vpop.eup %8413  ;;  %v7362_v3 = vpack.c.bf16 %v5430_v10, %v5430_v10 }
 0x670   : > { %v7197_v41 = vadd.f32 -1.0, %v8414_v0 }
 0x671   : > { %5450 = vst [vmem:[#allocation3 + $0x10] sm:$0xf] %v7362_v3 }
 0x672   : > { %v5431_v7 = vsel %vm5411_vm10, %v5407_v42, %v7197_v41 }
 0x673   : > { %v7363_v52 = vpack.c.bf16 %v5431_v7, %v5431_v7  ;;  %v8416_v17 = vpop.eup %8415 }
 0x674   : > { %v9593_v39 = vld [vmem:[#allocation3 + $0x8] sm:$0xf]  ;;  %v7198_v26 = vadd.f32 -1.0, %v8416_v17 }
 0x675   : > { %v5896_v14 = vld [vmem:[#allocation3 + $0x8] sm:$0xf]  ;;  %5451 = vst [vmem:[#allocation3 + $0x28] sm:$0xf] %v7363_v52  ;;  %v5467_v56 = vrot.slane %v9593_v39, 7  ;;  %v5503_v48 = vshrl.u32 %v9593_v39, 16 }
 0x676   : > { %v5903_v18 = vshrl.u32 %v5896_v14, 16  ;;  %v5906_v6 = vshll.u32 %v5896_v14, 16  ;;  %v5432_v15 = vsel %vm5412_vm13, %v5408_v2, %v7198_v26  ;;  %v5506_v60 = vshll.u32 %v9593_v39, 16 }
 0x677   : > { %v5505_v32 = vrot.slane %v5503_v48, 7  ;;  %v7364_v24 = vpack.c.bf16 %v5432_v15, %v5432_v15  ;;  %v5468_v45 = vsel %vm8947_vm11, %v7203_v50, %v5467_v56  ;;  %v5469_v31 = vrot.slane %v5467_v56, 4 }
 0x678   : > { %v5455_v23 = vld [vmem:[#allocation3 + $0x10] sm:$0x7]  ;;  %v5905_v59 = vrot.slane %v5903_v18, 4  ;;  %v5908_v30 = vrot.slane %v5906_v6, 5  ;;  %v7206_v50 = vrot.slane %v5520_v12, 11 }
 0x679   : > { %v9601_v13 = vld [vmem:[#allocation3 + $0x10] sm:$0xf]  ;;  %v5470_v36 = vrot.slane %v5455_v23, 7  ;;  %5452 = vst [vmem:[#allocation3 + $0x30] sm:$0xf] %v7364_v24  ;;  %v5508_v8 = vor.u32 %v5506_v60, %v5505_v32  ;;  %v5510_v42 = vrot.slane %v5505_v32, 4 }
 0x67a   : > { %v9603_v16 = vld [vmem:[#allocation3 + $0x10] sm:$0xf]  ;;  %v5512_v47 = vshrl.u32 %v9601_v13, 16  ;;  %v5515_v29 = vshll.u32 %v9601_v13, 16  ;;  %v5909_v27 = vor.u32 %v5908_v30, %v5905_v59 }
 0x67b   : > { %v5912_v57 = vshll.u32 %v9603_v16, 16  ;;  %v5471_v20 = vsel %vm8947_vm11, %v5469_v31, %v5470_v36  ;;  %v5916_v33 = vshrl.u32 %v9603_v16, 16  ;;  %v5509_v34 = vsel %vm8998_vm8, %v7205_v19, %v5508_v8  ;;  %v8333_v32 = vld [vmem:[%s9879_s11 + $0xf0] sm:$0xff]   ;;  %v8336_v36 = vld [vmem:[%s9879_s11 + $0xe8] sm:$0xff]  }
 0x67c   : > { %v5514_v28 = vrot.slane %v5512_v47, 7  ;;  %v7233_v43 = vcombine.low %v5468_v45, %v5471_v20  ;;  %v9613_v1 = vld [vmem:[#allocation3 + $0x28] sm:$0xf]  ;;  %v5910_v3 = vrot.slane %v5909_v27, 4  ;;  %v8335_v31 = vld [vmem:[%s9879_s11 + $0xb0] sm:$0xff]   ;;  %v8338_v47 = vld [vmem:[%s9879_s11 + $0xe0] sm:$0xff]  }
 0x67d   : > { %v5914_v44 = vrot.slane %v5912_v57, 5  ;;  %v5918_v53 = vrot.slane %v5916_v33, 4  ;;  %v5525_v2 = vshrl.u32 %v9613_v1, 16  ;;  %v5474_v61 = vrot.slane %v9613_v1, 7  ;;  %v9679_v27 = vld [vmem:[#allocation3 + $0x38] sm:$0x1] }
 0x67e   : > { %v5517_v21 = vor.u32 %v5515_v29, %v5514_v28  ;;  %7686 = vmatprep.mubr.bf16.mxu0 %v7233_v43  ;;  %v5528_v52 = vshll.u32 %v9613_v1, 16  ;;  %v8341_v28 = vld [vmem:[%s9879_s11 + $0x98] sm:$0xff]   ;;  %v8342_v29 = vld [vmem:[%s9879_s11 + $0xd0] sm:$0xff]  }
 0x67f   : > { %v5919_v49 = vor.u32 %v5918_v53, %v5914_v44  ;;  %v5527_v10 = vrot.slane %v5525_v2, 7  ;;  %v5476_v7 = vrot.slane %v5474_v61, 4  ;;  %v5475_v14 = vsel %vm8947_vm11, %v7204_v62, %v5474_v61  ;;  %v8345_v61 = vld [vmem:[%s9879_s11 + $0x88] sm:$0xff]  }
 0x680   : > { %v5518_v37 = vsel %vm8998_vm8, %v5510_v42, %v5517_v21  ;;  %v5458_v0 = vld [vmem:[#allocation3 + $0x30] sm:$0x7]  ;;  %v5915_v15 = vsel %vm9021_vm9, %v5910_v3, %v5914_v44  ;;  %v8344_v21 = vld [vmem:[%s9879_s11 + $0xc8] sm:$0xff]   ;;  %v5946_v2 = vshll.u32 %v9679_v27, 16  ;;  %v6089_v3 = vrot.slane %v9597_v11, 5 }
 0x681   : > { %v7223_v40 = vcombine.low %v5509_v34, %v5518_v37  ;;  %v5920_v41 = vrot.slane %v5919_v49, 4  ;;  %v9621_v38 = vld [vmem:[#allocation3 + $0x30] sm:$0xf]  ;;  %v5477_v55 = vrot.slane %v5458_v0, 7  ;;  %v5530_v48 = vor.u32 %v5528_v52, %v5527_v10 }
 0x682   : > { %v5534_v17 = vshrl.u32 %v9621_v38, 16  ;;  %v5537_v18 = vshll.u32 %v9621_v38, 16  ;;  %v5532_v9 = vrot.slane %v5527_v10, 4  ;;  %v9657_v8 = vld [vmem:[#allocation3 + $0x30] sm:$0xf]  ;;  %v5948_v37 = vrot.slane %v5946_v2, 5 }
 0x683   : > { %7666 = vmatprep.mubr.bf16.mxu1 %v7223_v40  ;;  %v5925_v26 = vsel %vm9021_vm9, %v5920_v41, %v5924_v35  ;;  %v5478_v56 = vsel %vm8947_vm11, %v5476_v7, %v5477_v55  ;;  %v5531_v22 = vsel %vm8998_vm8, %v7206_v50, %v5530_v48  ;;  %v5936_v59 = vshll.u32 %v9657_v8, 16  ;;  %v8343_v44 = vld [vmem:[%s9879_s11 + $0x90] sm:$0xff]   ;;  %v8346_v35 = vld [vmem:[%s9879_s11 + $0xc0] sm:$0xff]   ;;  %v6076_v41 = vld [vmem:[#allocation3 + $0x8] sm:$0xe] }
 0x684   : > { %v5536_v19 = vrot.slane %v5534_v17, 7  ;;  %v7234_v6 = vcombine.low %v5475_v14, %v5478_v56  ;;  %v7285_v60 = vcombine.low %v5915_v15, %v5925_v26  ;;  %v5940_v30 = vshrl.u32 %v9657_v8, 16  ;;  %v8347_v40 = vld [vmem:[%s9879_s11 + $0x80] sm:$0xff]   ;;  %v8349_v55 = vld [vmem:[%s9879_s11 + $0x138] sm:$0xff]   ;;  %v8350_v14 = vld [vmem:[%s9879_s11 + $0x130] sm:$0xff]  }
 0x685   : > { %v5938_v51 = vrot.slane %v5936_v59, 5  ;;  %v6086_v49 = vrot.slane %v9603_v16, 5  ;;  %v7295_v52 = vrot.slane %v6076_v41, 9  ;;  %v7260_v11 = vcombine.low %v9613_v1, %v9621_v38  ;;  %v8351_v50 = vld [vmem:[%s9879_s11 + $0x128] sm:$0xff]   ;;  %v8352_v1 = vld [vmem:[%s9879_s11 + $0x120] sm:$0xff]   ;;  %v8353_v38 = vld [vmem:[%s9879_s11 + $0x118] sm:$0xff]  }
 0x686   : > { %v5539_v24 = vor.u32 %v5537_v18, %v5536_v19  ;;  %7687 = vmatmul.mubr.bf16.vlgmr.msra.gmra.mxu0 %v7234_v6  ;;  %v5942_v33 = vrot.slane %v5940_v30, 4  ;;  %v8354_v56 = vld [vmem:[%s9879_s11 + $0x110] sm:$0xff]   ;;  %v8355_v48 = vld [vmem:[%s9879_s11 + $0x108] sm:$0xff]   ;;  %v6093_v19 = vrot.slane %v9657_v8, 5  ;;  %v8356_v18 = vld [vmem:[%s9879_s11 + $0x100] sm:$0xff]   ;;  %v6096_v15 = vrot.slane %v9679_v27, 5 }
 0x687   : > { %7711 = vmatpush3.bf16.msra.mxu0 %v9581_v46  ;;  %7726 = vmatprep.mubr.bf16.mxu0 %v7285_v60  ;;  %v7259_v46 = vcombine.low %v9593_v39, %v9601_v13  ;;  %v8340_v39 = vld [vmem:[%s9879_s11 + $0xd8] sm:$0xff]   ;;  %v5899_v13 = vld [vmem:[#allocation3 + $0x28] sm:$0xf]  ;;  %v6088_v0 = vrot.slane %v6086_v49, 4  ;;  %v6087_v63 = vsel %vm9057_vm14, %v7295_v52, %v6086_v49 }
 0x688   : > { %v5540_v23 = vsel %vm8998_vm8, %v5532_v9, %v5539_v24  ;;  %7712 = vmatprep.subr.bf16.mxu0 %v8333_v32  ;;  %v5927_v57 = vshrl.u32 %v5899_v13, 16  ;;  %v5930_v20 = vshll.u32 %v5899_v13, 16  ;;  %v5943_v53 = vor.u32 %v5942_v33, %v5938_v51 }
 0x689   : > { %v7224_v45 = vcombine.low %v5531_v22, %v5540_v23  ;;  %v6090_v17 = vsel %vm9057_vm14, %v6088_v0, %v6089_v3  ;;  %v6095_v6 = vrot.slane %v6093_v19, 4 }
 0x68a   : > { %v5929_v43 = vrot.slane %v5927_v57, 4  ;;  %v5932_v42 = vrot.slane %v5930_v20, 5  ;;  %v5944_v34 = vrot.slane %v5943_v53, 4  ;;  %v7313_v26 = vcombine.low %v6087_v63, %v6090_v17 }
 0x68b   : > { %7667 = vmatmul.mubr.bf16.vlgmr.msra.gmra.mxu1 %v7224_v45  ;;  %7713 = vmatpush3.bf16.msra.mxu0 %v8333_v32  ;;  %v6077_v32 = vld [vmem:[#allocation3 + $0x28] sm:$0xe]  ;;  %v6097_v9 = vsel %vm9057_vm14, %v6095_v6, %v6096_v15 }
 0x68c   : > { %7691 = vmatpush3.bf16.msra.mxu1 %v9587_v58  ;;  %7706 = vmatprep.mubr.bf16.mxu1 %v7259_v46  ;;  %v8339_v58 = vld [vmem:[%s9879_s11 + $0xa0] sm:$0xff]   ;;  %v5933_v62 = vor.u32 %v5932_v42, %v5929_v43  ;;  %v5949_v10 = vsel %vm9021_vm9, %v5944_v34, %v5948_v37  ;;  %v7296_v60 = vrot.slane %v6077_v32, 9 }
 0x68d   : > { %7692 = vmatprep.subr.bf16.mxu1 %v8335_v31  ;;  %7714 = vmatprep.subr.bf16.mxu0 %v8336_v36 }
 0x68e   : > { %v5934_v12 = vrot.slane %v5933_v62, 4  ;;  %v6094_v24 = vsel %vm9057_vm14, %v7296_v60, %v6093_v19 }
 0x68f   : > { %7715 = vmatpush3.bf16.msra.mxu0 %v8336_v36  ;;  %v7314_v22 = vcombine.low %v6094_v24, %v6097_v9 }
 0x690   : > { %7693 = vmatpush3.bf16.msra.mxu1 %v8335_v31  ;;  %7716 = vmatprep.subr.bf16.mxu0 %v8338_v47  ;;  %v5939_v16 = vsel %vm9021_vm9, %v5934_v12, %v5938_v51 }
 0x691   : > { %7694 = vmatprep.subr.bf16.mxu1 %v8337_v54  ;;  %v7286_v7 = vcombine.low %v5939_v16, %v5949_v10 }
 0x693   : > { %7717 = vmatpush3.bf16.msra.mxu0 %v8338_v47 }
 0x694   : > { %7695 = vmatpush3.bf16.msra.mxu1 %v8337_v54  ;;  %7718 = vmatprep.subr.bf16.mxu0 %v8340_v39 }
 0x695   : > { %7696 = vmatprep.subr.bf16.mxu1 %v8339_v58 }
 0x697   : > { %7719 = vmatpush3.bf16.msra.mxu0 %v8340_v39 }
 0x698   : > { %7697 = vmatpush3.bf16.msra.mxu1 %v8339_v58  ;;  %7720 = vmatprep.subr.bf16.mxu0 %v8342_v29 }
 0x699   : > { %7698 = vmatprep.subr.bf16.mxu1 %v8341_v28 }
 0x69b   : > { %7721 = vmatpush3.bf16.msra.mxu0 %v8342_v29 }
 0x69c   : > { %7699 = vmatpush3.bf16.msra.mxu1 %v8341_v28  ;;  %7722 = vmatprep.subr.bf16.mxu0 %v8344_v21 }
 0x69d   : > { %7700 = vmatprep.subr.bf16.mxu1 %v8343_v44 }
 0x69f   : > { %7723 = vmatpush3.bf16.msra.mxu0 %v8344_v21  ;;  %v7323_v21 = vld [vmem:[%s9880_s12] ss:$0 sm:$0xff] }
 0x6a0   : > { %7701 = vmatpush3.bf16.msra.mxu1 %v8343_v44  ;;  %7724 = vmatprep.subr.bf16.mxu0 %v8346_v35 }
 0x6a1   : > { %7702 = vmatprep.subr.bf16.mxu1 %v8345_v61 }
 0x6a3   : > { %7725 = vmatpush3.bf16.msra.mxu0 %v8346_v35 }
 0x6a4   : > { %7703 = vmatpush3.bf16.msra.mxu1 %v8345_v61 }
 0x6a5   : > { %7704 = vmatprep.subr.bf16.mxu1 %v8347_v40 }
 0x6a6   : > { %7727 = vmatmul.mubr.bf16.vlgmr.msra.gmra.mxu0 %v7286_v7 }
 0x6a8   : > { %7705 = vmatpush3.bf16.msra.mxu1 %v8347_v40 }
 0x6a9   : > { %7730 = vmatprep.subr.bf16.mxu1 %v8349_v55 }
 0x6ab   : > { %7707 = vmatmul.mubr.bf16.vlgmr.msra.gmra.mxu1 %v7260_v11 }
 0x6ac   : > { %7731 = vmatpush3.bf16.msra.mxu1 %v8349_v55  ;;  %7746 = vmatprep.mubr.bf16.mxu1 %v7313_v26 }
 0x6ad   : > { %7732 = vmatprep.subr.bf16.mxu1 %v8350_v14 }
 0x6b0   : > { %7733 = vmatpush3.bf16.msra.mxu1 %v8350_v14 }
 0x6b1   : > { %7734 = vmatprep.subr.bf16.mxu1 %v8351_v50 }
 0x6b4   : > { %7735 = vmatpush3.bf16.msra.mxu1 %v8351_v50 }
 0x6b5   : > { %7736 = vmatprep.subr.bf16.mxu1 %v8352_v1 }
 0x6b8   : > { %7737 = vmatpush3.bf16.msra.mxu1 %v8352_v1 }
 0x6b9   : > { %7738 = vmatprep.subr.bf16.mxu1 %v8353_v38 }
 0x6bc   : > { %7739 = vmatpush3.bf16.msra.mxu1 %v8353_v38 }
 0x6bd   : > { %7740 = vmatprep.subr.bf16.mxu1 %v8354_v56 }
 0x6c0   : > { %7741 = vmatpush3.bf16.msra.mxu1 %v8354_v56 }
 0x6c1   : > { %7742 = vmatprep.subr.bf16.mxu1 %v8355_v48 }
 0x6c4   : > { %7743 = vmatpush3.bf16.msra.mxu1 %v8355_v48 }
 0x6c5   : > { %7744 = vmatprep.subr.bf16.mxu1 %v8356_v18 }
 0x6c8   : > { %7745 = vmatpush3.bf16.msra.mxu1 %v8356_v18 }
 0x6cb   : > { %7747 = vmatmul.mubr.bf16.vlgmr.msra.gmra.mxu1 %v7314_v22 }
 0x746   : > { %v7688_v31 = vpop.f32.mrf.mxu0 }
 0x748   : > { %v5753_v46 = vpop.f32.mrf.mxu0 }
 0x74a   : > { %v7689_v8 = vpop.f32.mrf.mxu0 }
 0x74b   : > { %v7668_v23 = vpop.f32.mrf.mxu1 }
 0x74c   : > { %v5756_v39 = vpop.f32.mrf.mxu0  ;;  %v5762_v13 = vadd.f32 %v7688_v31, %v7668_v23 }
 0x74d   : > { %v5648_v45 = vpop.f32.mrf.mxu1 }
 0x74e   : > { %v5754_v57 = vadd.f32 %v5753_v46, %v5648_v45 }
 0x74f   : > { %v7669_v36 = vpop.f32.mrf.mxu1 }
 0x750   : > { %v5765_v28 = vadd.f32 %v7689_v8, %v7669_v36  ;;  %v9742_v36 = vld [vmem:[%s9881_s13] ss:$0 sm:$0xff] }
 0x751   : > { %v5651_v54 = vpop.f32.mrf.mxu1 }
 0x752   : > { %v5757_v42 = vadd.f32 %v5756_v39, %v5651_v54  ;;  %v7333_v54 = vld [vmem:[%s9881_s13 + $0x1] ss:$0 sm:$0xff]  ;;  %v9754_v39 = vld [vmem:[%s9881_s13 + $0x3] ss:$0 sm:$0xff] }
 0x766   : > { %v7728_v59 = vpop.f32.mrf.mxu0 }
 0x768   : > { %v6057_v25 = vpop.f32.mrf.mxu0 }
 0x76a   : > { %v7729_v27 = vpop.f32.mrf.mxu0 }
 0x76b   : > { %v7708_v47 = vpop.f32.mrf.mxu1 }
 0x76c   : > { %v5894_v20 = vadd.f32 %v7708_v47, %v5762_v13  ;;  %v6060_v12 = vpop.f32.mrf.mxu0  ;;  %v7334_v47 = vld [vmem:[%s9881_s13 + $0x2] ss:$0 sm:$0xff]  ;;  %v9759_v13 = vld [vmem:[%s9881_s13 + $0x4] ss:$0 sm:$0xff] }
 0x76d   : > { %v5877_v58 = vpop.f32.mrf.mxu1 }
 0x76e   : > { %v5892_v29 = vadd.f32 %v5877_v58, %v5754_v57  ;;  %v6074_v43 = vadd.f32 %v7728_v59, %v5894_v20 }
 0x76f   : > { %v7709_v30 = vpop.f32.mrf.mxu1 }
 0x770   : > { %v5895_v33 = vadd.f32 %v7709_v30, %v5765_v28  ;;  %v6072_v2 = vadd.f32 %v6057_v25, %v5892_v29 }
 0x771   : > { %v5880_v51 = vpop.f32.mrf.mxu1 }
 0x772   : > { %v5893_v62 = vadd.f32 %v5880_v51, %v5757_v42  ;;  %v6075_v37 = vadd.f32 %v7729_v27, %v5895_v33 }
 0x774   : > { %v6073_v3 = vadd.f32 %v6060_v12, %v5893_v62 }
 0x78b   : > { %v7748_v44 = vpop.f32.mrf.mxu1 }
 0x78c   : > { %v6222_v53 = vadd.f32 %v7748_v44, %v6074_v43 }
 0x78d   : > { %v6205_v61 = vpop.f32.mrf.mxu1 }
 0x78e   : > { %v6233_v35 = vadd.f32 %v7323_v21, %v6222_v53  ;;  %v6220_v34 = vadd.f32 %v6205_v61, %v6072_v2 }
 0x78f   : > { %v7749_v49 = vpop.f32.mrf.mxu1 }
 0x790   : > { %v6241_v40 = vmin.f32 %v6233_v35, 0.0  ;;  %v6231_v10 = vadd.f32 %v7323_v21, %v6220_v34  ;;  %v6223_v0 = vadd.f32 %v7749_v49, %v6075_v37  ;;  %vm6237_vm11 = vcmp.gt.f32.partialorder %v6233_v35, 0.0 }
 0x791   : > { %v6208_v16 = vpop.f32.mrf.mxu1 }
 0x792   : > { %v6247_v41 = vmul.f32 1.442695, %v6241_v40  ;;  %v6239_v7 = vmin.f32 %v6231_v10, 0.0  ;;  %v6234_v55 = vadd.f32 %v7323_v21, %v6223_v0  ;;  %v6221_v52 = vadd.f32 %v6208_v16, %v6073_v3 }
 0x793   : > { %vm6235_vm8 = vcmp.gt.f32.partialorder %v6231_v10, 0.0 }
 0x794   : > { %8417 = vpow2.f32 %v6247_v41  ;;  %v6243_v17 = vmul.f32 1.442695, %v6239_v7  ;;  %v6242_v11 = vmin.f32 %v6234_v55, 0.0  ;;  %v6232_v63 = vadd.f32 %v7323_v21, %v6221_v52 }
 0x795   : > { %vm6238_vm9 = vcmp.gt.f32.partialorder %v6234_v55, 0.0 }
 0x796   : > { %8419 = vpow2.f32 %v6243_v17  ;;  %v6249_v14 = vmul.f32 1.442695, %v6242_v11  ;;  %v6240_v26 = vmin.f32 %v6232_v63, 0.0  ;;  %vm6236_vm14 = vcmp.gt.f32.partialorder %v6232_v63, 0.0 }
 0x798   : > { %8421 = vpow2.f32 %v6249_v14  ;;  %v6245_v50 = vmul.f32 1.442695, %v6240_v26 }
 0x79a   : > { %8423 = vpow2.f32 %v6245_v50 }
 0x7a1   : > { %v8418_v1 = vpop.eup %8417 }
 0x7a2   : > { %v7326_v38 = vadd.f32 -1.0, %v8418_v1 }
 0x7a3   : > { %v8420_v56 = vpop.eup %8419 }
 0x7a4   : > { %v6257_v48 = vsel %vm6237_vm11, %v6233_v35, %v7326_v38  ;;  %v7324_v19 = vadd.f32 -1.0, %v8420_v56 }
 0x7a5   : > { %v8422_v18 = vpop.eup %8421  ;;  %v7367_v6 = vpack.c.bf16 %v6257_v48, %v6257_v48 }
 0x7a6   : > { %v6255_v15 = vsel %vm6235_vm8, %v6231_v10, %v7324_v19  ;;  %v7327_v32 = vadd.f32 -1.0, %v8422_v18 }
 0x7a7   : > { %6277 = vst.msk [vmem:[#allocation2 + $0x28] sm:$0xf] %vm928_vm12, %v7367_v6  ;;  %v7365_v60 = vpack.c.bf16 %v6255_v15, %v6255_v15  ;;  %v8424_v9 = vpop.eup %8423 }
 0x7a8   : > { %v6258_v24 = vsel %vm6238_vm9, %v6234_v55, %v7327_v32  ;;  %v7325_v23 = vadd.f32 -1.0, %v8424_v9 }
 0x7a9   : > { %6275 = vst.msk [vmem:[#allocation2 + $0x8] sm:$0xf] %vm928_vm12, %v7365_v60  ;;  %v7368_v22 = vpack.c.bf16 %v6258_v24, %v6258_v24 }
 0x7aa   : > { %v6256_v45 = vsel %vm6236_vm14, %v6232_v63, %v7325_v23 }
 0x7ab   : > { %6278 = vst.msk [vmem:[#allocation2 + $0x30] sm:$0xf] %vm928_vm12, %v7368_v22  ;;  %v7366_v31 = vpack.c.bf16 %v6256_v45, %v6256_v45 }
 0x7ad   : > { %6276 = vst.msk [vmem:[#allocation2 + $0x10] sm:$0xf] %vm928_vm12, %v7366_v31  ;;  %vm6460_vm12 = vcmask 523270  }
 0x7ae   : > { %v6283_v46 = vld [vmem:[#allocation2 + $0x20] ss:$8 sps:$4 sm:$0xff]  }
 0x7af   : > { %v6291_v8 = vunpack.c.l.bf16 %v6283_v46  ;;  %v6292_v58 = vunpack.c.h.bf16 %v6283_v46 }
 0x7b0   : > { %v6279_v59 = vld [vmem:[#allocation2] ss:$8 sps:$4 sm:$0xff]  }
 0x7b1   : > { %v6303_v30 = vmul.f32 %v9742_v36, %v6291_v8  ;;  %v6320_v57 = vmul.f32 %v7333_v54, %v6291_v8  ;;  %v6321_v20 = vmul.f32 %v7333_v54, %v6292_v58  ;;  %v6358_v28 = vmul.f32 %v7334_v47, %v6292_v58 }
 0x7b2   : > { %v6390_v25 = vmul.f32 %v9754_v39, %v6292_v58  ;;  %v6429_v29 = vmul.f32 %v9759_v13, %v6292_v58  ;;  %v6287_v51 = vunpack.c.l.bf16 %v6279_v59  ;;  %v6288_v33 = vunpack.c.h.bf16 %v6279_v59  ;;  %v9764_v43 = vld [vmem:[#allocation2 + $0x30] ss:$8 sps:$4 sm:$0xff]  }
 0x7b3   : > { %v6334_v42 = vrot.slane %v6320_v57, 1  ;;  %v6335_v44 = vrot.slane %v6321_v20, 1  ;;  %v6367_v21 = vrot.slane %v6358_v28, 2  ;;  %v6293_v27 = vunpack.c.l.bf16 %v9764_v43 }
 0x7b4   : > { %v6404_v53 = vrot.slane %v6390_v25, 3  ;;  %v6443_v2 = vrot.slane %v6429_v29, 4  ;;  %v6300_v62 = vmul.f32 %v9742_v36, %v6287_v51  ;;  %v6317_v61 = vmul.f32 %v7333_v54, %v6287_v51  ;;  %v9772_v3 = vld [vmem:[#allocation2 + $0x10] ss:$8 sps:$4 sm:$0xff]  }
 0x7b5   : > { %v6336_v35 = vsel %vm693_vm1, %v6334_v42, %v6335_v44  ;;  %v6318_v34 = vmul.f32 %v7333_v54, %v6288_v33  ;;  %v6356_v37 = vmul.f32 %v7334_v47, %v6288_v33  ;;  %v6387_v49 = vmul.f32 %v9754_v39, %v6288_v33 }
 0x7b6   : > { %v6348_v12 = vadd.f32 %v6336_v35, %v6303_v30  ;;  %v6329_v40 = vrot.slane %v6317_v61, 1  ;;  %v6426_v10 = vmul.f32 %v9759_v13, %v6288_v33  ;;  %v6304_v0 = vmul.f32 %v9742_v36, %v6292_v58 }
 0x7b7   : > { %v6330_v16 = vrot.slane %v6318_v34, 1  ;;  %v6364_v41 = vrot.slane %v6356_v37, 2  ;;  %v6399_v7 = vrot.slane %v6387_v49, 3  ;;  %v6322_v55 = vmul.f32 %v7333_v54, %v6293_v27 }
 0x7b8   : > { %v6379_v52 = vadd.f32 %v6367_v21, %v6348_v12  ;;  %v6438_v17 = vrot.slane %v6426_v10, 4  ;;  %v6359_v11 = vmul.f32 %v7334_v47, %v6293_v27  ;;  %v6391_v63 = vmul.f32 %v9754_v39, %v6293_v27 }
 0x7b9   : > { %v6331_v14 = vsel %vm693_vm1, %v6329_v40, %v6330_v16  ;;  %v6337_v26 = vrot.slane %v6322_v55, 1  ;;  %v6430_v50 = vmul.f32 %v9759_v13, %v6293_v27  ;;  %v6289_v1 = vunpack.c.l.bf16 %v9772_v3 }
 0x7ba   : > { %v6418_v38 = vadd.f32 %v6404_v53, %v6379_v52  ;;  %v6345_v56 = vadd.f32 %v6331_v14, %v6300_v62  ;;  %v6368_v48 = vrot.slane %v6359_v11, 2  ;;  %v6405_v19 = vrot.slane %v6391_v63, 3 }
 0x7bb   : > { %v6338_v18 = vsel %vm693_vm1, %v6335_v44, %v6337_v26  ;;  %v6444_v6 = vrot.slane %v6430_v50, 4  ;;  %v6301_v15 = vmul.f32 %v9742_v36, %v6288_v33  ;;  %v6319_v32 = vmul.f32 %v7333_v54, %v6289_v1 }
 0x7bc   : > { %v6457_v60 = vadd.f32 %v6443_v2, %v6418_v38  ;;  %v6376_v9 = vadd.f32 %v6364_v41, %v6345_v56  ;;  %v6349_v24 = vadd.f32 %v6338_v18, %v6304_v0  ;;  %v6369_v22 = vsel %vm729_vm3, %v6367_v21, %v6368_v48 }
 0x7bd   : > { %v6406_v23 = vsel %vm775_vm2, %v6404_v53, %v6405_v19  ;;  %v6445_v45 = vsel %vm815_vm4, %v6443_v2, %v6444_v6  ;;  %v6332_v31 = vrot.slane %v6319_v32, 1  ;;  %v6357_v46 = vmul.f32 %v7334_v47, %v6289_v1 }
 0x7be   : > { %v6471_v8 = vsel %vm6460_vm12, %v6457_v60, 0.0  ;;  %v6415_v58 = vadd.f32 %v6399_v7, %v6376_v9  ;;  %v6380_v59 = vadd.f32 %v6369_v22, %v6349_v24  ;;  %v6388_v30 = vmul.f32 %v9754_v39, %v6289_v1 }
 0x7bf   : > { %6472 = vadd.xlane.f32.xlu0 %v6471_v8  ;;  %v6333_v54 = vsel %vm693_vm1, %v6330_v16, %v6332_v31  ;;  %v6365_v57 = vrot.slane %v6357_v46, 2  ;;  %v6427_v20 = vmul.f32 %v9759_v13, %v6289_v1  ;;  %v6294_v28 = vunpack.c.h.bf16 %v9764_v43 }
 0x7c0   : > { %v6454_v25 = vadd.f32 %v6438_v17, %v6415_v58  ;;  %v6419_v29 = vadd.f32 %v6406_v23, %v6380_v59  ;;  %v6346_v51 = vadd.f32 %v6333_v54, %v6301_v15  ;;  %v6400_v33 = vrot.slane %v6388_v30, 3 }
 0x7c1   : > { %v6366_v47 = vsel %vm729_vm3, %v6364_v41, %v6365_v57  ;;  %v6439_v42 = vrot.slane %v6427_v20, 4  ;;  %v6305_v44 = vmul.f32 %v9742_v36, %v6293_v27  ;;  %v6392_v21 = vmul.f32 %v9754_v39, %v6294_v28 }
 0x7c2   : > { %v6461_v53 = vsel %vm6460_vm12, %v6454_v25, 0.0  ;;  %v6458_v2 = vadd.f32 %v6445_v45, %v6419_v29  ;;  %v6377_v62 = vadd.f32 %v6366_v47, %v6346_v51  ;;  %v6401_v61 = vsel %vm775_vm2, %v6399_v7, %v6400_v33 }
 0x7c3   : > { %6462 = vadd.xlane.f32.xlu1 %v6461_v53  ;;  %v6350_v35 = vadd.f32 %v6337_v26, %v6305_v44  ;;  %v6407_v43 = vrot.slane %v6392_v21, 3  ;;  %v6431_v34 = vmul.f32 %v9759_v13, %v6294_v28  ;;  %v6440_v49 = vsel %vm815_vm4, %v6438_v17, %v6439_v42 }
 0x7c4   : > { %v6416_v37 = vadd.f32 %v6401_v61, %v6377_v62  ;;  %v6290_v12 = vunpack.c.h.bf16 %v9772_v3  ;;  %v6302_v27 = vmul.f32 %v9742_v36, %v6289_v1  ;;  %v6474_v40 = vsel %vm1055_vm0, %v6458_v2, 0.0 }
 0x7c5   : > { %v6381_v10 = vadd.f32 %v6368_v48, %v6350_v35  ;;  %v6408_v0 = vsel %vm775_vm2, %v6405_v19, %v6407_v43  ;;  %v6446_v16 = vrot.slane %v6431_v34, 4  ;;  %vm6467_vm1 = vcmask 521216   ;;  %v7337_v48 = vld [vmem:[#allocation4] ss:$0 sm:$0xff] }
 0x7c6   : > { %v6455_v41 = vadd.f32 %v6440_v49, %v6416_v37  ;;  %v6347_v55 = vadd.f32 %v6332_v31, %v6302_v27  ;;  %v6389_v7 = vmul.f32 %v9754_v39, %v6290_v12  ;;  %v6428_v52 = vmul.f32 %v9759_v13, %v6290_v12 }
 0x7c7   : > { %6475 = vadd.xlane.f32.xlu1 %v6474_v40  ;;  %v6420_v11 = vadd.f32 %v6408_v0, %v6381_v10  ;;  %v6447_v17 = vsel %vm815_vm4, %v6444_v6, %v6446_v16  ;;  %v6518_v46 = vand.u32 127, %v579_v4  ;;  %vm6536_vm3 = vcmask 146512  }
 0x7c8   : > { %v6464_v3 = vsel %vm1055_vm0, %v6455_v41, 0.0  ;;  %v6378_v36 = vadd.f32 %v6365_v57, %v6347_v55  ;;  %v6402_v63 = vrot.slane %v6389_v7, 3  ;;  %v6441_v14 = vrot.slane %v6428_v52, 4 }
 0x7c9   : > { %6465 = vadd.xlane.f32.xlu0 %v6464_v3  ;;  %v6459_v26 = vadd.f32 %v6447_v17, %v6420_v11  ;;  %v6524_v8 = vadd.s32 4294967294, %v6518_v46  ;;  %v6519_v59 = vadd.s32 6, %v6518_v46  ;;  %v6531_v30 = vadd.s32 4294967286, %v6518_v46 }
 0x7ca   : > { %v6403_v50 = vsel %vm775_vm2, %v6400_v33, %v6402_v63  ;;  %v6442_v39 = vsel %vm815_vm4, %v6439_v42, %v6441_v14  ;;  %vm6529_vm2 = vcmask 80912   ;;  %vm6554_vm4 = vcmask 129030  }
 0x7cb   : > { %v6477_v1 = vsel %vm6467_vm1, %v6459_v26, 0.0  ;;  %v6417_v38 = vadd.f32 %v6403_v50, %v6378_v36  ;;  %v6527_v57 = vsub.s32 %v6524_v8, %v8780_v5  ;;  %v6522_v28 = vsub.s32 %v6519_v59, %v8780_v5 }
 0x7cc   : > { %6478 = vadd.xlane.f32.xlu1 %v6477_v1  ;;  %v6534_v25 = vsub.s32 %v6531_v30, %v8780_v5 }
 0x7cd   : > { %v6456_v13 = vadd.f32 %v6442_v39, %v6417_v38 }
 0x7cf   : > { %v6468_v56 = vsel %vm6467_vm1, %v6456_v13, 0.0 }
 0x7d0   : > { %6469 = vadd.xlane.f32.xlu0 %v6468_v56 }
 0x848   : > { %v6473_v19 = vpop.xlane.xlu0 %6472 }
 0x849   : > { %v6490_v18 = vadd.f32 %v7337_v48, %v6473_v19 }
 0x84b   : > { %6509 = vperm.xlu1 %7835, %v6490_v18  }
 0x84c   : > { %v6463_v6 = vpop.xlane.xlu1 %6462 }
 0x84d   : > { %v6487_v15 = vadd.f32 %v7337_v48, %v6463_v6 }
 0x84f   : > { %6500 = vperm.xlu0 %7829, %v6487_v15  }
 0x850   : > { %v6476_v32 = vpop.xlane.xlu1 %6475 }
 0x851   : > { %v6491_v60 = vadd.f32 %v7337_v48, %v6476_v32 }
 0x852   : > { %v6466_v9 = vpop.xlane.xlu0 %6465 }
 0x853   : > { %v6488_v24 = vadd.f32 %v7337_v48, %v6466_v9  ;;  %6512 = vperm.xlu0 %7829, %v6491_v60  }
 0x855   : > { %6503 = vperm.xlu1 %7835, %v6488_v24   ;;  %v6479_v22 = vpop.xlane.xlu1 %6478 }
 0x856   : > { %v6492_v23 = vadd.f32 %v7337_v48, %v6479_v22 }
 0x858   : > { %6515 = vperm.xlu0 %7829, %v6492_v23  }
 0x859   : > { %v6470_v45 = vpop.xlane.xlu0 %6469 }
 0x85a   : > { %v6489_v31 = vadd.f32 %v7337_v48, %v6470_v45 }
 0x85c   : > { %6506 = vperm.xlu1 %7835, %v6489_v31  }
 0x8c6   : > { %v6510_v54 = vpop.permute.xlu1 %6509 }
 0x8c7   : > { %v6541_v4 = vrot.slane %v6510_v54, %v6522_v28 }
 0x8ca   : > { %v6501_v58 = vpop.permute.xlu0 %6500 }
 0x8cb   : > { %v6523_v53 = vrot.slane %v6501_v58, %v6522_v28 }
 0x8ce   : > { %v6513_v20 = vpop.permute.xlu0 %6512 }
 0x8cf   : > { %v6545_v51 = vrot.slane %v6513_v20, %v6527_v57 }
 0x8d0   : > { %v6504_v29 = vpop.permute.xlu1 %6503 }
 0x8d1   : > { %v6528_v42 = vrot.slane %v6504_v29, %v6527_v57  ;;  %v6546_v44 = vsel %vm6529_vm2, %v6545_v51, %v6541_v4 }
 0x8d3   : > { %v6516_v33 = vpop.permute.xlu0 %6515  ;;  %v6530_v62 = vsel %vm6529_vm2, %v6528_v42, %v6523_v53 }
 0x8d4   : > { %v6550_v47 = vrot.slane %v6516_v33, %v6534_v25 }
 0x8d6   : > { %v6551_v21 = vsel %vm6536_vm3, %v6550_v47, %v6546_v44 }
 0x8d7   : > { %v6507_v5 = vpop.permute.xlu1 %6506  ;;  %6556 = vst.msk [vmem:[%s532_s16 - $0x5] sm:$0x40] %vm6554_vm4, %v6551_v21 }
 0x8d8   : > { %v6535_v2 = vrot.slane %v6507_v5, %v6534_v25 }
 0x8da   : > { %v6537_v61 = vsel %vm6536_vm3, %v6535_v2, %v6530_v62 }
 0x8db   : > { %6555 = vst.msk [vmem:[%s532_s16 - $0x6] sm:$0x40] %vm6554_vm4, %v6537_v61 }
 0x8dc   : > { %8525 = shalt.err (!%p8522_p0)
}
 0x8dd   : > { %s8526_s19 = scalar_lea.hbm %s9819_s25, 32  ;;  %s8530_s17 = scalar_lea.hbm %s9883_s15, 64 }
 0x8de   : > { %p8527_p6 = scmp.ne.s32.totalorder %s9819_s25, %s8526_s19  ;;  %p8531_p5 = scmp.lt.s32.totalorder %s9819_s25, %s9883_s15 }
 0x8df   : > { %p8532_p1 = scmp.lt.s32.totalorder %s8530_s17, %s8526_s19 }
 0x8e0   : > { %p8528_p9 = pnand %p8527_p6, %p9912_p12 }
 0x8e1   : > { %p8533_p3 = por %p8532_p1, %p8531_p5 }
 0x8e2   : > { %p8529_p13 = pneg %p8528_p9 }
 0x8e4   : > { %p8534_p10 = pnand %p8533_p3, %p8529_p13 }
 0x8e6   : > { %8537 = shalt.err (!%p8534_p10)
}
 0x8e7   : > { %s8593_s30 = smov 16   ;;  %s8594_s18 = smov 1  }
 0x8e8   : > { %7762 = dma.vmem_to_hbm [thread:$0]  (%p9912_p12), %s9821_s26, 32, %s9819_s25, %s9828_s14, %s8593_s30, %s8593_s30, %s8594_s18  }
 0x8e9 PF: > { %s9913_s27 = sld [smem:[#allocation15_spill]]  ;;  %p7784_p2 = scmp.ge.s32.totalorder %s8580_s23, 2 }
 0x8ea   : > { %s9914_s20 = sld [smem:[#allocation19_spill]] }
 0x8ef   : > { %s6586_s28 = sand.u32 1, %s9913_s27  }
 0x8f0   : > { %p9915_p4 = scmp.ne.s32.totalorder %s9914_s20, 0  ;;  %s6587_s19 = scalar_lea.sflag [#allocation7], %s6586_s28 }
 0x8f2   : > { %p7775_p7 = pnand %p7784_p2, %p9915_p4 }
 0x8f4   : > { %p7776_p8 = pneg %p7775_p7 }
 0x8f6   : > { %8563 = dma.done.wait (%p7776_p8), %s6587_s19, 32  }
 0x8f7   : > { %8565 = vsyncadd (%p7776_p8), %s6587_s19, 4294967264  ;;  %s9916_s23 = sld [smem:[#allocation17_spill]]  ;;  %s9919_s20 = smov %s8572_s21 }
 0x8f8   : > { %s9917_s16 = sld [smem:[#allocation16_spill]] }
 0x8f9   : > { %s9918_s22 = sld [smem:[#allocation18_spill]] }
 0x8fd   : > { %p29_p11 = scmp.ge.s32.totalorder %s9916_s23, 4  }
 0x8fe   : > { %s9920_s21 = smov %s9917_s16 }
 0x8ff   :  { %31 = sbr.rel (!%p29_p11) target bundleno = 8 (0x8), region = 148 }
 0x904   :  { %6592 = vsyncpa [#allocation6], 1 }
 0x905   :  { %6594 = vsyncpa [#allocation6 + $0x1], 1 }
 0x906   :  { %6595 = vsyncpa [#allocation9], 1 }
 0x907   :  { %6596 = vsyncpa [#allocation7], 1 }
 0x908   :  { %6598 = vsyncpa [#allocation7 + $0x1], 1 }

</bundles_post_ra>
